<compile_context>
chip_gen: v6e
topology: v6e:2x2x1
jax: 0.10.0
libtpu: 0.0.40
codegen_flags: <defaults>
</compile_context>

<pallas_src>
import jax
import jax.numpy as jnp
import numpy as np
from jax.experimental import pallas as pl
from jax.experimental.pallas import tpu as pltpu


def _round_up(n, m):
  return ((n + m - 1) // m) * m


# -----------------------------------------------------------------------------
# Wrapper-side parameter packing (done ONCE, outside the jitted hot path).
# -----------------------------------------------------------------------------
def pack_params(enc_params, dec_params, w_lin, b_lin, *,
                input_size, hidden, num_layers):
  """Packs every parameter into a single (rows, width) f32 slab.

  Per-layer LSTM params are (W_ih (in,4H), W_hh (H,4H), b_ih (1,4H), b_hh
  (1,4H)), already in `x @ W` orientation, PyTorch gate order [i, f, g, o].

  Packing choices (see header):
    - i/f/o gate columns pre-scaled by 0.5 (single-tanh sigmoid trick),
    - layer-0 W_ih zero-padded D -> Dp rows,
    - output Linear zero-padded D -> Dp cols,
    - b_ih + b_hh pre-summed,
    - every segment row-padded to a multiple of 8 so slab offsets are
      sublane-aligned.

  Returns (w_slab, seg_info) with seg_info[name] = (row_off, rows, cols),
  all static Python ints.
  """
  h4 = 4 * hidden
  dp = _round_up(input_size, 128)
  width = max(h4, dp)
  scale = jnp.concatenate([
      jnp.full((hidden,), 0.5, jnp.float32),
      jnp.full((hidden,), 0.5, jnp.float32),
      jnp.ones((hidden,), jnp.float32),
      jnp.full((hidden,), 0.5, jnp.float32),
  ])

  seg_mats = []
  seg_info = {}
  offset = [0]

  def push(name, mat, gate_scaled):
    mat = mat.astype(jnp.float32)
    if gate_scaled:
      mat = mat * scale[None, :]
    rows, cols = mat.shape
    mat = jnp.pad(mat, ((0, _round_up(rows, 8) - rows), (0, width - cols)))
    seg_info[name] = (offset[0], rows, cols)
    seg_mats.append(mat)
    offset[0] += mat.shape[0]

  for tag, params in (("enc", enc_params), ("dec", dec_params)):
    for l in range(num_layers):
      w_ih, w_hh, b_ih, b_hh = params[l]
      if l == 0:
        # Zero-pad input rows D -> Dp: x (and the decoder's recursive feedback)
        # is lane-padded to Dp with zeros, so the extra rows contribute nothing.
        w_ih = jnp.pad(w_ih.astype(jnp.float32),
                       ((0, dp - w_ih.shape[0]), (0, 0)))
      push(f"{tag}_ih{l}", w_ih, True)
      push(f"{tag}_hh{l}", w_hh, True)
      push(f"{tag}_b{l}", b_ih + b_hh, True)

  push("w_lin",
       jnp.pad(w_lin.astype(jnp.float32), ((0, 0), (0, dp - w_lin.shape[1]))),
       False)
  push("b_lin",
       jnp.pad(b_lin.astype(jnp.float32), ((0, 0), (0, dp - b_lin.shape[1]))),
       False)

  w_slab = jnp.concatenate(seg_mats, axis=0)
  return w_slab, seg_info


# -----------------------------------------------------------------------------
# Pallas kernel.
# -----------------------------------------------------------------------------
def _make_kernel(batch_tile, seq_len, dp, hidden, num_layers, horizon,
                 seg_info):
  TB, T, Dp, H, L = batch_tile, seq_len, dp, hidden, num_layers
  H4 = 4 * hidden

  def kernel(x_ref, w_ref, out_ref, gx_ref):
    # x_ref   : (T*TB, Dp)   time-major rows t*TB:(t+1)*TB for this batch tile
    # w_ref   : (R, width)   packed parameter slab
    # out_ref : (horizon*TB, Dp)
    # gx_ref  : (T*TB, 4H)   VMEM scratch for the encoder layer-0 projection

    def seg(name):
      # Re-read the slab slice at every use site: VMEM reloads are cheap; long
      # weight live ranges (and the spills they cause on the serial chain) are
      # not.
      off, rows, cols = seg_info[name]
      return w_ref[off:off + rows, 0:cols]

    def dotf(a, b):
      return jnp.dot(a, b, preferred_element_type=jnp.float32)

    def cell(z, c):
      # One full-width tanh covers all four gates: i/f/o columns were
      # pre-scaled by 0.5 wrapper-side, so sigmoid(z) == 0.5*tanh(z/2) + 0.5
      # falls out of the same EUP pass as g = tanh(z).
      t = jnp.tanh(z)
      i = 0.5 * t[:, 0 * H:1 * H] + 0.5
      f = 0.5 * t[:, 1 * H:2 * H] + 0.5
      g = t[:, 2 * H:3 * H]
      o = 0.5 * t[:, 3 * H:4 * H] + 0.5
      c_new = f * c + i * g
      return o * jnp.tanh(c_new), c_new

    # ---- Bias broadcasts hoisted ONCE (tiny; broadcast_in_dim is not CSE'd).
    #      Encoder layer-0 bias is folded into the batched x-projection. ----
    b_enc = [None] + [jnp.broadcast_to(seg(f"enc_b{l}"), (TB, H4))
                      for l in range(1, L)]
    b_dec = [jnp.broadcast_to(seg(f"dec_b{l}"), (TB, H4)) for l in range(L)]
    b_lin = jnp.broadcast_to(seg("b_lin"), (TB, Dp))

    # ---- Encoder layer-0 input projection: ONE batched MXU matmul over the
    #      whole sequence, parked in VMEM scratch; the recurrence re-reads one
    #      (TB, 4H) slice per step (bounds live ranges). ----
    gx_ref[...] = dotf(x_ref[...], seg("enc_ih0")) + seg("enc_b0")

    # ---- Encoder recurrence (zero initial state). Un-fused W_ih / W_hh dots:
    #      dot(h[l]_{t-1}, W_hh) does not depend on layer l-1's step-t output,
    #      so its MXU latency hides under the previous layer's gate math. ----
    h = [jnp.zeros((TB, H), jnp.float32) for _ in range(L)]
    c = [jnp.zeros((TB, H), jnp.float32) for _ in range(L)]
    # TODO(synk): convert to lax.fori_loop(..., unroll=k) if T grows beyond ~16.
    for t in range(T):
      z0 = gx_ref[t * TB:(t + 1) * TB, :] + dotf(h[0], seg("enc_hh0"))
      h[0], c[0] = cell(z0, c[0])
      layer_in = h[0]
      for l in range(1, L):
        z = (dotf(layer_in, seg(f"enc_ih{l}")) +
             dotf(h[l], seg(f"enc_hh{l}")) + b_enc[l])
        h[l], c[l] = cell(z, c[l])
        layer_in = h[l]

    # ---- Decoder: seeded from encoder final state, recursive feeding.
    #      dec_in stays lane-dense (TB, Dp): w_lin/b_lin are zero-padded to Dp
    #      cols and decoder layer-0 W_ih is zero-padded to Dp rows, so the
    #      feedback path never needs a sub-lane slice. ----
    dh = list(h)
    dc = list(c)
    dec_in = x_ref[(T - 1) * TB:T * TB, :]          # x[:, -1, :] (lane padded)
    for s in range(horizon):
      layer_in = dec_in
      for l in range(L):
        z = (dotf(layer_in, seg(f"dec_ih{l}")) +
             dotf(dh[l], seg(f"dec_hh{l}")) + b_dec[l])
        dh[l], dc[l] = cell(z, dc[l])
        layer_in = dh[l]
      dec_out = dotf(dh[L - 1], seg("w_lin")) + b_lin   # (TB, Dp), lane-dense
      out_ref[s * TB:(s + 1) * TB, :] = dec_out          # full-width vst
      dec_in = dec_out                                   # recursive mode

  return kernel


# -----------------------------------------------------------------------------
# Forward wrapper (hot path takes the pre-packed slab).
# -----------------------------------------------------------------------------
def build_forward(*, seq_len, input_size, hidden, num_layers, horizon,
                  seg_info, target_dims=(0,), scale01=False, batch_tile=None):
  dp = _round_up(input_size, 128)
  h4 = 4 * hidden
  width = max(h4, dp)

  def forward(x, w_slab):
    batch = x.shape[0]
    tb = batch if batch_tile is None else batch_tile
    assert batch % tb == 0 and (tb % 8 == 0 or tb == batch), (batch, tb)
    nb = batch // tb
    assert w_slab.shape[1] == width

    kernel = _make_kernel(tb, seq_len, dp, hidden, num_layers, horizon,
                          seg_info)

    # Wrapper-side layout plumbing (pure XLA, not on the kernel critical path):
    # time-major, lane-pad D -> Dp with zeros, group rows per batch tile so the
    # kernel sees a contiguous (T*TB, Dp) slab per grid step.
    x_tm = jnp.transpose(x, (1, 0, 2)).astype(jnp.float32)      # (T, B, D)
    x_tm = jnp.pad(x_tm, ((0, 0), (0, 0), (0, dp - input_size)))  # (T, B, Dp)
    x_g = (x_tm.reshape(seq_len, nb, tb, dp)
           .transpose(1, 0, 2, 3)
           .reshape(nb, seq_len * tb, dp))                      # (NB, T*TB, Dp)

    slab_rows = w_slab.shape[0]
    out_g = pl.pallas_call(
        kernel,
        grid=(nb,),
        out_shape=jax.ShapeDtypeStruct((nb, horizon * tb, dp), jnp.float32),
        in_specs=[
            pl.BlockSpec((None, seq_len * tb, dp), lambda b: (b, 0, 0)),
            pl.BlockSpec((slab_rows, width), lambda b: (0, 0)),
        ],
        out_specs=pl.BlockSpec((None, horizon * tb, dp), lambda b: (b, 0, 0)),
        scratch_shapes=[pltpu.VMEM((seq_len * tb, h4), jnp.float32)],
        compiler_params=pltpu.CompilerParams(
            dimension_semantics=("parallel",)),   # v7x: one batch tile per TC
    )(x_g, w_slab)

    out = (out_g.reshape(nb, horizon, tb, dp)
           .transpose(0, 2, 1, 3)
           .reshape(batch, horizon, dp))
    out = out[:, :, list(target_dims)]
    if scale01:
      out = jax.nn.sigmoid(out)
    return out

  return forward


# -----------------------------------------------------------------------------
# Pure-JAX reference mirroring the PyTorch forward (recursive mode).
# -----------------------------------------------------------------------------
def _lstm_cell_ref(x_t, h, c, w_ih, w_hh, b_ih, b_hh, hidden):
  gates = (jnp.dot(x_t, w_ih, preferred_element_type=jnp.float32)
           + jnp.dot(h, w_hh, preferred_element_type=jnp.float32)
           + b_ih + b_hh)
  i = jax.nn.sigmoid(gates[:, 0 * hidden:1 * hidden])
  f = jax.nn.sigmoid(gates[:, 1 * hidden:2 * hidden])
  g = jnp.tanh(gates[:, 2 * hidden:3 * hidden])
  o = jax.nn.sigmoid(gates[:, 3 * hidden:4 * hidden])
  c_new = f * c + i * g
  h_new = o * jnp.tanh(c_new)
  return h_new, c_new


def _reference_forward(x, enc_params, dec_params, w_lin, b_lin,
                       *, hidden, num_layers, horizon, target_dims=(0,)):
  batch, seq_len, _ = x.shape
  h = [jnp.zeros((batch, hidden), jnp.float32) for _ in range(num_layers)]
  c = [jnp.zeros((batch, hidden), jnp.float32) for _ in range(num_layers)]
  for t in range(seq_len):
    layer_in = x[:, t, :]
    for l in range(num_layers):
      w_ih, w_hh, b_ih, b_hh = enc_params[l]
      h[l], c[l] = _lstm_cell_ref(layer_in, h[l], c[l], w_ih, w_hh, b_ih, b_hh,
                                  hidden)
      layer_in = h[l]
  dh, dc = list(h), list(c)
  dec_in = x[:, seq_len - 1, :]
  outs = []
  for _ in range(horizon):
    layer_in = dec_in
    for l in range(num_layers):
      w_ih, w_hh, b_ih, b_hh = dec_params[l]
      dh[l], dc[l] = _lstm_cell_ref(layer_in, dh[l], dc[l], w_ih, w_hh, b_ih,
                                    b_hh, hidden)
      layer_in = dh[l]
    dec_out = dh[num_layers - 1] @ w_lin + b_lin
    outs.append(dec_out)
    dec_in = dec_out
  outputs = jnp.stack(outs, axis=1)
  return outputs[:, :, list(target_dims)]


def _init_lstm_params(key, num_layers, input_size, hidden):
  """Deterministic uniform(-1/sqrt(H), 1/sqrt(H)) init, PyTorch-style shapes,
  pre-transposed to (in, 4H)."""
  k = 1.0 / np.sqrt(hidden)
  params = []
  for l in range(num_layers):
    in_dim = input_size if l == 0 else hidden
    key, k1, k2, k3, k4 = jax.random.split(key, 5)
    w_ih = jax.random.uniform(k1, (in_dim, 4 * hidden), jnp.float32, -k, k)
    w_hh = jax.random.uniform(k2, (hidden, 4 * hidden), jnp.float32, -k, k)
    b_ih = jax.random.uniform(k3, (1, 4 * hidden), jnp.float32, -k, k)
    b_hh = jax.random.uniform(k4, (1, 4 * hidden), jnp.float32, -k, k)
    params.append((w_ih, w_hh, b_ih, b_hh))
  return key, params


if __name__ == "__main__":
  # Small shapes consistent with the module's forward.
  BATCH = 16          # >= 16 so the batch grid (v7x megacore) path is exercised
  SEQ = 8
  INPUT_SIZE = 8      # input_size (and decoder output_size)
  HIDDEN = 32         # hidden_size (4H = 128 -> one lane-dense gate slab)
  NUM_LAYERS = 2
  HORIZON = 4         # forecasting_horizon
  TARGET_DIMS = (0,)
  BATCH_TILE = 8      # v7x: half the batch per TensorCore.  Use BATCH_TILE=None
                      # (single tile) on single-TensorCore parts (v5e/v6e).

  key = jax.random.PRNGKey(0)
  key, xk = jax.random.split(key)
  x = jax.random.normal(xk, (BATCH, SEQ, INPUT_SIZE), jnp.float32)

  key, enc_params = _init_lstm_params(key, NUM_LAYERS, INPUT_SIZE, HIDDEN)
  key, dec_params = _init_lstm_params(key, NUM_LAYERS, INPUT_SIZE, HIDDEN)
  klin = 1.0 / np.sqrt(HIDDEN)
  key, wk, bk = jax.random.split(key, 3)
  w_lin = jax.random.uniform(wk, (HIDDEN, INPUT_SIZE), jnp.float32, -klin, klin)
  b_lin = jax.random.uniform(bk, (1, INPUT_SIZE), jnp.float32, -klin, klin)

  # Pack once (outside the jitted hot path), like parameter prep at init time.
  w_slab, seg_info = pack_params(
      enc_params, dec_params, w_lin, b_lin,
      input_size=INPUT_SIZE, hidden=HIDDEN, num_layers=NUM_LAYERS)

  fwd = jax.jit(build_forward(
      seq_len=SEQ, input_size=INPUT_SIZE, hidden=HIDDEN,
      num_layers=NUM_LAYERS, horizon=HORIZON, seg_info=seg_info,
      target_dims=TARGET_DIMS, scale01=False, batch_tile=BATCH_TILE))

  out = fwd(x, w_slab)
  out = jax.block_until_ready(out)

  ref = _reference_forward(x, enc_params, dec_params, w_lin, b_lin,
                           hidden=HIDDEN, num_layers=NUM_LAYERS,
                           horizon=HORIZON, target_dims=TARGET_DIMS)
  ref = jax.block_until_ready(ref)

  assert out.shape == (BATCH, HORIZON, len(TARGET_DIMS)), out.shape
  # Tolerance 1e-4: the single-tanh sigmoid and the un-fused two-dot gate sums
  # change rounding at the ~1e-6 level vs. the direct-sigmoid reference.
  np.testing.assert_allclose(np.asarray(out), np.asarray(ref),
                             rtol=1e-4, atol=1e-4)

  print("KERNEL_OK")
</pallas_src>

<mosaic_0001>
module attributes {stable_mosaic.version = 11 : i64} {
  func.func @kernel(%arg0: i32, %arg1: memref<1x64x128xf32, #tpu.memory_space<vmem>>, %arg2: memref<520x128xf32, #tpu.memory_space<vmem>>, %arg3: memref<1x32x128xf32, #tpu.memory_space<vmem>>, %arg4: memref<64x128xf32, #tpu.memory_space<vmem>>) attributes {dimension_semantics = [#tpu.dimension_semantics<parallel>], iteration_bounds = array<i64: 2>, scalar_prefetch = 0 : i64, scratch_operands = 1 : i64, tpu.core_type = #tpu.core_type<tc>, window_params = [{transform_indices = @transform_0, window_bounds = array<i64: 1, 64, 128>}, {pipeline_mode = #tpu.pipeline_mode<synchronous>, transform_indices = @transform_1, window_bounds = array<i64: 520, 128>}, {transform_indices = @transform_2, window_bounds = array<i64: 1, 32, 128>}]} {
    %c232 = arith.constant 232 : index
    %c0 = arith.constant 0 : index
    %0 = vector.load %arg2[%c232, %c0] : memref<520x128xf32, #tpu.memory_space<vmem>>, vector<1x128xf32>
    %1 = vector.shape_cast %0 : vector<1x128xf32> to vector<1x128xf32>
    %2 = vector.broadcast %1 : vector<1x128xf32> to vector<8x128xf32>
    %c400 = arith.constant 400 : index
    %c0_0 = arith.constant 0 : index
    %3 = vector.load %arg2[%c400, %c0_0] : memref<520x128xf32, #tpu.memory_space<vmem>>, vector<1x128xf32>
    %4 = vector.shape_cast %3 : vector<1x128xf32> to vector<1x128xf32>
    %5 = vector.broadcast %4 : vector<1x128xf32> to vector<8x128xf32>
    %c472 = arith.constant 472 : index
    %c0_1 = arith.constant 0 : index
    %6 = vector.load %arg2[%c472, %c0_1] : memref<520x128xf32, #tpu.memory_space<vmem>>, vector<1x128xf32>
    %7 = vector.shape_cast %6 : vector<1x128xf32> to vector<1x128xf32>
    %8 = vector.broadcast %7 : vector<1x128xf32> to vector<8x128xf32>
    %c512 = arith.constant 512 : index
    %c0_2 = arith.constant 0 : index
    %9 = vector.load %arg2[%c512, %c0_2] : memref<520x128xf32, #tpu.memory_space<vmem>>, vector<1x128xf32>
    %10 = vector.shape_cast %9 : vector<1x128xf32> to vector<1x128xf32>
    %11 = vector.broadcast %10 : vector<1x128xf32> to vector<8x128xf32>
    %c0_3 = arith.constant 0 : index
    %c0_4 = arith.constant 0 : index
    %c0_5 = arith.constant 0 : index
    %12 = vector.load %arg1[%c0_3, %c0_4, %c0_5] : memref<1x64x128xf32, #tpu.memory_space<vmem>>, vector<1x64x128xf32>
    %13 = vector.shape_cast %12 : vector<1x64x128xf32> to vector<64x128xf32>
    %c0_6 = arith.constant 0 : index
    %c0_7 = arith.constant 0 : index
    %14 = vector.load %arg2[%c0_6, %c0_7] : memref<520x128xf32, #tpu.memory_space<vmem>>, vector<128x128xf32>
    %cst = arith.constant dense<0.000000e+00> : vector<64x128xf32>
    %15 = tpu.matmul %13, %14, %cst {dimension_numbers = #tpu.dot_dimension_numbers<[1], [0], [0], [1], [0, 0, 1, 1], [], []>} : vector<64x128xf32>, vector<128x128xf32>, vector<64x128xf32> -> vector<64x128xf32>
    %c160 = arith.constant 160 : index
    %c0_8 = arith.constant 0 : index
    %16 = vector.load %arg2[%c160, %c0_8] : memref<520x128xf32, #tpu.memory_space<vmem>>, vector<1x128xf32>
    %17 = vector.broadcast %16 : vector<1x128xf32> to vector<64x128xf32>
    %18 = arith.addf %15, %17 : vector<64x128xf32>
    %c0_9 = arith.constant 0 : index
    %c0_10 = arith.constant 0 : index
    %19 = vector.load %arg4[%c0_9, %c0_10] : memref<64x128xf32, #tpu.memory_space<vmem>>, vector<64x128xf32>
    tpu.vector_store %arg4[%c0_9, %c0_10], %18 {strides = array<i32>} : memref<64x128xf32, #tpu.memory_space<vmem>>, vector<64x128xf32>,
    %cst_11 = arith.constant 0.000000e+00 : f32
    %20 = vector.broadcast %cst_11 : f32 to vector<8x32xf32>
    %cst_12 = arith.constant 0.000000e+00 : f32
    %21 = vector.broadcast %cst_12 : f32 to vector<8x32xf32>
    %cst_13 = arith.constant 0.000000e+00 : f32
    %22 = vector.broadcast %cst_13 : f32 to vector<8x32xf32>
    %cst_14 = arith.constant 0.000000e+00 : f32
    %23 = vector.broadcast %cst_14 : f32 to vector<8x32xf32>
    %c0_15 = arith.constant 0 : index
    %c0_16 = arith.constant 0 : index
    %24 = vector.load %arg4[%c0_15, %c0_16] : memref<64x128xf32, #tpu.memory_space<vmem>>, vector<8x128xf32>
    %c128 = arith.constant 128 : index
    %c0_17 = arith.constant 0 : index
    %25 = vector.load %arg2[%c128, %c0_17] : memref<520x128xf32, #tpu.memory_space<vmem>>, vector<32x128xf32>
    %cst_18 = arith.constant dense<0.000000e+00> : vector<8x128xf32>
    %26 = tpu.matmul %20, %25, %cst_18 {dimension_numbers = #tpu.dot_dimension_numbers<[1], [0], [0], [1], [0, 0, 1, 1], [], []>} : vector<8x32xf32>, vector<32x128xf32>, vector<8x128xf32> -> vector<8x128xf32>
    %27 = arith.addf %24, %26 : vector<8x128xf32>
    %28 = math.tanh %27 : vector<8x128xf32>
    %29 = vector.extract_strided_slice %28 {offsets = [0, 0], sizes = [8, 32], strides = [1, 1]} : vector<8x128xf32> to vector<8x32xf32>
    %cst_19 = arith.constant 5.000000e-01 : f32
    %30 = vector.broadcast %cst_19 : f32 to vector<8x32xf32>
    %31 = arith.mulf %30, %29 : vector<8x32xf32>
    %cst_20 = arith.constant 5.000000e-01 : f32
    %32 = vector.broadcast %cst_20 : f32 to vector<8x32xf32>
    %33 = arith.addf %31, %32 : vector<8x32xf32>
    %34 = vector.extract_strided_slice %28 {offsets = [0, 32], sizes = [8, 32], strides = [1, 1]} : vector<8x128xf32> to vector<8x32xf32>
    %cst_21 = arith.constant 5.000000e-01 : f32
    %35 = vector.broadcast %cst_21 : f32 to vector<8x32xf32>
    %36 = arith.mulf %35, %34 : vector<8x32xf32>
    %cst_22 = arith.constant 5.000000e-01 : f32
    %37 = vector.broadcast %cst_22 : f32 to vector<8x32xf32>
    %38 = arith.addf %36, %37 : vector<8x32xf32>
    %39 = vector.extract_strided_slice %28 {offsets = [0, 64], sizes = [8, 32], strides = [1, 1]} : vector<8x128xf32> to vector<8x32xf32>
    %40 = vector.extract_strided_slice %28 {offsets = [0, 96], sizes = [8, 32], strides = [1, 1]} : vector<8x128xf32> to vector<8x32xf32>
    %cst_23 = arith.constant 5.000000e-01 : f32
    %41 = vector.broadcast %cst_23 : f32 to vector<8x32xf32>
    %42 = arith.mulf %41, %40 : vector<8x32xf32>
    %cst_24 = arith.constant 5.000000e-01 : f32
    %43 = vector.broadcast %cst_24 : f32 to vector<8x32xf32>
    %44 = arith.addf %42, %43 : vector<8x32xf32>
    %45 = arith.mulf %38, %22 : vector<8x32xf32>
    %46 = arith.mulf %33, %39 : vector<8x32xf32>
    %47 = arith.addf %45, %46 : vector<8x32xf32>
    %48 = math.tanh %47 : vector<8x32xf32>
    %49 = arith.mulf %44, %48 : vector<8x32xf32>
    %c168 = arith.constant 168 : index
    %c0_25 = arith.constant 0 : index
    %50 = vector.load %arg2[%c168, %c0_25] : memref<520x128xf32, #tpu.memory_space<vmem>>, vector<32x128xf32>
    %cst_26 = arith.constant dense<0.000000e+00> : vector<8x128xf32>
    %51 = tpu.matmul %49, %50, %cst_26 {dimension_numbers = #tpu.dot_dimension_numbers<[1], [0], [0], [1], [0, 0, 1, 1], [], []>} : vector<8x32xf32>, vector<32x128xf32>, vector<8x128xf32> -> vector<8x128xf32>
    %c200 = arith.constant 200 : index
    %c0_27 = arith.constant 0 : index
    %52 = vector.load %arg2[%c200, %c0_27] : memref<520x128xf32, #tpu.memory_space<vmem>>, vector<32x128xf32>
    %cst_28 = arith.constant dense<0.000000e+00> : vector<8x128xf32>
    %53 = tpu.matmul %21, %52, %cst_28 {dimension_numbers = #tpu.dot_dimension_numbers<[1], [0], [0], [1], [0, 0, 1, 1], [], []>} : vector<8x32xf32>, vector<32x128xf32>, vector<8x128xf32> -> vector<8x128xf32>
    %54 = arith.addf %51, %53 : vector<8x128xf32>
    %55 = arith.addf %54, %2 : vector<8x128xf32>
    %56 = math.tanh %55 : vector<8x128xf32>
    %57 = vector.extract_strided_slice %56 {offsets = [0, 0], sizes = [8, 32], strides = [1, 1]} : vector<8x128xf32> to vector<8x32xf32>
    %cst_29 = arith.constant 5.000000e-01 : f32
    %58 = vector.broadcast %cst_29 : f32 to vector<8x32xf32>
    %59 = arith.mulf %58, %57 : vector<8x32xf32>
    %cst_30 = arith.constant 5.000000e-01 : f32
    %60 = vector.broadcast %cst_30 : f32 to vector<8x32xf32>
    %61 = arith.addf %59, %60 : vector<8x32xf32>
    %62 = vector.extract_strided_slice %56 {offsets = [0, 32], sizes = [8, 32], strides = [1, 1]} : vector<8x128xf32> to vector<8x32xf32>
    %cst_31 = arith.constant 5.000000e-01 : f32
    %63 = vector.broadcast %cst_31 : f32 to vector<8x32xf32>
    %64 = arith.mulf %63, %62 : vector<8x32xf32>
    %cst_32 = arith.constant 5.000000e-01 : f32
    %65 = vector.broadcast %cst_32 : f32 to vector<8x32xf32>
    %66 = arith.addf %64, %65 : vector<8x32xf32>
    %67 = vector.extract_strided_slice %56 {offsets = [0, 64], sizes = [8, 32], strides = [1, 1]} : vector<8x128xf32> to vector<8x32xf32>
    %68 = vector.extract_strided_slice %56 {offsets = [0, 96], sizes = [8, 32], strides = [1, 1]} : vector<8x128xf32> to vector<8x32xf32>
    %cst_33 = arith.constant 5.000000e-01 : f32
    %69 = vector.broadcast %cst_33 : f32 to vector<8x32xf32>
    %70 = arith.mulf %69, %68 : vector<8x32xf32>
    %cst_34 = arith.constant 5.000000e-01 : f32
    %71 = vector.broadcast %cst_34 : f32 to vector<8x32xf32>
    %72 = arith.addf %70, %71 : vector<8x32xf32>
    %73 = arith.mulf %66, %23 : vector<8x32xf32>
    %74 = arith.mulf %61, %67 : vector<8x32xf32>
    %75 = arith.addf %73, %74 : vector<8x32xf32>
    %76 = math.tanh %75 : vector<8x32xf32>
    %77 = arith.mulf %72, %76 : vector<8x32xf32>
    %c8 = arith.constant 8 : index
    %c0_35 = arith.constant 0 : index
    %78 = vector.load %arg4[%c8, %c0_35] : memref<64x128xf32, #tpu.memory_space<vmem>>, vector<8x128xf32>
    %c128_36 = arith.constant 128 : index
    %c0_37 = arith.constant 0 : index
    %79 = vector.load %arg2[%c128_36, %c0_37] : memref<520x128xf32, #tpu.memory_space<vmem>>, vector<32x128xf32>
    %cst_38 = arith.constant dense<0.000000e+00> : vector<8x128xf32>
    %80 = tpu.matmul %49, %79, %cst_38 {dimension_numbers = #tpu.dot_dimension_numbers<[1], [0], [0], [1], [0, 0, 1, 1], [], []>} : vector<8x32xf32>, vector<32x128xf32>, vector<8x128xf32> -> vector<8x128xf32>
    %81 = arith.addf %78, %80 : vector<8x128xf32>
    %82 = math.tanh %81 : vector<8x128xf32>
    %83 = vector.extract_strided_slice %82 {offsets = [0, 0], sizes = [8, 32], strides = [1, 1]} : vector<8x128xf32> to vector<8x32xf32>
    %cst_39 = arith.constant 5.000000e-01 : f32
    %84 = vector.broadcast %cst_39 : f32 to vector<8x32xf32>
    %85 = arith.mulf %84, %83 : vector<8x32xf32>
    %cst_40 = arith.constant 5.000000e-01 : f32
    %86 = vector.broadcast %cst_40 : f32 to vector<8x32xf32>
    %87 = arith.addf %85, %86 : vector<8x32xf32>
    %88 = vector.extract_strided_slice %82 {offsets = [0, 32], sizes = [8, 32], strides = [1, 1]} : vector<8x128xf32> to vector<8x32xf32>
    %cst_41 = arith.constant 5.000000e-01 : f32
    %89 = vector.broadcast %cst_41 : f32 to vector<8x32xf32>
    %90 = arith.mulf %89, %88 : vector<8x32xf32>
    %cst_42 = arith.constant 5.000000e-01 : f32
    %91 = vector.broadcast %cst_42 : f32 to vector<8x32xf32>
    %92 = arith.addf %90, %91 : vector<8x32xf32>
    %93 = vector.extract_strided_slice %82 {offsets = [0, 64], sizes = [8, 32], strides = [1, 1]} : vector<8x128xf32> to vector<8x32xf32>
    %94 = vector.extract_strided_slice %82 {offsets = [0, 96], sizes = [8, 32], strides = [1, 1]} : vector<8x128xf32> to vector<8x32xf32>
    %cst_43 = arith.constant 5.000000e-01 : f32
    %95 = vector.broadcast %cst_43 : f32 to vector<8x32xf32>
    %96 = arith.mulf %95, %94 : vector<8x32xf32>
    %cst_44 = arith.constant 5.000000e-01 : f32
    %97 = vector.broadcast %cst_44 : f32 to vector<8x32xf32>
    %98 = arith.addf %96, %97 : vector<8x32xf32>
    %99 = arith.mulf %92, %47 : vector<8x32xf32>
    %100 = arith.mulf %87, %93 : vector<8x32xf32>
    %101 = arith.addf %99, %100 : vector<8x32xf32>
    %102 = math.tanh %101 : vector<8x32xf32>
    %103 = arith.mulf %98, %102 : vector<8x32xf32>
    %c168_45 = arith.constant 168 : index
    %c0_46 = arith.constant 0 : index
    %104 = vector.load %arg2[%c168_45, %c0_46] : memref<520x128xf32, #tpu.memory_space<vmem>>, vector<32x128xf32>
    %cst_47 = arith.constant dense<0.000000e+00> : vector<8x128xf32>
    %105 = tpu.matmul %103, %104, %cst_47 {dimension_numbers = #tpu.dot_dimension_numbers<[1], [0], [0], [1], [0, 0, 1, 1], [], []>} : vector<8x32xf32>, vector<32x128xf32>, vector<8x128xf32> -> vector<8x128xf32>
    %c200_48 = arith.constant 200 : index
    %c0_49 = arith.constant 0 : index
    %106 = vector.load %arg2[%c200_48, %c0_49] : memref<520x128xf32, #tpu.memory_space<vmem>>, vector<32x128xf32>
    %cst_50 = arith.constant dense<0.000000e+00> : vector<8x128xf32>
    %107 = tpu.matmul %77, %106, %cst_50 {dimension_numbers = #tpu.dot_dimension_numbers<[1], [0], [0], [1], [0, 0, 1, 1], [], []>} : vector<8x32xf32>, vector<32x128xf32>, vector<8x128xf32> -> vector<8x128xf32>
    %108 = arith.addf %105, %107 : vector<8x128xf32>
    %109 = arith.addf %108, %2 : vector<8x128xf32>
    %110 = math.tanh %109 : vector<8x128xf32>
    %111 = vector.extract_strided_slice %110 {offsets = [0, 0], sizes = [8, 32], strides = [1, 1]} : vector<8x128xf32> to vector<8x32xf32>
    %cst_51 = arith.constant 5.000000e-01 : f32
    %112 = vector.broadcast %cst_51 : f32 to vector<8x32xf32>
    %113 = arith.mulf %112, %111 : vector<8x32xf32>
    %cst_52 = arith.constant 5.000000e-01 : f32
    %114 = vector.broadcast %cst_52 : f32 to vector<8x32xf32>
    %115 = arith.addf %113, %114 : vector<8x32xf32>
    %116 = vector.extract_strided_slice %110 {offsets = [0, 32], sizes = [8, 32], strides = [1, 1]} : vector<8x128xf32> to vector<8x32xf32>
    %cst_53 = arith.constant 5.000000e-01 : f32
    %117 = vector.broadcast %cst_53 : f32 to vector<8x32xf32>
    %118 = arith.mulf %117, %116 : vector<8x32xf32>
    %cst_54 = arith.constant 5.000000e-01 : f32
    %119 = vector.broadcast %cst_54 : f32 to vector<8x32xf32>
    %120 = arith.addf %118, %119 : vector<8x32xf32>
    %121 = vector.extract_strided_slice %110 {offsets = [0, 64], sizes = [8, 32], strides = [1, 1]} : vector<8x128xf32> to vector<8x32xf32>
    %122 = vector.extract_strided_slice %110 {offsets = [0, 96], sizes = [8, 32], strides = [1, 1]} : vector<8x128xf32> to vector<8x32xf32>
    %cst_55 = arith.constant 5.000000e-01 : f32
    %123 = vector.broadcast %cst_55 : f32 to vector<8x32xf32>
    %124 = arith.mulf %123, %122 : vector<8x32xf32>
    %cst_56 = arith.constant 5.000000e-01 : f32
    %125 = vector.broadcast %cst_56 : f32 to vector<8x32xf32>
    %126 = arith.addf %124, %125 : vector<8x32xf32>
    %127 = arith.mulf %120, %75 : vector<8x32xf32>
    %128 = arith.mulf %115, %121 : vector<8x32xf32>
    %129 = arith.addf %127, %128 : vector<8x32xf32>
    %130 = math.tanh %129 : vector<8x32xf32>
    %131 = arith.mulf %126, %130 : vector<8x32xf32>
    %c16 = arith.constant 16 : index
    %c0_57 = arith.constant 0 : index
    %132 = vector.load %arg4[%c16, %c0_57] : memref<64x128xf32, #tpu.memory_space<vmem>>, vector<8x128xf32>
    %c128_58 = arith.constant 128 : index
    %c0_59 = arith.constant 0 : index
    %133 = vector.load %arg2[%c128_58, %c0_59] : memref<520x128xf32, #tpu.memory_space<vmem>>, vector<32x128xf32>
    %cst_60 = arith.constant dense<0.000000e+00> : vector<8x128xf32>
    %134 = tpu.matmul %103, %133, %cst_60 {dimension_numbers = #tpu.dot_dimension_numbers<[1], [0], [0], [1], [0, 0, 1, 1], [], []>} : vector<8x32xf32>, vector<32x128xf32>, vector<8x128xf32> -> vector<8x128xf32>
    %135 = arith.addf %132, %134 : vector<8x128xf32>
    %136 = math.tanh %135 : vector<8x128xf32>
    %137 = vector.extract_strided_slice %136 {offsets = [0, 0], sizes = [8, 32], strides = [1, 1]} : vector<8x128xf32> to vector<8x32xf32>
    %cst_61 = arith.constant 5.000000e-01 : f32
    %138 = vector.broadcast %cst_61 : f32 to vector<8x32xf32>
    %139 = arith.mulf %138, %137 : vector<8x32xf32>
    %cst_62 = arith.constant 5.000000e-01 : f32
    %140 = vector.broadcast %cst_62 : f32 to vector<8x32xf32>
    %141 = arith.addf %139, %140 : vector<8x32xf32>
    %142 = vector.extract_strided_slice %136 {offsets = [0, 32], sizes = [8, 32], strides = [1, 1]} : vector<8x128xf32> to vector<8x32xf32>
    %cst_63 = arith.constant 5.000000e-01 : f32
    %143 = vector.broadcast %cst_63 : f32 to vector<8x32xf32>
    %144 = arith.mulf %143, %142 : vector<8x32xf32>
    %cst_64 = arith.constant 5.000000e-01 : f32
    %145 = vector.broadcast %cst_64 : f32 to vector<8x32xf32>
    %146 = arith.addf %144, %145 : vector<8x32xf32>
    %147 = vector.extract_strided_slice %136 {offsets = [0, 64], sizes = [8, 32], strides = [1, 1]} : vector<8x128xf32> to vector<8x32xf32>
    %148 = vector.extract_strided_slice %136 {offsets = [0, 96], sizes = [8, 32], strides = [1, 1]} : vector<8x128xf32> to vector<8x32xf32>
    %cst_65 = arith.constant 5.000000e-01 : f32
    %149 = vector.broadcast %cst_65 : f32 to vector<8x32xf32>
    %150 = arith.mulf %149, %148 : vector<8x32xf32>
    %cst_66 = arith.constant 5.000000e-01 : f32
    %151 = vector.broadcast %cst_66 : f32 to vector<8x32xf32>
    %152 = arith.addf %150, %151 : vector<8x32xf32>
    %153 = arith.mulf %146, %101 : vector<8x32xf32>
    %154 = arith.mulf %141, %147 : vector<8x32xf32>
    %155 = arith.addf %153, %154 : vector<8x32xf32>
    %156 = math.tanh %155 : vector<8x32xf32>
    %157 = arith.mulf %152, %156 : vector<8x32xf32>
    %c168_67 = arith.constant 168 : index
    %c0_68 = arith.constant 0 : index
    %158 = vector.load %arg2[%c168_67, %c0_68] : memref<520x128xf32, #tpu.memory_space<vmem>>, vector<32x128xf32>
    %cst_69 = arith.constant dense<0.000000e+00> : vector<8x128xf32>
    %159 = tpu.matmul %157, %158, %cst_69 {dimension_numbers = #tpu.dot_dimension_numbers<[1], [0], [0], [1], [0, 0, 1, 1], [], []>} : vector<8x32xf32>, vector<32x128xf32>, vector<8x128xf32> -> vector<8x128xf32>
    %c200_70 = arith.constant 200 : index
    %c0_71 = arith.constant 0 : index
    %160 = vector.load %arg2[%c200_70, %c0_71] : memref<520x128xf32, #tpu.memory_space<vmem>>, vector<32x128xf32>
    %cst_72 = arith.constant dense<0.000000e+00> : vector<8x128xf32>
    %161 = tpu.matmul %131, %160, %cst_72 {dimension_numbers = #tpu.dot_dimension_numbers<[1], [0], [0], [1], [0, 0, 1, 1], [], []>} : vector<8x32xf32>, vector<32x128xf32>, vector<8x128xf32> -> vector<8x128xf32>
    %162 = arith.addf %159, %161 : vector<8x128xf32>
    %163 = arith.addf %162, %2 : vector<8x128xf32>
    %164 = math.tanh %163 : vector<8x128xf32>
    %165 = vector.extract_strided_slice %164 {offsets = [0, 0], sizes = [8, 32], strides = [1, 1]} : vector<8x128xf32> to vector<8x32xf32>
    %cst_73 = arith.constant 5.000000e-01 : f32
    %166 = vector.broadcast %cst_73 : f32 to vector<8x32xf32>
    %167 = arith.mulf %166, %165 : vector<8x32xf32>
    %cst_74 = arith.constant 5.000000e-01 : f32
    %168 = vector.broadcast %cst_74 : f32 to vector<8x32xf32>
    %169 = arith.addf %167, %168 : vector<8x32xf32>
    %170 = vector.extract_strided_slice %164 {offsets = [0, 32], sizes = [8, 32], strides = [1, 1]} : vector<8x128xf32> to vector<8x32xf32>
    %cst_75 = arith.constant 5.000000e-01 : f32
    %171 = vector.broadcast %cst_75 : f32 to vector<8x32xf32>
    %172 = arith.mulf %171, %170 : vector<8x32xf32>
    %cst_76 = arith.constant 5.000000e-01 : f32
    %173 = vector.broadcast %cst_76 : f32 to vector<8x32xf32>
    %174 = arith.addf %172, %173 : vector<8x32xf32>
    %175 = vector.extract_strided_slice %164 {offsets = [0, 64], sizes = [8, 32], strides = [1, 1]} : vector<8x128xf32> to vector<8x32xf32>
    %176 = vector.extract_strided_slice %164 {offsets = [0, 96], sizes = [8, 32], strides = [1, 1]} : vector<8x128xf32> to vector<8x32xf32>
    %cst_77 = arith.constant 5.000000e-01 : f32
    %177 = vector.broadcast %cst_77 : f32 to vector<8x32xf32>
    %178 = arith.mulf %177, %176 : vector<8x32xf32>
    %cst_78 = arith.constant 5.000000e-01 : f32
    %179 = vector.broadcast %cst_78 : f32 to vector<8x32xf32>
    %180 = arith.addf %178, %179 : vector<8x32xf32>
    %181 = arith.mulf %174, %129 : vector<8x32xf32>
    %182 = arith.mulf %169, %175 : vector<8x32xf32>
    %183 = arith.addf %181, %182 : vector<8x32xf32>
    %184 = math.tanh %183 : vector<8x32xf32>
    %185 = arith.mulf %180, %184 : vector<8x32xf32>
    %c24 = arith.constant 24 : index
    %c0_79 = arith.constant 0 : index
    %186 = vector.load %arg4[%c24, %c0_79] : memref<64x128xf32, #tpu.memory_space<vmem>>, vector<8x128xf32>
    %c128_80 = arith.constant 128 : index
    %c0_81 = arith.constant 0 : index
    %187 = vector.load %arg2[%c128_80, %c0_81] : memref<520x128xf32, #tpu.memory_space<vmem>>, vector<32x128xf32>
    %cst_82 = arith.constant dense<0.000000e+00> : vector<8x128xf32>
    %188 = tpu.matmul %157, %187, %cst_82 {dimension_numbers = #tpu.dot_dimension_numbers<[1], [0], [0], [1], [0, 0, 1, 1], [], []>} : vector<8x32xf32>, vector<32x128xf32>, vector<8x128xf32> -> vector<8x128xf32>
    %189 = arith.addf %186, %188 : vector<8x128xf32>
    %190 = math.tanh %189 : vector<8x128xf32>
    %191 = vector.extract_strided_slice %190 {offsets = [0, 0], sizes = [8, 32], strides = [1, 1]} : vector<8x128xf32> to vector<8x32xf32>
    %cst_83 = arith.constant 5.000000e-01 : f32
    %192 = vector.broadcast %cst_83 : f32 to vector<8x32xf32>
    %193 = arith.mulf %192, %191 : vector<8x32xf32>
    %cst_84 = arith.constant 5.000000e-01 : f32
    %194 = vector.broadcast %cst_84 : f32 to vector<8x32xf32>
    %195 = arith.addf %193, %194 : vector<8x32xf32>
    %196 = vector.extract_strided_slice %190 {offsets = [0, 32], sizes = [8, 32], strides = [1, 1]} : vector<8x128xf32> to vector<8x32xf32>
    %cst_85 = arith.constant 5.000000e-01 : f32
    %197 = vector.broadcast %cst_85 : f32 to vector<8x32xf32>
    %198 = arith.mulf %197, %196 : vector<8x32xf32>
    %cst_86 = arith.constant 5.000000e-01 : f32
    %199 = vector.broadcast %cst_86 : f32 to vector<8x32xf32>
    %200 = arith.addf %198, %199 : vector<8x32xf32>
    %201 = vector.extract_strided_slice %190 {offsets = [0, 64], sizes = [8, 32], strides = [1, 1]} : vector<8x128xf32> to vector<8x32xf32>
    %202 = vector.extract_strided_slice %190 {offsets = [0, 96], sizes = [8, 32], strides = [1, 1]} : vector<8x128xf32> to vector<8x32xf32>
    %cst_87 = arith.constant 5.000000e-01 : f32
    %203 = vector.broadcast %cst_87 : f32 to vector<8x32xf32>
    %204 = arith.mulf %203, %202 : vector<8x32xf32>
    %cst_88 = arith.constant 5.000000e-01 : f32
    %205 = vector.broadcast %cst_88 : f32 to vector<8x32xf32>
    %206 = arith.addf %204, %205 : vector<8x32xf32>
    %207 = arith.mulf %200, %155 : vector<8x32xf32>
    %208 = arith.mulf %195, %201 : vector<8x32xf32>
    %209 = arith.addf %207, %208 : vector<8x32xf32>
    %210 = math.tanh %209 : vector<8x32xf32>
    %211 = arith.mulf %206, %210 : vector<8x32xf32>
    %c168_89 = arith.constant 168 : index
    %c0_90 = arith.constant 0 : index
    %212 = vector.load %arg2[%c168_89, %c0_90] : memref<520x128xf32, #tpu.memory_space<vmem>>, vector<32x128xf32>
    %cst_91 = arith.constant dense<0.000000e+00> : vector<8x128xf32>
    %213 = tpu.matmul %211, %212, %cst_91 {dimension_numbers = #tpu.dot_dimension_numbers<[1], [0], [0], [1], [0, 0, 1, 1], [], []>} : vector<8x32xf32>, vector<32x128xf32>, vector<8x128xf32> -> vector<8x128xf32>
    %c200_92 = arith.constant 200 : index
    %c0_93 = arith.constant 0 : index
    %214 = vector.load %arg2[%c200_92, %c0_93] : memref<520x128xf32, #tpu.memory_space<vmem>>, vector<32x128xf32>
    %cst_94 = arith.constant dense<0.000000e+00> : vector<8x128xf32>
    %215 = tpu.matmul %185, %214, %cst_94 {dimension_numbers = #tpu.dot_dimension_numbers<[1], [0], [0], [1], [0, 0, 1, 1], [], []>} : vector<8x32xf32>, vector<32x128xf32>, vector<8x128xf32> -> vector<8x128xf32>
    %216 = arith.addf %213, %215 : vector<8x128xf32>
    %217 = arith.addf %216, %2 : vector<8x128xf32>
    %218 = math.tanh %217 : vector<8x128xf32>
    %219 = vector.extract_strided_slice %218 {offsets = [0, 0], sizes = [8, 32], strides = [1, 1]} : vector<8x128xf32> to vector<8x32xf32>
    %cst_95 = arith.constant 5.000000e-01 : f32
    %220 = vector.broadcast %cst_95 : f32 to vector<8x32xf32>
    %221 = arith.mulf %220, %219 : vector<8x32xf32>
    %cst_96 = arith.constant 5.000000e-01 : f32
    %222 = vector.broadcast %cst_96 : f32 to vector<8x32xf32>
    %223 = arith.addf %221, %222 : vector<8x32xf32>
    %224 = vector.extract_strided_slice %218 {offsets = [0, 32], sizes = [8, 32], strides = [1, 1]} : vector<8x128xf32> to vector<8x32xf32>
    %cst_97 = arith.constant 5.000000e-01 : f32
    %225 = vector.broadcast %cst_97 : f32 to vector<8x32xf32>
    %226 = arith.mulf %225, %224 : vector<8x32xf32>
    %cst_98 = arith.constant 5.000000e-01 : f32
    %227 = vector.broadcast %cst_98 : f32 to vector<8x32xf32>
    %228 = arith.addf %226, %227 : vector<8x32xf32>
    %229 = vector.extract_strided_slice %218 {offsets = [0, 64], sizes = [8, 32], strides = [1, 1]} : vector<8x128xf32> to vector<8x32xf32>
    %230 = vector.extract_strided_slice %218 {offsets = [0, 96], sizes = [8, 32], strides = [1, 1]} : vector<8x128xf32> to vector<8x32xf32>
    %cst_99 = arith.constant 5.000000e-01 : f32
    %231 = vector.broadcast %cst_99 : f32 to vector<8x32xf32>
    %232 = arith.mulf %231, %230 : vector<8x32xf32>
    %cst_100 = arith.constant 5.000000e-01 : f32
    %233 = vector.broadcast %cst_100 : f32 to vector<8x32xf32>
    %234 = arith.addf %232, %233 : vector<8x32xf32>
    %235 = arith.mulf %228, %183 : vector<8x32xf32>
    %236 = arith.mulf %223, %229 : vector<8x32xf32>
    %237 = arith.addf %235, %236 : vector<8x32xf32>
    %238 = math.tanh %237 : vector<8x32xf32>
    %239 = arith.mulf %234, %238 : vector<8x32xf32>
    %c32 = arith.constant 32 : index
    %c0_101 = arith.constant 0 : index
    %240 = vector.load %arg4[%c32, %c0_101] : memref<64x128xf32, #tpu.memory_space<vmem>>, vector<8x128xf32>
    %c128_102 = arith.constant 128 : index
    %c0_103 = arith.constant 0 : index
    %241 = vector.load %arg2[%c128_102, %c0_103] : memref<520x128xf32, #tpu.memory_space<vmem>>, vector<32x128xf32>
    %cst_104 = arith.constant dense<0.000000e+00> : vector<8x128xf32>
    %242 = tpu.matmul %211, %241, %cst_104 {dimension_numbers = #tpu.dot_dimension_numbers<[1], [0], [0], [1], [0, 0, 1, 1], [], []>} : vector<8x32xf32>, vector<32x128xf32>, vector<8x128xf32> -> vector<8x128xf32>
    %243 = arith.addf %240, %242 : vector<8x128xf32>
    %244 = math.tanh %243 : vector<8x128xf32>
    %245 = vector.extract_strided_slice %244 {offsets = [0, 0], sizes = [8, 32], strides = [1, 1]} : vector<8x128xf32> to vector<8x32xf32>
    %cst_105 = arith.constant 5.000000e-01 : f32
    %246 = vector.broadcast %cst_105 : f32 to vector<8x32xf32>
    %247 = arith.mulf %246, %245 : vector<8x32xf32>
    %cst_106 = arith.constant 5.000000e-01 : f32
    %248 = vector.broadcast %cst_106 : f32 to vector<8x32xf32>
    %249 = arith.addf %247, %248 : vector<8x32xf32>
    %250 = vector.extract_strided_slice %244 {offsets = [0, 32], sizes = [8, 32], strides = [1, 1]} : vector<8x128xf32> to vector<8x32xf32>
    %cst_107 = arith.constant 5.000000e-01 : f32
    %251 = vector.broadcast %cst_107 : f32 to vector<8x32xf32>
    %252 = arith.mulf %251, %250 : vector<8x32xf32>
    %cst_108 = arith.constant 5.000000e-01 : f32
    %253 = vector.broadcast %cst_108 : f32 to vector<8x32xf32>
    %254 = arith.addf %252, %253 : vector<8x32xf32>
    %255 = vector.extract_strided_slice %244 {offsets = [0, 64], sizes = [8, 32], strides = [1, 1]} : vector<8x128xf32> to vector<8x32xf32>
    %256 = vector.extract_strided_slice %244 {offsets = [0, 96], sizes = [8, 32], strides = [1, 1]} : vector<8x128xf32> to vector<8x32xf32>
    %cst_109 = arith.constant 5.000000e-01 : f32
    %257 = vector.broadcast %cst_109 : f32 to vector<8x32xf32>
    %258 = arith.mulf %257, %256 : vector<8x32xf32>
    %cst_110 = arith.constant 5.000000e-01 : f32
    %259 = vector.broadcast %cst_110 : f32 to vector<8x32xf32>
    %260 = arith.addf %258, %259 : vector<8x32xf32>
    %261 = arith.mulf %254, %209 : vector<8x32xf32>
    %262 = arith.mulf %249, %255 : vector<8x32xf32>
    %263 = arith.addf %261, %262 : vector<8x32xf32>
    %264 = math.tanh %263 : vector<8x32xf32>
    %265 = arith.mulf %260, %264 : vector<8x32xf32>
    %c168_111 = arith.constant 168 : index
    %c0_112 = arith.constant 0 : index
    %266 = vector.load %arg2[%c168_111, %c0_112] : memref<520x128xf32, #tpu.memory_space<vmem>>, vector<32x128xf32>
    %cst_113 = arith.constant dense<0.000000e+00> : vector<8x128xf32>
    %267 = tpu.matmul %265, %266, %cst_113 {dimension_numbers = #tpu.dot_dimension_numbers<[1], [0], [0], [1], [0, 0, 1, 1], [], []>} : vector<8x32xf32>, vector<32x128xf32>, vector<8x128xf32> -> vector<8x128xf32>
    %c200_114 = arith.constant 200 : index
    %c0_115 = arith.constant 0 : index
    %268 = vector.load %arg2[%c200_114, %c0_115] : memref<520x128xf32, #tpu.memory_space<vmem>>, vector<32x128xf32>
    %cst_116 = arith.constant dense<0.000000e+00> : vector<8x128xf32>
    %269 = tpu.matmul %239, %268, %cst_116 {dimension_numbers = #tpu.dot_dimension_numbers<[1], [0], [0], [1], [0, 0, 1, 1], [], []>} : vector<8x32xf32>, vector<32x128xf32>, vector<8x128xf32> -> vector<8x128xf32>
    %270 = arith.addf %267, %269 : vector<8x128xf32>
    %271 = arith.addf %270, %2 : vector<8x128xf32>
    %272 = math.tanh %271 : vector<8x128xf32>
    %273 = vector.extract_strided_slice %272 {offsets = [0, 0], sizes = [8, 32], strides = [1, 1]} : vector<8x128xf32> to vector<8x32xf32>
    %cst_117 = arith.constant 5.000000e-01 : f32
    %274 = vector.broadcast %cst_117 : f32 to vector<8x32xf32>
    %275 = arith.mulf %274, %273 : vector<8x32xf32>
    %cst_118 = arith.constant 5.000000e-01 : f32
    %276 = vector.broadcast %cst_118 : f32 to vector<8x32xf32>
    %277 = arith.addf %275, %276 : vector<8x32xf32>
    %278 = vector.extract_strided_slice %272 {offsets = [0, 32], sizes = [8, 32], strides = [1, 1]} : vector<8x128xf32> to vector<8x32xf32>
    %cst_119 = arith.constant 5.000000e-01 : f32
    %279 = vector.broadcast %cst_119 : f32 to vector<8x32xf32>
    %280 = arith.mulf %279, %278 : vector<8x32xf32>
    %cst_120 = arith.constant 5.000000e-01 : f32
    %281 = vector.broadcast %cst_120 : f32 to vector<8x32xf32>
    %282 = arith.addf %280, %281 : vector<8x32xf32>
    %283 = vector.extract_strided_slice %272 {offsets = [0, 64], sizes = [8, 32], strides = [1, 1]} : vector<8x128xf32> to vector<8x32xf32>
    %284 = vector.extract_strided_slice %272 {offsets = [0, 96], sizes = [8, 32], strides = [1, 1]} : vector<8x128xf32> to vector<8x32xf32>
    %cst_121 = arith.constant 5.000000e-01 : f32
    %285 = vector.broadcast %cst_121 : f32 to vector<8x32xf32>
    %286 = arith.mulf %285, %284 : vector<8x32xf32>
    %cst_122 = arith.constant 5.000000e-01 : f32
    %287 = vector.broadcast %cst_122 : f32 to vector<8x32xf32>
    %288 = arith.addf %286, %287 : vector<8x32xf32>
    %289 = arith.mulf %282, %237 : vector<8x32xf32>
    %290 = arith.mulf %277, %283 : vector<8x32xf32>
    %291 = arith.addf %289, %290 : vector<8x32xf32>
    %292 = math.tanh %291 : vector<8x32xf32>
    %293 = arith.mulf %288, %292 : vector<8x32xf32>
    %c40 = arith.constant 40 : index
    %c0_123 = arith.constant 0 : index
    %294 = vector.load %arg4[%c40, %c0_123] : memref<64x128xf32, #tpu.memory_space<vmem>>, vector<8x128xf32>
    %c128_124 = arith.constant 128 : index
    %c0_125 = arith.constant 0 : index
    %295 = vector.load %arg2[%c128_124, %c0_125] : memref<520x128xf32, #tpu.memory_space<vmem>>, vector<32x128xf32>
    %cst_126 = arith.constant dense<0.000000e+00> : vector<8x128xf32>
    %296 = tpu.matmul %265, %295, %cst_126 {dimension_numbers = #tpu.dot_dimension_numbers<[1], [0], [0], [1], [0, 0, 1, 1], [], []>} : vector<8x32xf32>, vector<32x128xf32>, vector<8x128xf32> -> vector<8x128xf32>
    %297 = arith.addf %294, %296 : vector<8x128xf32>
    %298 = math.tanh %297 : vector<8x128xf32>
    %299 = vector.extract_strided_slice %298 {offsets = [0, 0], sizes = [8, 32], strides = [1, 1]} : vector<8x128xf32> to vector<8x32xf32>
    %cst_127 = arith.constant 5.000000e-01 : f32
    %300 = vector.broadcast %cst_127 : f32 to vector<8x32xf32>
    %301 = arith.mulf %300, %299 : vector<8x32xf32>
    %cst_128 = arith.constant 5.000000e-01 : f32
    %302 = vector.broadcast %cst_128 : f32 to vector<8x32xf32>
    %303 = arith.addf %301, %302 : vector<8x32xf32>
    %304 = vector.extract_strided_slice %298 {offsets = [0, 32], sizes = [8, 32], strides = [1, 1]} : vector<8x128xf32> to vector<8x32xf32>
    %cst_129 = arith.constant 5.000000e-01 : f32
    %305 = vector.broadcast %cst_129 : f32 to vector<8x32xf32>
    %306 = arith.mulf %305, %304 : vector<8x32xf32>
    %cst_130 = arith.constant 5.000000e-01 : f32
    %307 = vector.broadcast %cst_130 : f32 to vector<8x32xf32>
    %308 = arith.addf %306, %307 : vector<8x32xf32>
    %309 = vector.extract_strided_slice %298 {offsets = [0, 64], sizes = [8, 32], strides = [1, 1]} : vector<8x128xf32> to vector<8x32xf32>
    %310 = vector.extract_strided_slice %298 {offsets = [0, 96], sizes = [8, 32], strides = [1, 1]} : vector<8x128xf32> to vector<8x32xf32>
    %cst_131 = arith.constant 5.000000e-01 : f32
    %311 = vector.broadcast %cst_131 : f32 to vector<8x32xf32>
    %312 = arith.mulf %311, %310 : vector<8x32xf32>
    %cst_132 = arith.constant 5.000000e-01 : f32
    %313 = vector.broadcast %cst_132 : f32 to vector<8x32xf32>
    %314 = arith.addf %312, %313 : vector<8x32xf32>
    %315 = arith.mulf %308, %263 : vector<8x32xf32>
    %316 = arith.mulf %303, %309 : vector<8x32xf32>
    %317 = arith.addf %315, %316 : vector<8x32xf32>
    %318 = math.tanh %317 : vector<8x32xf32>
    %319 = arith.mulf %314, %318 : vector<8x32xf32>
    %c168_133 = arith.constant 168 : index
    %c0_134 = arith.constant 0 : index
    %320 = vector.load %arg2[%c168_133, %c0_134] : memref<520x128xf32, #tpu.memory_space<vmem>>, vector<32x128xf32>
    %cst_135 = arith.constant dense<0.000000e+00> : vector<8x128xf32>
    %321 = tpu.matmul %319, %320, %cst_135 {dimension_numbers = #tpu.dot_dimension_numbers<[1], [0], [0], [1], [0, 0, 1, 1], [], []>} : vector<8x32xf32>, vector<32x128xf32>, vector<8x128xf32> -> vector<8x128xf32>
    %c200_136 = arith.constant 200 : index
    %c0_137 = arith.constant 0 : index
    %322 = vector.load %arg2[%c200_136, %c0_137] : memref<520x128xf32, #tpu.memory_space<vmem>>, vector<32x128xf32>
    %cst_138 = arith.constant dense<0.000000e+00> : vector<8x128xf32>
    %323 = tpu.matmul %293, %322, %cst_138 {dimension_numbers = #tpu.dot_dimension_numbers<[1], [0], [0], [1], [0, 0, 1, 1], [], []>} : vector<8x32xf32>, vector<32x128xf32>, vector<8x128xf32> -> vector<8x128xf32>
    %324 = arith.addf %321, %323 : vector<8x128xf32>
    %325 = arith.addf %324, %2 : vector<8x128xf32>
    %326 = math.tanh %325 : vector<8x128xf32>
    %327 = vector.extract_strided_slice %326 {offsets = [0, 0], sizes = [8, 32], strides = [1, 1]} : vector<8x128xf32> to vector<8x32xf32>
    %cst_139 = arith.constant 5.000000e-01 : f32
    %328 = vector.broadcast %cst_139 : f32 to vector<8x32xf32>
    %329 = arith.mulf %328, %327 : vector<8x32xf32>
    %cst_140 = arith.constant 5.000000e-01 : f32
    %330 = vector.broadcast %cst_140 : f32 to vector<8x32xf32>
    %331 = arith.addf %329, %330 : vector<8x32xf32>
    %332 = vector.extract_strided_slice %326 {offsets = [0, 32], sizes = [8, 32], strides = [1, 1]} : vector<8x128xf32> to vector<8x32xf32>
    %cst_141 = arith.constant 5.000000e-01 : f32
    %333 = vector.broadcast %cst_141 : f32 to vector<8x32xf32>
    %334 = arith.mulf %333, %332 : vector<8x32xf32>
    %cst_142 = arith.constant 5.000000e-01 : f32
    %335 = vector.broadcast %cst_142 : f32 to vector<8x32xf32>
    %336 = arith.addf %334, %335 : vector<8x32xf32>
    %337 = vector.extract_strided_slice %326 {offsets = [0, 64], sizes = [8, 32], strides = [1, 1]} : vector<8x128xf32> to vector<8x32xf32>
    %338 = vector.extract_strided_slice %326 {offsets = [0, 96], sizes = [8, 32], strides = [1, 1]} : vector<8x128xf32> to vector<8x32xf32>
    %cst_143 = arith.constant 5.000000e-01 : f32
    %339 = vector.broadcast %cst_143 : f32 to vector<8x32xf32>
    %340 = arith.mulf %339, %338 : vector<8x32xf32>
    %cst_144 = arith.constant 5.000000e-01 : f32
    %341 = vector.broadcast %cst_144 : f32 to vector<8x32xf32>
    %342 = arith.addf %340, %341 : vector<8x32xf32>
    %343 = arith.mulf %336, %291 : vector<8x32xf32>
    %344 = arith.mulf %331, %337 : vector<8x32xf32>
    %345 = arith.addf %343, %344 : vector<8x32xf32>
    %346 = math.tanh %345 : vector<8x32xf32>
    %347 = arith.mulf %342, %346 : vector<8x32xf32>
    %c48 = arith.constant 48 : index
    %c0_145 = arith.constant 0 : index
    %348 = vector.load %arg4[%c48, %c0_145] : memref<64x128xf32, #tpu.memory_space<vmem>>, vector<8x128xf32>
    %c128_146 = arith.constant 128 : index
    %c0_147 = arith.constant 0 : index
    %349 = vector.load %arg2[%c128_146, %c0_147] : memref<520x128xf32, #tpu.memory_space<vmem>>, vector<32x128xf32>
    %cst_148 = arith.constant dense<0.000000e+00> : vector<8x128xf32>
    %350 = tpu.matmul %319, %349, %cst_148 {dimension_numbers = #tpu.dot_dimension_numbers<[1], [0], [0], [1], [0, 0, 1, 1], [], []>} : vector<8x32xf32>, vector<32x128xf32>, vector<8x128xf32> -> vector<8x128xf32>
    %351 = arith.addf %348, %350 : vector<8x128xf32>
    %352 = math.tanh %351 : vector<8x128xf32>
    %353 = vector.extract_strided_slice %352 {offsets = [0, 0], sizes = [8, 32], strides = [1, 1]} : vector<8x128xf32> to vector<8x32xf32>
    %cst_149 = arith.constant 5.000000e-01 : f32
    %354 = vector.broadcast %cst_149 : f32 to vector<8x32xf32>
    %355 = arith.mulf %354, %353 : vector<8x32xf32>
    %cst_150 = arith.constant 5.000000e-01 : f32
    %356 = vector.broadcast %cst_150 : f32 to vector<8x32xf32>
    %357 = arith.addf %355, %356 : vector<8x32xf32>
    %358 = vector.extract_strided_slice %352 {offsets = [0, 32], sizes = [8, 32], strides = [1, 1]} : vector<8x128xf32> to vector<8x32xf32>
    %cst_151 = arith.constant 5.000000e-01 : f32
    %359 = vector.broadcast %cst_151 : f32 to vector<8x32xf32>
    %360 = arith.mulf %359, %358 : vector<8x32xf32>
    %cst_152 = arith.constant 5.000000e-01 : f32
    %361 = vector.broadcast %cst_152 : f32 to vector<8x32xf32>
    %362 = arith.addf %360, %361 : vector<8x32xf32>
    %363 = vector.extract_strided_slice %352 {offsets = [0, 64], sizes = [8, 32], strides = [1, 1]} : vector<8x128xf32> to vector<8x32xf32>
    %364 = vector.extract_strided_slice %352 {offsets = [0, 96], sizes = [8, 32], strides = [1, 1]} : vector<8x128xf32> to vector<8x32xf32>
    %cst_153 = arith.constant 5.000000e-01 : f32
    %365 = vector.broadcast %cst_153 : f32 to vector<8x32xf32>
    %366 = arith.mulf %365, %364 : vector<8x32xf32>
    %cst_154 = arith.constant 5.000000e-01 : f32
    %367 = vector.broadcast %cst_154 : f32 to vector<8x32xf32>
    %368 = arith.addf %366, %367 : vector<8x32xf32>
    %369 = arith.mulf %362, %317 : vector<8x32xf32>
    %370 = arith.mulf %357, %363 : vector<8x32xf32>
    %371 = arith.addf %369, %370 : vector<8x32xf32>
    %372 = math.tanh %371 : vector<8x32xf32>
    %373 = arith.mulf %368, %372 : vector<8x32xf32>
    %c168_155 = arith.constant 168 : index
    %c0_156 = arith.constant 0 : index
    %374 = vector.load %arg2[%c168_155, %c0_156] : memref<520x128xf32, #tpu.memory_space<vmem>>, vector<32x128xf32>
    %cst_157 = arith.constant dense<0.000000e+00> : vector<8x128xf32>
    %375 = tpu.matmul %373, %374, %cst_157 {dimension_numbers = #tpu.dot_dimension_numbers<[1], [0], [0], [1], [0, 0, 1, 1], [], []>} : vector<8x32xf32>, vector<32x128xf32>, vector<8x128xf32> -> vector<8x128xf32>
    %c200_158 = arith.constant 200 : index
    %c0_159 = arith.constant 0 : index
    %376 = vector.load %arg2[%c200_158, %c0_159] : memref<520x128xf32, #tpu.memory_space<vmem>>, vector<32x128xf32>
    %cst_160 = arith.constant dense<0.000000e+00> : vector<8x128xf32>
    %377 = tpu.matmul %347, %376, %cst_160 {dimension_numbers = #tpu.dot_dimension_numbers<[1], [0], [0], [1], [0, 0, 1, 1], [], []>} : vector<8x32xf32>, vector<32x128xf32>, vector<8x128xf32> -> vector<8x128xf32>
    %378 = arith.addf %375, %377 : vector<8x128xf32>
    %379 = arith.addf %378, %2 : vector<8x128xf32>
    %380 = math.tanh %379 : vector<8x128xf32>
    %381 = vector.extract_strided_slice %380 {offsets = [0, 0], sizes = [8, 32], strides = [1, 1]} : vector<8x128xf32> to vector<8x32xf32>
    %cst_161 = arith.constant 5.000000e-01 : f32
    %382 = vector.broadcast %cst_161 : f32 to vector<8x32xf32>
    %383 = arith.mulf %382, %381 : vector<8x32xf32>
    %cst_162 = arith.constant 5.000000e-01 : f32
    %384 = vector.broadcast %cst_162 : f32 to vector<8x32xf32>
    %385 = arith.addf %383, %384 : vector<8x32xf32>
    %386 = vector.extract_strided_slice %380 {offsets = [0, 32], sizes = [8, 32], strides = [1, 1]} : vector<8x128xf32> to vector<8x32xf32>
    %cst_163 = arith.constant 5.000000e-01 : f32
    %387 = vector.broadcast %cst_163 : f32 to vector<8x32xf32>
    %388 = arith.mulf %387, %386 : vector<8x32xf32>
    %cst_164 = arith.constant 5.000000e-01 : f32
    %389 = vector.broadcast %cst_164 : f32 to vector<8x32xf32>
    %390 = arith.addf %388, %389 : vector<8x32xf32>
    %391 = vector.extract_strided_slice %380 {offsets = [0, 64], sizes = [8, 32], strides = [1, 1]} : vector<8x128xf32> to vector<8x32xf32>
    %392 = vector.extract_strided_slice %380 {offsets = [0, 96], sizes = [8, 32], strides = [1, 1]} : vector<8x128xf32> to vector<8x32xf32>
    %cst_165 = arith.constant 5.000000e-01 : f32
    %393 = vector.broadcast %cst_165 : f32 to vector<8x32xf32>
    %394 = arith.mulf %393, %392 : vector<8x32xf32>
    %cst_166 = arith.constant 5.000000e-01 : f32
    %395 = vector.broadcast %cst_166 : f32 to vector<8x32xf32>
    %396 = arith.addf %394, %395 : vector<8x32xf32>
    %397 = arith.mulf %390, %345 : vector<8x32xf32>
    %398 = arith.mulf %385, %391 : vector<8x32xf32>
    %399 = arith.addf %397, %398 : vector<8x32xf32>
    %400 = math.tanh %399 : vector<8x32xf32>
    %401 = arith.mulf %396, %400 : vector<8x32xf32>
    %c56 = arith.constant 56 : index
    %c0_167 = arith.constant 0 : index
    %402 = vector.load %arg4[%c56, %c0_167] : memref<64x128xf32, #tpu.memory_space<vmem>>, vector<8x128xf32>
    %c128_168 = arith.constant 128 : index
    %c0_169 = arith.constant 0 : index
    %403 = vector.load %arg2[%c128_168, %c0_169] : memref<520x128xf32, #tpu.memory_space<vmem>>, vector<32x128xf32>
    %cst_170 = arith.constant dense<0.000000e+00> : vector<8x128xf32>
    %404 = tpu.matmul %373, %403, %cst_170 {dimension_numbers = #tpu.dot_dimension_numbers<[1], [0], [0], [1], [0, 0, 1, 1], [], []>} : vector<8x32xf32>, vector<32x128xf32>, vector<8x128xf32> -> vector<8x128xf32>
    %405 = arith.addf %402, %404 : vector<8x128xf32>
    %406 = math.tanh %405 : vector<8x128xf32>
    %407 = vector.extract_strided_slice %406 {offsets = [0, 0], sizes = [8, 32], strides = [1, 1]} : vector<8x128xf32> to vector<8x32xf32>
    %cst_171 = arith.constant 5.000000e-01 : f32
    %408 = vector.broadcast %cst_171 : f32 to vector<8x32xf32>
    %409 = arith.mulf %408, %407 : vector<8x32xf32>
    %cst_172 = arith.constant 5.000000e-01 : f32
    %410 = vector.broadcast %cst_172 : f32 to vector<8x32xf32>
    %411 = arith.addf %409, %410 : vector<8x32xf32>
    %412 = vector.extract_strided_slice %406 {offsets = [0, 32], sizes = [8, 32], strides = [1, 1]} : vector<8x128xf32> to vector<8x32xf32>
    %cst_173 = arith.constant 5.000000e-01 : f32
    %413 = vector.broadcast %cst_173 : f32 to vector<8x32xf32>
    %414 = arith.mulf %413, %412 : vector<8x32xf32>
    %cst_174 = arith.constant 5.000000e-01 : f32
    %415 = vector.broadcast %cst_174 : f32 to vector<8x32xf32>
    %416 = arith.addf %414, %415 : vector<8x32xf32>
    %417 = vector.extract_strided_slice %406 {offsets = [0, 64], sizes = [8, 32], strides = [1, 1]} : vector<8x128xf32> to vector<8x32xf32>
    %418 = vector.extract_strided_slice %406 {offsets = [0, 96], sizes = [8, 32], strides = [1, 1]} : vector<8x128xf32> to vector<8x32xf32>
    %cst_175 = arith.constant 5.000000e-01 : f32
    %419 = vector.broadcast %cst_175 : f32 to vector<8x32xf32>
    %420 = arith.mulf %419, %418 : vector<8x32xf32>
    %cst_176 = arith.constant 5.000000e-01 : f32
    %421 = vector.broadcast %cst_176 : f32 to vector<8x32xf32>
    %422 = arith.addf %420, %421 : vector<8x32xf32>
    %423 = arith.mulf %416, %371 : vector<8x32xf32>
    %424 = arith.mulf %411, %417 : vector<8x32xf32>
    %425 = arith.addf %423, %424 : vector<8x32xf32>
    %426 = math.tanh %425 : vector<8x32xf32>
    %427 = arith.mulf %422, %426 : vector<8x32xf32>
    %c168_177 = arith.constant 168 : index
    %c0_178 = arith.constant 0 : index
    %428 = vector.load %arg2[%c168_177, %c0_178] : memref<520x128xf32, #tpu.memory_space<vmem>>, vector<32x128xf32>
    %cst_179 = arith.constant dense<0.000000e+00> : vector<8x128xf32>
    %429 = tpu.matmul %427, %428, %cst_179 {dimension_numbers = #tpu.dot_dimension_numbers<[1], [0], [0], [1], [0, 0, 1, 1], [], []>} : vector<8x32xf32>, vector<32x128xf32>, vector<8x128xf32> -> vector<8x128xf32>
    %c200_180 = arith.constant 200 : index
    %c0_181 = arith.constant 0 : index
    %430 = vector.load %arg2[%c200_180, %c0_181] : memref<520x128xf32, #tpu.memory_space<vmem>>, vector<32x128xf32>
    %cst_182 = arith.constant dense<0.000000e+00> : vector<8x128xf32>
    %431 = tpu.matmul %401, %430, %cst_182 {dimension_numbers = #tpu.dot_dimension_numbers<[1], [0], [0], [1], [0, 0, 1, 1], [], []>} : vector<8x32xf32>, vector<32x128xf32>, vector<8x128xf32> -> vector<8x128xf32>
    %432 = arith.addf %429, %431 : vector<8x128xf32>
    %433 = arith.addf %432, %2 : vector<8x128xf32>
    %434 = math.tanh %433 : vector<8x128xf32>
    %435 = vector.extract_strided_slice %434 {offsets = [0, 0], sizes = [8, 32], strides = [1, 1]} : vector<8x128xf32> to vector<8x32xf32>
    %cst_183 = arith.constant 5.000000e-01 : f32
    %436 = vector.broadcast %cst_183 : f32 to vector<8x32xf32>
    %437 = arith.mulf %436, %435 : vector<8x32xf32>
    %cst_184 = arith.constant 5.000000e-01 : f32
    %438 = vector.broadcast %cst_184 : f32 to vector<8x32xf32>
    %439 = arith.addf %437, %438 : vector<8x32xf32>
    %440 = vector.extract_strided_slice %434 {offsets = [0, 32], sizes = [8, 32], strides = [1, 1]} : vector<8x128xf32> to vector<8x32xf32>
    %cst_185 = arith.constant 5.000000e-01 : f32
    %441 = vector.broadcast %cst_185 : f32 to vector<8x32xf32>
    %442 = arith.mulf %441, %440 : vector<8x32xf32>
    %cst_186 = arith.constant 5.000000e-01 : f32
    %443 = vector.broadcast %cst_186 : f32 to vector<8x32xf32>
    %444 = arith.addf %442, %443 : vector<8x32xf32>
    %445 = vector.extract_strided_slice %434 {offsets = [0, 64], sizes = [8, 32], strides = [1, 1]} : vector<8x128xf32> to vector<8x32xf32>
    %446 = vector.extract_strided_slice %434 {offsets = [0, 96], sizes = [8, 32], strides = [1, 1]} : vector<8x128xf32> to vector<8x32xf32>
    %cst_187 = arith.constant 5.000000e-01 : f32
    %447 = vector.broadcast %cst_187 : f32 to vector<8x32xf32>
    %448 = arith.mulf %447, %446 : vector<8x32xf32>
    %cst_188 = arith.constant 5.000000e-01 : f32
    %449 = vector.broadcast %cst_188 : f32 to vector<8x32xf32>
    %450 = arith.addf %448, %449 : vector<8x32xf32>
    %451 = arith.mulf %444, %399 : vector<8x32xf32>
    %452 = arith.mulf %439, %445 : vector<8x32xf32>
    %453 = arith.addf %451, %452 : vector<8x32xf32>
    %454 = math.tanh %453 : vector<8x32xf32>
    %455 = arith.mulf %450, %454 : vector<8x32xf32>
    %c0_189 = arith.constant 0 : index
    %c56_190 = arith.constant 56 : index
    %c0_191 = arith.constant 0 : index
    %456 = vector.load %arg1[%c0_189, %c56_190, %c0_191] : memref<1x64x128xf32, #tpu.memory_space<vmem>>, vector<1x8x128xf32>
    %457 = vector.shape_cast %456 : vector<1x8x128xf32> to vector<8x128xf32>
    %c240 = arith.constant 240 : index
    %c0_192 = arith.constant 0 : index
    %458 = vector.load %arg2[%c240, %c0_192] : memref<520x128xf32, #tpu.memory_space<vmem>>, vector<128x128xf32>
    %cst_193 = arith.constant dense<0.000000e+00> : vector<8x128xf32>
    %459 = tpu.matmul %457, %458, %cst_193 {dimension_numbers = #tpu.dot_dimension_numbers<[1], [0], [0], [1], [0, 0, 1, 1], [], []>} : vector<8x128xf32>, vector<128x128xf32>, vector<8x128xf32> -> vector<8x128xf32>
    %c368 = arith.constant 368 : index
    %c0_194 = arith.constant 0 : index
    %460 = vector.load %arg2[%c368, %c0_194] : memref<520x128xf32, #tpu.memory_space<vmem>>, vector<32x128xf32>
    %cst_195 = arith.constant dense<0.000000e+00> : vector<8x128xf32>
    %461 = tpu.matmul %427, %460, %cst_195 {dimension_numbers = #tpu.dot_dimension_numbers<[1], [0], [0], [1], [0, 0, 1, 1], [], []>} : vector<8x32xf32>, vector<32x128xf32>, vector<8x128xf32> -> vector<8x128xf32>
    %462 = arith.addf %459, %461 : vector<8x128xf32>
    %463 = arith.addf %462, %5 : vector<8x128xf32>
    %464 = math.tanh %463 : vector<8x128xf32>
    %465 = vector.extract_strided_slice %464 {offsets = [0, 0], sizes = [8, 32], strides = [1, 1]} : vector<8x128xf32> to vector<8x32xf32>
    %cst_196 = arith.constant 5.000000e-01 : f32
    %466 = vector.broadcast %cst_196 : f32 to vector<8x32xf32>
    %467 = arith.mulf %466, %465 : vector<8x32xf32>
    %cst_197 = arith.constant 5.000000e-01 : f32
    %468 = vector.broadcast %cst_197 : f32 to vector<8x32xf32>
    %469 = arith.addf %467, %468 : vector<8x32xf32>
    %470 = vector.extract_strided_slice %464 {offsets = [0, 32], sizes = [8, 32], strides = [1, 1]} : vector<8x128xf32> to vector<8x32xf32>
    %cst_198 = arith.constant 5.000000e-01 : f32
    %471 = vector.broadcast %cst_198 : f32 to vector<8x32xf32>
    %472 = arith.mulf %471, %470 : vector<8x32xf32>
    %cst_199 = arith.constant 5.000000e-01 : f32
    %473 = vector.broadcast %cst_199 : f32 to vector<8x32xf32>
    %474 = arith.addf %472, %473 : vector<8x32xf32>
    %475 = vector.extract_strided_slice %464 {offsets = [0, 64], sizes = [8, 32], strides = [1, 1]} : vector<8x128xf32> to vector<8x32xf32>
    %476 = vector.extract_strided_slice %464 {offsets = [0, 96], sizes = [8, 32], strides = [1, 1]} : vector<8x128xf32> to vector<8x32xf32>
    %cst_200 = arith.constant 5.000000e-01 : f32
    %477 = vector.broadcast %cst_200 : f32 to vector<8x32xf32>
    %478 = arith.mulf %477, %476 : vector<8x32xf32>
    %cst_201 = arith.constant 5.000000e-01 : f32
    %479 = vector.broadcast %cst_201 : f32 to vector<8x32xf32>
    %480 = arith.addf %478, %479 : vector<8x32xf32>
    %481 = arith.mulf %474, %425 : vector<8x32xf32>
    %482 = arith.mulf %469, %475 : vector<8x32xf32>
    %483 = arith.addf %481, %482 : vector<8x32xf32>
    %484 = math.tanh %483 : vector<8x32xf32>
    %485 = arith.mulf %480, %484 : vector<8x32xf32>
    %c408 = arith.constant 408 : index
    %c0_202 = arith.constant 0 : index
    %486 = vector.load %arg2[%c408, %c0_202] : memref<520x128xf32, #tpu.memory_space<vmem>>, vector<32x128xf32>
    %cst_203 = arith.constant dense<0.000000e+00> : vector<8x128xf32>
    %487 = tpu.matmul %485, %486, %cst_203 {dimension_numbers = #tpu.dot_dimension_numbers<[1], [0], [0], [1], [0, 0, 1, 1], [], []>} : vector<8x32xf32>, vector<32x128xf32>, vector<8x128xf32> -> vector<8x128xf32>
    %c440 = arith.constant 440 : index
    %c0_204 = arith.constant 0 : index
    %488 = vector.load %arg2[%c440, %c0_204] : memref<520x128xf32, #tpu.memory_space<vmem>>, vector<32x128xf32>
    %cst_205 = arith.constant dense<0.000000e+00> : vector<8x128xf32>
    %489 = tpu.matmul %455, %488, %cst_205 {dimension_numbers = #tpu.dot_dimension_numbers<[1], [0], [0], [1], [0, 0, 1, 1], [], []>} : vector<8x32xf32>, vector<32x128xf32>, vector<8x128xf32> -> vector<8x128xf32>
    %490 = arith.addf %487, %489 : vector<8x128xf32>
    %491 = arith.addf %490, %8 : vector<8x128xf32>
    %492 = math.tanh %491 : vector<8x128xf32>
    %493 = vector.extract_strided_slice %492 {offsets = [0, 0], sizes = [8, 32], strides = [1, 1]} : vector<8x128xf32> to vector<8x32xf32>
    %cst_206 = arith.constant 5.000000e-01 : f32
    %494 = vector.broadcast %cst_206 : f32 to vector<8x32xf32>
    %495 = arith.mulf %494, %493 : vector<8x32xf32>
    %cst_207 = arith.constant 5.000000e-01 : f32
    %496 = vector.broadcast %cst_207 : f32 to vector<8x32xf32>
    %497 = arith.addf %495, %496 : vector<8x32xf32>
    %498 = vector.extract_strided_slice %492 {offsets = [0, 32], sizes = [8, 32], strides = [1, 1]} : vector<8x128xf32> to vector<8x32xf32>
    %cst_208 = arith.constant 5.000000e-01 : f32
    %499 = vector.broadcast %cst_208 : f32 to vector<8x32xf32>
    %500 = arith.mulf %499, %498 : vector<8x32xf32>
    %cst_209 = arith.constant 5.000000e-01 : f32
    %501 = vector.broadcast %cst_209 : f32 to vector<8x32xf32>
    %502 = arith.addf %500, %501 : vector<8x32xf32>
    %503 = vector.extract_strided_slice %492 {offsets = [0, 64], sizes = [8, 32], strides = [1, 1]} : vector<8x128xf32> to vector<8x32xf32>
    %504 = vector.extract_strided_slice %492 {offsets = [0, 96], sizes = [8, 32], strides = [1, 1]} : vector<8x128xf32> to vector<8x32xf32>
    %cst_210 = arith.constant 5.000000e-01 : f32
    %505 = vector.broadcast %cst_210 : f32 to vector<8x32xf32>
    %506 = arith.mulf %505, %504 : vector<8x32xf32>
    %cst_211 = arith.constant 5.000000e-01 : f32
    %507 = vector.broadcast %cst_211 : f32 to vector<8x32xf32>
    %508 = arith.addf %506, %507 : vector<8x32xf32>
    %509 = arith.mulf %502, %453 : vector<8x32xf32>
    %510 = arith.mulf %497, %503 : vector<8x32xf32>
    %511 = arith.addf %509, %510 : vector<8x32xf32>
    %512 = math.tanh %511 : vector<8x32xf32>
    %513 = arith.mulf %508, %512 : vector<8x32xf32>
    %c480 = arith.constant 480 : index
    %c0_212 = arith.constant 0 : index
    %514 = vector.load %arg2[%c480, %c0_212] : memref<520x128xf32, #tpu.memory_space<vmem>>, vector<32x128xf32>
    %cst_213 = arith.constant dense<0.000000e+00> : vector<8x128xf32>
    %515 = tpu.matmul %513, %514, %cst_213 {dimension_numbers = #tpu.dot_dimension_numbers<[1], [0], [0], [1], [0, 0, 1, 1], [], []>} : vector<8x32xf32>, vector<32x128xf32>, vector<8x128xf32> -> vector<8x128xf32>
    %516 = arith.addf %515, %11 : vector<8x128xf32>
    %c0_214 = arith.constant 0 : index
    %c0_215 = arith.constant 0 : index
    %c0_216 = arith.constant 0 : index
    %517 = vector.load %arg3[%c0_214, %c0_215, %c0_216] : memref<1x32x128xf32, #tpu.memory_space<vmem>>, vector<1x8x128xf32>
    %518 = vector.shape_cast %517 : vector<1x8x128xf32> to vector<8x128xf32>
    %519 = vector.shape_cast %516 : vector<8x128xf32> to vector<1x8x128xf32>
    tpu.vector_store %arg3[%c0_214, %c0_215, %c0_216], %519 {strides = array<i32>} : memref<1x32x128xf32, #tpu.memory_space<vmem>>, vector<1x8x128xf32>,
    %c240_217 = arith.constant 240 : index
    %c0_218 = arith.constant 0 : index
    %520 = vector.load %arg2[%c240_217, %c0_218] : memref<520x128xf32, #tpu.memory_space<vmem>>, vector<128x128xf32>
    %cst_219 = arith.constant dense<0.000000e+00> : vector<8x128xf32>
    %521 = tpu.matmul %516, %520, %cst_219 {dimension_numbers = #tpu.dot_dimension_numbers<[1], [0], [0], [1], [0, 0, 1, 1], [], []>} : vector<8x128xf32>, vector<128x128xf32>, vector<8x128xf32> -> vector<8x128xf32>
    %c368_220 = arith.constant 368 : index
    %c0_221 = arith.constant 0 : index
    %522 = vector.load %arg2[%c368_220, %c0_221] : memref<520x128xf32, #tpu.memory_space<vmem>>, vector<32x128xf32>
    %cst_222 = arith.constant dense<0.000000e+00> : vector<8x128xf32>
    %523 = tpu.matmul %485, %522, %cst_222 {dimension_numbers = #tpu.dot_dimension_numbers<[1], [0], [0], [1], [0, 0, 1, 1], [], []>} : vector<8x32xf32>, vector<32x128xf32>, vector<8x128xf32> -> vector<8x128xf32>
    %524 = arith.addf %521, %523 : vector<8x128xf32>
    %525 = arith.addf %524, %5 : vector<8x128xf32>
    %526 = math.tanh %525 : vector<8x128xf32>
    %527 = vector.extract_strided_slice %526 {offsets = [0, 0], sizes = [8, 32], strides = [1, 1]} : vector<8x128xf32> to vector<8x32xf32>
    %cst_223 = arith.constant 5.000000e-01 : f32
    %528 = vector.broadcast %cst_223 : f32 to vector<8x32xf32>
    %529 = arith.mulf %528, %527 : vector<8x32xf32>
    %cst_224 = arith.constant 5.000000e-01 : f32
    %530 = vector.broadcast %cst_224 : f32 to vector<8x32xf32>
    %531 = arith.addf %529, %530 : vector<8x32xf32>
    %532 = vector.extract_strided_slice %526 {offsets = [0, 32], sizes = [8, 32], strides = [1, 1]} : vector<8x128xf32> to vector<8x32xf32>
    %cst_225 = arith.constant 5.000000e-01 : f32
    %533 = vector.broadcast %cst_225 : f32 to vector<8x32xf32>
    %534 = arith.mulf %533, %532 : vector<8x32xf32>
    %cst_226 = arith.constant 5.000000e-01 : f32
    %535 = vector.broadcast %cst_226 : f32 to vector<8x32xf32>
    %536 = arith.addf %534, %535 : vector<8x32xf32>
    %537 = vector.extract_strided_slice %526 {offsets = [0, 64], sizes = [8, 32], strides = [1, 1]} : vector<8x128xf32> to vector<8x32xf32>
    %538 = vector.extract_strided_slice %526 {offsets = [0, 96], sizes = [8, 32], strides = [1, 1]} : vector<8x128xf32> to vector<8x32xf32>
    %cst_227 = arith.constant 5.000000e-01 : f32
    %539 = vector.broadcast %cst_227 : f32 to vector<8x32xf32>
    %540 = arith.mulf %539, %538 : vector<8x32xf32>
    %cst_228 = arith.constant 5.000000e-01 : f32
    %541 = vector.broadcast %cst_228 : f32 to vector<8x32xf32>
    %542 = arith.addf %540, %541 : vector<8x32xf32>
    %543 = arith.mulf %536, %483 : vector<8x32xf32>
    %544 = arith.mulf %531, %537 : vector<8x32xf32>
    %545 = arith.addf %543, %544 : vector<8x32xf32>
    %546 = math.tanh %545 : vector<8x32xf32>
    %547 = arith.mulf %542, %546 : vector<8x32xf32>
    %c408_229 = arith.constant 408 : index
    %c0_230 = arith.constant 0 : index
    %548 = vector.load %arg2[%c408_229, %c0_230] : memref<520x128xf32, #tpu.memory_space<vmem>>, vector<32x128xf32>
    %cst_231 = arith.constant dense<0.000000e+00> : vector<8x128xf32>
    %549 = tpu.matmul %547, %548, %cst_231 {dimension_numbers = #tpu.dot_dimension_numbers<[1], [0], [0], [1], [0, 0, 1, 1], [], []>} : vector<8x32xf32>, vector<32x128xf32>, vector<8x128xf32> -> vector<8x128xf32>
    %c440_232 = arith.constant 440 : index
    %c0_233 = arith.constant 0 : index
    %550 = vector.load %arg2[%c440_232, %c0_233] : memref<520x128xf32, #tpu.memory_space<vmem>>, vector<32x128xf32>
    %cst_234 = arith.constant dense<0.000000e+00> : vector<8x128xf32>
    %551 = tpu.matmul %513, %550, %cst_234 {dimension_numbers = #tpu.dot_dimension_numbers<[1], [0], [0], [1], [0, 0, 1, 1], [], []>} : vector<8x32xf32>, vector<32x128xf32>, vector<8x128xf32> -> vector<8x128xf32>
    %552 = arith.addf %549, %551 : vector<8x128xf32>
    %553 = arith.addf %552, %8 : vector<8x128xf32>
    %554 = math.tanh %553 : vector<8x128xf32>
    %555 = vector.extract_strided_slice %554 {offsets = [0, 0], sizes = [8, 32], strides = [1, 1]} : vector<8x128xf32> to vector<8x32xf32>
    %cst_235 = arith.constant 5.000000e-01 : f32
    %556 = vector.broadcast %cst_235 : f32 to vector<8x32xf32>
    %557 = arith.mulf %556, %555 : vector<8x32xf32>
    %cst_236 = arith.constant 5.000000e-01 : f32
    %558 = vector.broadcast %cst_236 : f32 to vector<8x32xf32>
    %559 = arith.addf %557, %558 : vector<8x32xf32>
    %560 = vector.extract_strided_slice %554 {offsets = [0, 32], sizes = [8, 32], strides = [1, 1]} : vector<8x128xf32> to vector<8x32xf32>
    %cst_237 = arith.constant 5.000000e-01 : f32
    %561 = vector.broadcast %cst_237 : f32 to vector<8x32xf32>
    %562 = arith.mulf %561, %560 : vector<8x32xf32>
    %cst_238 = arith.constant 5.000000e-01 : f32
    %563 = vector.broadcast %cst_238 : f32 to vector<8x32xf32>
    %564 = arith.addf %562, %563 : vector<8x32xf32>
    %565 = vector.extract_strided_slice %554 {offsets = [0, 64], sizes = [8, 32], strides = [1, 1]} : vector<8x128xf32> to vector<8x32xf32>
    %566 = vector.extract_strided_slice %554 {offsets = [0, 96], sizes = [8, 32], strides = [1, 1]} : vector<8x128xf32> to vector<8x32xf32>
    %cst_239 = arith.constant 5.000000e-01 : f32
    %567 = vector.broadcast %cst_239 : f32 to vector<8x32xf32>
    %568 = arith.mulf %567, %566 : vector<8x32xf32>
    %cst_240 = arith.constant 5.000000e-01 : f32
    %569 = vector.broadcast %cst_240 : f32 to vector<8x32xf32>
    %570 = arith.addf %568, %569 : vector<8x32xf32>
    %571 = arith.mulf %564, %511 : vector<8x32xf32>
    %572 = arith.mulf %559, %565 : vector<8x32xf32>
    %573 = arith.addf %571, %572 : vector<8x32xf32>
    %574 = math.tanh %573 : vector<8x32xf32>
    %575 = arith.mulf %570, %574 : vector<8x32xf32>
    %c480_241 = arith.constant 480 : index
    %c0_242 = arith.constant 0 : index
    %576 = vector.load %arg2[%c480_241, %c0_242] : memref<520x128xf32, #tpu.memory_space<vmem>>, vector<32x128xf32>
    %cst_243 = arith.constant dense<0.000000e+00> : vector<8x128xf32>
    %577 = tpu.matmul %575, %576, %cst_243 {dimension_numbers = #tpu.dot_dimension_numbers<[1], [0], [0], [1], [0, 0, 1, 1], [], []>} : vector<8x32xf32>, vector<32x128xf32>, vector<8x128xf32> -> vector<8x128xf32>
    %578 = arith.addf %577, %11 : vector<8x128xf32>
    %c0_244 = arith.constant 0 : index
    %c8_245 = arith.constant 8 : index
    %c0_246 = arith.constant 0 : index
    %579 = vector.load %arg3[%c0_244, %c8_245, %c0_246] : memref<1x32x128xf32, #tpu.memory_space<vmem>>, vector<1x8x128xf32>
    %580 = vector.shape_cast %579 : vector<1x8x128xf32> to vector<8x128xf32>
    %581 = vector.shape_cast %578 : vector<8x128xf32> to vector<1x8x128xf32>
    tpu.vector_store %arg3[%c0_244, %c8_245, %c0_246], %581 {strides = array<i32>} : memref<1x32x128xf32, #tpu.memory_space<vmem>>, vector<1x8x128xf32>,
    %c240_247 = arith.constant 240 : index
    %c0_248 = arith.constant 0 : index
    %582 = vector.load %arg2[%c240_247, %c0_248] : memref<520x128xf32, #tpu.memory_space<vmem>>, vector<128x128xf32>
    %cst_249 = arith.constant dense<0.000000e+00> : vector<8x128xf32>
    %583 = tpu.matmul %578, %582, %cst_249 {dimension_numbers = #tpu.dot_dimension_numbers<[1], [0], [0], [1], [0, 0, 1, 1], [], []>} : vector<8x128xf32>, vector<128x128xf32>, vector<8x128xf32> -> vector<8x128xf32>
    %c368_250 = arith.constant 368 : index
    %c0_251 = arith.constant 0 : index
    %584 = vector.load %arg2[%c368_250, %c0_251] : memref<520x128xf32, #tpu.memory_space<vmem>>, vector<32x128xf32>
    %cst_252 = arith.constant dense<0.000000e+00> : vector<8x128xf32>
    %585 = tpu.matmul %547, %584, %cst_252 {dimension_numbers = #tpu.dot_dimension_numbers<[1], [0], [0], [1], [0, 0, 1, 1], [], []>} : vector<8x32xf32>, vector<32x128xf32>, vector<8x128xf32> -> vector<8x128xf32>
    %586 = arith.addf %583, %585 : vector<8x128xf32>
    %587 = arith.addf %586, %5 : vector<8x128xf32>
    %588 = math.tanh %587 : vector<8x128xf32>
    %589 = vector.extract_strided_slice %588 {offsets = [0, 0], sizes = [8, 32], strides = [1, 1]} : vector<8x128xf32> to vector<8x32xf32>
    %cst_253 = arith.constant 5.000000e-01 : f32
    %590 = vector.broadcast %cst_253 : f32 to vector<8x32xf32>
    %591 = arith.mulf %590, %589 : vector<8x32xf32>
    %cst_254 = arith.constant 5.000000e-01 : f32
    %592 = vector.broadcast %cst_254 : f32 to vector<8x32xf32>
    %593 = arith.addf %591, %592 : vector<8x32xf32>
    %594 = vector.extract_strided_slice %588 {offsets = [0, 32], sizes = [8, 32], strides = [1, 1]} : vector<8x128xf32> to vector<8x32xf32>
    %cst_255 = arith.constant 5.000000e-01 : f32
    %595 = vector.broadcast %cst_255 : f32 to vector<8x32xf32>
    %596 = arith.mulf %595, %594 : vector<8x32xf32>
    %cst_256 = arith.constant 5.000000e-01 : f32
    %597 = vector.broadcast %cst_256 : f32 to vector<8x32xf32>
    %598 = arith.addf %596, %597 : vector<8x32xf32>
    %599 = vector.extract_strided_slice %588 {offsets = [0, 64], sizes = [8, 32], strides = [1, 1]} : vector<8x128xf32> to vector<8x32xf32>
    %600 = vector.extract_strided_slice %588 {offsets = [0, 96], sizes = [8, 32], strides = [1, 1]} : vector<8x128xf32> to vector<8x32xf32>
    %cst_257 = arith.constant 5.000000e-01 : f32
    %601 = vector.broadcast %cst_257 : f32 to vector<8x32xf32>
    %602 = arith.mulf %601, %600 : vector<8x32xf32>
    %cst_258 = arith.constant 5.000000e-01 : f32
    %603 = vector.broadcast %cst_258 : f32 to vector<8x32xf32>
    %604 = arith.addf %602, %603 : vector<8x32xf32>
    %605 = arith.mulf %598, %545 : vector<8x32xf32>
    %606 = arith.mulf %593, %599 : vector<8x32xf32>
    %607 = arith.addf %605, %606 : vector<8x32xf32>
    %608 = math.tanh %607 : vector<8x32xf32>
    %609 = arith.mulf %604, %608 : vector<8x32xf32>
    %c408_259 = arith.constant 408 : index
    %c0_260 = arith.constant 0 : index
    %610 = vector.load %arg2[%c408_259, %c0_260] : memref<520x128xf32, #tpu.memory_space<vmem>>, vector<32x128xf32>
    %cst_261 = arith.constant dense<0.000000e+00> : vector<8x128xf32>
    %611 = tpu.matmul %609, %610, %cst_261 {dimension_numbers = #tpu.dot_dimension_numbers<[1], [0], [0], [1], [0, 0, 1, 1], [], []>} : vector<8x32xf32>, vector<32x128xf32>, vector<8x128xf32> -> vector<8x128xf32>
    %c440_262 = arith.constant 440 : index
    %c0_263 = arith.constant 0 : index
    %612 = vector.load %arg2[%c440_262, %c0_263] : memref<520x128xf32, #tpu.memory_space<vmem>>, vector<32x128xf32>
    %cst_264 = arith.constant dense<0.000000e+00> : vector<8x128xf32>
    %613 = tpu.matmul %575, %612, %cst_264 {dimension_numbers = #tpu.dot_dimension_numbers<[1], [0], [0], [1], [0, 0, 1, 1], [], []>} : vector<8x32xf32>, vector<32x128xf32>, vector<8x128xf32> -> vector<8x128xf32>
    %614 = arith.addf %611, %613 : vector<8x128xf32>
    %615 = arith.addf %614, %8 : vector<8x128xf32>
    %616 = math.tanh %615 : vector<8x128xf32>
    %617 = vector.extract_strided_slice %616 {offsets = [0, 0], sizes = [8, 32], strides = [1, 1]} : vector<8x128xf32> to vector<8x32xf32>
    %cst_265 = arith.constant 5.000000e-01 : f32
    %618 = vector.broadcast %cst_265 : f32 to vector<8x32xf32>
    %619 = arith.mulf %618, %617 : vector<8x32xf32>
    %cst_266 = arith.constant 5.000000e-01 : f32
    %620 = vector.broadcast %cst_266 : f32 to vector<8x32xf32>
    %621 = arith.addf %619, %620 : vector<8x32xf32>
    %622 = vector.extract_strided_slice %616 {offsets = [0, 32], sizes = [8, 32], strides = [1, 1]} : vector<8x128xf32> to vector<8x32xf32>
    %cst_267 = arith.constant 5.000000e-01 : f32
    %623 = vector.broadcast %cst_267 : f32 to vector<8x32xf32>
    %624 = arith.mulf %623, %622 : vector<8x32xf32>
    %cst_268 = arith.constant 5.000000e-01 : f32
    %625 = vector.broadcast %cst_268 : f32 to vector<8x32xf32>
    %626 = arith.addf %624, %625 : vector<8x32xf32>
    %627 = vector.extract_strided_slice %616 {offsets = [0, 64], sizes = [8, 32], strides = [1, 1]} : vector<8x128xf32> to vector<8x32xf32>
    %628 = vector.extract_strided_slice %616 {offsets = [0, 96], sizes = [8, 32], strides = [1, 1]} : vector<8x128xf32> to vector<8x32xf32>
    %cst_269 = arith.constant 5.000000e-01 : f32
    %629 = vector.broadcast %cst_269 : f32 to vector<8x32xf32>
    %630 = arith.mulf %629, %628 : vector<8x32xf32>
    %cst_270 = arith.constant 5.000000e-01 : f32
    %631 = vector.broadcast %cst_270 : f32 to vector<8x32xf32>
    %632 = arith.addf %630, %631 : vector<8x32xf32>
    %633 = arith.mulf %626, %573 : vector<8x32xf32>
    %634 = arith.mulf %621, %627 : vector<8x32xf32>
    %635 = arith.addf %633, %634 : vector<8x32xf32>
    %636 = math.tanh %635 : vector<8x32xf32>
    %637 = arith.mulf %632, %636 : vector<8x32xf32>
    %c480_271 = arith.constant 480 : index
    %c0_272 = arith.constant 0 : index
    %638 = vector.load %arg2[%c480_271, %c0_272] : memref<520x128xf32, #tpu.memory_space<vmem>>, vector<32x128xf32>
    %cst_273 = arith.constant dense<0.000000e+00> : vector<8x128xf32>
    %639 = tpu.matmul %637, %638, %cst_273 {dimension_numbers = #tpu.dot_dimension_numbers<[1], [0], [0], [1], [0, 0, 1, 1], [], []>} : vector<8x32xf32>, vector<32x128xf32>, vector<8x128xf32> -> vector<8x128xf32>
    %640 = arith.addf %639, %11 : vector<8x128xf32>
    %c0_274 = arith.constant 0 : index
    %c16_275 = arith.constant 16 : index
    %c0_276 = arith.constant 0 : index
    %641 = vector.load %arg3[%c0_274, %c16_275, %c0_276] : memref<1x32x128xf32, #tpu.memory_space<vmem>>, vector<1x8x128xf32>
    %642 = vector.shape_cast %641 : vector<1x8x128xf32> to vector<8x128xf32>
    %643 = vector.shape_cast %640 : vector<8x128xf32> to vector<1x8x128xf32>
    tpu.vector_store %arg3[%c0_274, %c16_275, %c0_276], %643 {strides = array<i32>} : memref<1x32x128xf32, #tpu.memory_space<vmem>>, vector<1x8x128xf32>,
    %c240_277 = arith.constant 240 : index
    %c0_278 = arith.constant 0 : index
    %644 = vector.load %arg2[%c240_277, %c0_278] : memref<520x128xf32, #tpu.memory_space<vmem>>, vector<128x128xf32>
    %cst_279 = arith.constant dense<0.000000e+00> : vector<8x128xf32>
    %645 = tpu.matmul %640, %644, %cst_279 {dimension_numbers = #tpu.dot_dimension_numbers<[1], [0], [0], [1], [0, 0, 1, 1], [], []>} : vector<8x128xf32>, vector<128x128xf32>, vector<8x128xf32> -> vector<8x128xf32>
    %c368_280 = arith.constant 368 : index
    %c0_281 = arith.constant 0 : index
    %646 = vector.load %arg2[%c368_280, %c0_281] : memref<520x128xf32, #tpu.memory_space<vmem>>, vector<32x128xf32>
    %cst_282 = arith.constant dense<0.000000e+00> : vector<8x128xf32>
    %647 = tpu.matmul %609, %646, %cst_282 {dimension_numbers = #tpu.dot_dimension_numbers<[1], [0], [0], [1], [0, 0, 1, 1], [], []>} : vector<8x32xf32>, vector<32x128xf32>, vector<8x128xf32> -> vector<8x128xf32>
    %648 = arith.addf %645, %647 : vector<8x128xf32>
    %649 = arith.addf %648, %5 : vector<8x128xf32>
    %650 = math.tanh %649 : vector<8x128xf32>
    %651 = vector.extract_strided_slice %650 {offsets = [0, 0], sizes = [8, 32], strides = [1, 1]} : vector<8x128xf32> to vector<8x32xf32>
    %cst_283 = arith.constant 5.000000e-01 : f32
    %652 = vector.broadcast %cst_283 : f32 to vector<8x32xf32>
    %653 = arith.mulf %652, %651 : vector<8x32xf32>
    %cst_284 = arith.constant 5.000000e-01 : f32
    %654 = vector.broadcast %cst_284 : f32 to vector<8x32xf32>
    %655 = arith.addf %653, %654 : vector<8x32xf32>
    %656 = vector.extract_strided_slice %650 {offsets = [0, 32], sizes = [8, 32], strides = [1, 1]} : vector<8x128xf32> to vector<8x32xf32>
    %cst_285 = arith.constant 5.000000e-01 : f32
    %657 = vector.broadcast %cst_285 : f32 to vector<8x32xf32>
    %658 = arith.mulf %657, %656 : vector<8x32xf32>
    %cst_286 = arith.constant 5.000000e-01 : f32
    %659 = vector.broadcast %cst_286 : f32 to vector<8x32xf32>
    %660 = arith.addf %658, %659 : vector<8x32xf32>
    %661 = vector.extract_strided_slice %650 {offsets = [0, 64], sizes = [8, 32], strides = [1, 1]} : vector<8x128xf32> to vector<8x32xf32>
    %662 = vector.extract_strided_slice %650 {offsets = [0, 96], sizes = [8, 32], strides = [1, 1]} : vector<8x128xf32> to vector<8x32xf32>
    %cst_287 = arith.constant 5.000000e-01 : f32
    %663 = vector.broadcast %cst_287 : f32 to vector<8x32xf32>
    %664 = arith.mulf %663, %662 : vector<8x32xf32>
    %cst_288 = arith.constant 5.000000e-01 : f32
    %665 = vector.broadcast %cst_288 : f32 to vector<8x32xf32>
    %666 = arith.addf %664, %665 : vector<8x32xf32>
    %667 = arith.mulf %660, %607 : vector<8x32xf32>
    %668 = arith.mulf %655, %661 : vector<8x32xf32>
    %669 = arith.addf %667, %668 : vector<8x32xf32>
    %670 = math.tanh %669 : vector<8x32xf32>
    %671 = arith.mulf %666, %670 : vector<8x32xf32>
    %c408_289 = arith.constant 408 : index
    %c0_290 = arith.constant 0 : index
    %672 = vector.load %arg2[%c408_289, %c0_290] : memref<520x128xf32, #tpu.memory_space<vmem>>, vector<32x128xf32>
    %cst_291 = arith.constant dense<0.000000e+00> : vector<8x128xf32>
    %673 = tpu.matmul %671, %672, %cst_291 {dimension_numbers = #tpu.dot_dimension_numbers<[1], [0], [0], [1], [0, 0, 1, 1], [], []>} : vector<8x32xf32>, vector<32x128xf32>, vector<8x128xf32> -> vector<8x128xf32>
    %c440_292 = arith.constant 440 : index
    %c0_293 = arith.constant 0 : index
    %674 = vector.load %arg2[%c440_292, %c0_293] : memref<520x128xf32, #tpu.memory_space<vmem>>, vector<32x128xf32>
    %cst_294 = arith.constant dense<0.000000e+00> : vector<8x128xf32>
    %675 = tpu.matmul %637, %674, %cst_294 {dimension_numbers = #tpu.dot_dimension_numbers<[1], [0], [0], [1], [0, 0, 1, 1], [], []>} : vector<8x32xf32>, vector<32x128xf32>, vector<8x128xf32> -> vector<8x128xf32>
    %676 = arith.addf %673, %675 : vector<8x128xf32>
    %677 = arith.addf %676, %8 : vector<8x128xf32>
    %678 = math.tanh %677 : vector<8x128xf32>
    %679 = vector.extract_strided_slice %678 {offsets = [0, 0], sizes = [8, 32], strides = [1, 1]} : vector<8x128xf32> to vector<8x32xf32>
    %cst_295 = arith.constant 5.000000e-01 : f32
    %680 = vector.broadcast %cst_295 : f32 to vector<8x32xf32>
    %681 = arith.mulf %680, %679 : vector<8x32xf32>
    %cst_296 = arith.constant 5.000000e-01 : f32
    %682 = vector.broadcast %cst_296 : f32 to vector<8x32xf32>
    %683 = arith.addf %681, %682 : vector<8x32xf32>
    %684 = vector.extract_strided_slice %678 {offsets = [0, 32], sizes = [8, 32], strides = [1, 1]} : vector<8x128xf32> to vector<8x32xf32>
    %cst_297 = arith.constant 5.000000e-01 : f32
    %685 = vector.broadcast %cst_297 : f32 to vector<8x32xf32>
    %686 = arith.mulf %685, %684 : vector<8x32xf32>
    %cst_298 = arith.constant 5.000000e-01 : f32
    %687 = vector.broadcast %cst_298 : f32 to vector<8x32xf32>
    %688 = arith.addf %686, %687 : vector<8x32xf32>
    %689 = vector.extract_strided_slice %678 {offsets = [0, 64], sizes = [8, 32], strides = [1, 1]} : vector<8x128xf32> to vector<8x32xf32>
    %690 = vector.extract_strided_slice %678 {offsets = [0, 96], sizes = [8, 32], strides = [1, 1]} : vector<8x128xf32> to vector<8x32xf32>
    %cst_299 = arith.constant 5.000000e-01 : f32
    %691 = vector.broadcast %cst_299 : f32 to vector<8x32xf32>
    %692 = arith.mulf %691, %690 : vector<8x32xf32>
    %cst_300 = arith.constant 5.000000e-01 : f32
    %693 = vector.broadcast %cst_300 : f32 to vector<8x32xf32>
    %694 = arith.addf %692, %693 : vector<8x32xf32>
    %695 = arith.mulf %688, %635 : vector<8x32xf32>
    %696 = arith.mulf %683, %689 : vector<8x32xf32>
    %697 = arith.addf %695, %696 : vector<8x32xf32>
    %698 = math.tanh %697 : vector<8x32xf32>
    %699 = arith.mulf %694, %698 : vector<8x32xf32>
    %c480_301 = arith.constant 480 : index
    %c0_302 = arith.constant 0 : index
    %700 = vector.load %arg2[%c480_301, %c0_302] : memref<520x128xf32, #tpu.memory_space<vmem>>, vector<32x128xf32>
    %cst_303 = arith.constant dense<0.000000e+00> : vector<8x128xf32>
    %701 = tpu.matmul %699, %700, %cst_303 {dimension_numbers = #tpu.dot_dimension_numbers<[1], [0], [0], [1], [0, 0, 1, 1], [], []>} : vector<8x32xf32>, vector<32x128xf32>, vector<8x128xf32> -> vector<8x128xf32>
    %702 = arith.addf %701, %11 : vector<8x128xf32>
    %c0_304 = arith.constant 0 : index
    %c24_305 = arith.constant 24 : index
    %c0_306 = arith.constant 0 : index
    %703 = vector.load %arg3[%c0_304, %c24_305, %c0_306] : memref<1x32x128xf32, #tpu.memory_space<vmem>>, vector<1x8x128xf32>
    %704 = vector.shape_cast %703 : vector<1x8x128xf32> to vector<8x128xf32>
    %705 = vector.shape_cast %702 : vector<8x128xf32> to vector<1x8x128xf32>
    tpu.vector_store %arg3[%c0_304, %c24_305, %c0_306], %705 {strides = array<i32>} : memref<1x32x128xf32, #tpu.memory_space<vmem>>, vector<1x8x128xf32>,
    return
  }
  func.func @transform_0(%arg0: i32) -> (i32, i32, i32) {
    %c0_i32 = arith.constant 0 : i32
    %c0_i32_0 = arith.constant 0 : i32
    %c0_i32_1 = arith.constant 0 : i32
    return %arg0, %c0_i32, %c0_i32_0 : i32, i32, i32
  }
  func.func @transform_1(%arg0: i32) -> (i32, i32) {
    %c0_i32 = arith.constant 0 : i32
    %c0_i32_0 = arith.constant 0 : i32
    %c0_i32_1 = arith.constant 0 : i32
    return %c0_i32, %c0_i32_0 : i32, i32
  }
  func.func @transform_2(%arg0: i32) -> (i32, i32, i32) {
    %c0_i32 = arith.constant 0 : i32
    %c0_i32_0 = arith.constant 0 : i32
    %c0_i32_1 = arith.constant 0 : i32
    return %arg0, %c0_i32, %c0_i32_0 : i32, i32, i32
  }
}

</mosaic_0001>

<bundles_post_ra>
// kernel: forward.1
= control target key start
LH: loop header
LB: loop body
LE: loop exit
PB: predicated region body
PF: predicated region fallthrough
CT: control target
= control target key end

     0   :  { %7 = vsyncpa [#allocation4], 0  ;;  %s5419_s9 = smov 0   ;;  %s6365_s0 = inlined_call_operand.vmem [shape: f32[2,64,128], index: 0, kind: input, shape index: {}]   ;;  %s6366_s1 = inlined_call_operand.hbm [shape: f32[520,128], index: 1, kind: input, shape index: {}]   ;;  %s6367_s2 = inlined_call_operand.vmem [shape: f32[2,32,128], index: 2, kind: output, shape index: {}]  }
   0x1 LB: > { %s5425_s10 = sadd.s32 4294967295, %s5395_s9   ;;  %p4251_p0 = scmp.ge.s32.totalorder %s5395_s9, 1  ;;  %s5395_s9 = sphi %s5419_s9, %s13_s9  }
   0x2   : > { %p91_p1 = scmp.lt.s32.totalorder %s5395_s9, 3  ;;  %s5397_s11 = smov [#allocation3]  }
   0x3   : > { %s103_s12 = sshll.u32 %s5397_s11, 4  ;;  %p5231_p3 = scmp.eq.s32.totalorder %s5425_s10, 0  ;;  %s104_s12 = int_to_ptr.vmem [resolvable:$true] %s103_s12 }
   0x4   : > { %p5429_p2 = pnand %p4251_p0, %p91_p1  ;;  %s5370_s14 = scalar_lea.vmem %s104_s12, 8320 }
   0x5   : > { %p5371_p7 = scmp.ne.s32.totalorder %s104_s12, %s5370_s14  ;;  %p5378_p10 = scmp.lt.s32.totalorder %s104_s12, %s104_s12 }
   0x6   : > { %p5227_p4 = pneg %p5429_p2  ;;  %p5379_p11 = scmp.lt.s32.totalorder %s5370_s14, %s5370_s14 }
   0x8   : > { %p5228_p5 = pnand %p5231_p3, %p5227_p4  ;;  %p5380_p12 = por %p5379_p11, %p5378_p10 }
   0xa   : > { %p5361_p6 = pneg %p5228_p5 }
   0xc   : > { %p5373_p8 = pnand %p5371_p7, %p5361_p6 }
   0xe   : > { %p5374_p9 = pneg %p5373_p8 }
  0x10   : > { %p5381_p13 = pnand %p5380_p12, %p5374_p9 }
  0x12   : > { %5384 = shalt.err (!%p5381_p13)
}
  0x13   : > { %s5398_s15 = smov 128   ;;  %s5399_s16 = smov 8  }
  0x14   : > { %5230 = dma.hbm_to_vmem [thread:$0]  (!%p5228_p5), %s6366_s1, 8320, %s104_s12, [#allocation4], %s5398_s15, %s5398_s15, %s5399_s16  }
  0x15   : > { %127 = sbr.rel (%p5429_p2) target bundleno = 11956 (0x2eb4), region = 28 }
  0x1a   : > { %5390 = dma.done.wait (%p5231_p3), [#allocation4], 8320  }
  0x1b   : > { %5392 = vsyncadd (%p5231_p3), [#allocation4], 4294958976  ;;  %p149_p0 = scmp.lt.s32.totalorder %s5425_s10, 1  ;;  %v5400_v0 = vmov 0.0   ;;  %vm5401_vm0 = vmmov 0   ;;  %v202_v1 = vld [vmem:[#allocation3 + $0x78] sm:$0xff] }
  0x1c   : > { %4643 = vmatprep.subr.mxu1 %v5400_v0  ;;  %4651 = vmatprep.mubr.msk.f32.mxu1 %vm5401_vm0, %v5400_v0  ;;  %v201_v2 = vld [vmem:[#allocation3 + $0x70] sm:$0xff]  ;;  %v200_v3 = vld [vmem:[#allocation3 + $0x68] sm:$0xff]  ;;  %v199_v4 = vld [vmem:[#allocation3 + $0x60] sm:$0xff]  ;;  %s5402_s23 = smov 64   ;;  %s5403_s24 = smov 32   ;;  %vm326_vm1 = vcmask 261120  }
  0x1d   : > { %s6370_s10 = smov (!%p149_p0, %s5425_s10), 1  ;;  %4599 = vmatprep.subr.mxu0 %v202_v1  ;;  %v5460_v5 = vld [vmem:[#allocation3 + $0x98] sm:$0xff]  ;;  %v5463_v6 = vld [vmem:[#allocation3 + $0x90] sm:$0xff]  ;;  %v5468_v9 = vld [vmem:[#allocation3 + $0x88] sm:$0xff] }
  0x1e   : > { %s4305_s19 = sshll.u32 %s6370_s10, 6  ;;  %4600 = vmatpush3.msra.mxu0 %v202_v1  ;;  %4644 = vmatpush3.msra.mxu1 %v5460_v5  ;;  %v198_v7 = vld [vmem:[#allocation3 + $0x58] sm:$0xff]  ;;  %v197_v10 = vld [vmem:[#allocation3 + $0x50] sm:$0xff]  ;;  %v5471_v11 = vld [vmem:[#allocation3 + $0x80] sm:$0xff]  ;;  %s4306_s25 = sshll.u32 %s6370_s10, 5 }
  0x1f   : > { %4601 = vmatprep.subr.mxu0 %v201_v2  ;;  %s5458_s22 = scalar_lea.vmem %s6365_s0, %s4305_s19  ;;  %4645 = vmatprep.subr.mxu1 %v5400_v0  ;;  %v196_v12 = vld [vmem:[#allocation3 + $0x48] sm:$0xff]  ;;  %v195_v13 = vld [vmem:[#allocation3 + $0x40] sm:$0xff]  ;;  %v194_v14 = vld [vmem:[#allocation3 + $0x38] sm:$0xff]  ;;  %s6138_s28 = scalar_lea.vmem %s6367_s2, %s4306_s25 }
  0x20   : > { %4602 = vmatpush3.msra.mxu0 %v201_v2  ;;  %v179_v8 = vld [vmem:[%s5458_s22] sm:$0xff]  ;;  %4646 = vmatpush3.msra.mxu1 %v5463_v6  ;;  %v193_v15 = vld [vmem:[#allocation3 + $0x30] sm:$0xff]  ;;  %v192_v16 = vld [vmem:[#allocation3 + $0x28] sm:$0xff] }
  0x21   : > { %4603 = vmatprep.subr.mxu0 %v200_v3  ;;  %4647 = vmatprep.subr.mxu1 %v5400_v0  ;;  %v191_v17 = vld [vmem:[#allocation3 + $0x20] sm:$0xff]  ;;  %v190_v18 = vld [vmem:[#allocation3 + $0x18] sm:$0xff]  ;;  %v189_v19 = vld [vmem:[#allocation3 + $0x10] sm:$0xff] }
  0x22   : > { %4604 = vmatpush3.msra.mxu0 %v200_v3  ;;  %4631 = vmatprep.mubr.f32.mxu0 %v179_v8  ;;  %v188_v20 = vld [vmem:[#allocation3 + $0x8] sm:$0xff]  ;;  %v187_v21 = vld [vmem:[#allocation3] sm:$0xff]  ;;  %v5494_v39 = vld [vmem:[#allocation3 + $0xd8] sm:$0xff] }
  0x23   : > { %4605 = vmatprep.subr.mxu0 %v199_v4  ;;  %4648 = vmatpush3.msra.mxu1 %v5468_v9  ;;  %v180_v22 = vld [vmem:[%s5458_s22 + $0x8] sm:$0xff]  ;;  %v5484_v26 = vld [vmem:[#allocation3 + $0xa0] ss:$0 sm:$0xff]  ;;  %v5500_v41 = vld [vmem:[#allocation3 + $0xd0] sm:$0xff] }
  0x24   : > { %4606 = vmatpush3.msra.mxu0 %v199_v4  ;;  %4649 = vmatprep.subr.mxu1 %v5400_v0  ;;  %v5492_v38 = vld [vmem:[#allocation3 + $0xe0] sm:$0xff]  ;;  %v5504_v42 = vld [vmem:[#allocation3 + $0xb8] sm:$0xff]  ;;  %v5508_v43 = vld [vmem:[#allocation3 + $0xc8] sm:$0xff] }
  0x25   : > { %4607 = vmatprep.subr.mxu0 %v198_v7  ;;  %4650 = vmatpush3.msra.mxu1 %v5471_v11  ;;  %v5497_v40 = vld [vmem:[#allocation3 + $0xc0] sm:$0xff]  ;;  %v5512_v44 = vld [vmem:[#allocation3 + $0xb0] sm:$0xff]  ;;  %v5522_v45 = vld [vmem:[#allocation3 + $0xa8] sm:$0xff] }
  0x26   : > { %4608 = vmatpush3.msra.mxu0 %v198_v7  ;;  %4652 = vmatmul.mubr.f32.vlgmr.msra.gmra.mxu1 %v5400_v0  ;;  %v5559_v52 = vld [vmem:[#allocation3 + $0xe8] ss:$0 sm:$0xff] }
  0x27   : > { %4609 = vmatprep.subr.mxu0 %v197_v10  ;;  %4654 = vmatprep.subr.mxu1 %v5400_v0 }
  0x28   : > { %4610 = vmatpush3.msra.mxu0 %v197_v10  ;;  %4662 = vmatprep.mubr.msk.f32.mxu1 %vm5401_vm0, %v5400_v0 }
  0x29   : > { %4611 = vmatprep.subr.mxu0 %v196_v12  ;;  %4655 = vmatpush3.msra.mxu1 %v5492_v38 }
  0x2a   : > { %4612 = vmatpush3.msra.mxu0 %v196_v12  ;;  %4656 = vmatprep.subr.mxu1 %v5400_v0 }
  0x2b   : > { %4613 = vmatprep.subr.mxu0 %v195_v13  ;;  %4657 = vmatpush3.msra.mxu1 %v5494_v39 }
  0x2c   : > { %4614 = vmatpush3.msra.mxu0 %v195_v13  ;;  %4658 = vmatprep.subr.mxu1 %v5400_v0 }
  0x2d   : > { %4615 = vmatprep.subr.mxu0 %v194_v14  ;;  %4659 = vmatpush3.msra.mxu1 %v5500_v41 }
  0x2e   : > { %4616 = vmatpush3.msra.mxu0 %v194_v14  ;;  %4660 = vmatprep.subr.mxu1 %v5400_v0 }
  0x2f   : > { %4617 = vmatprep.subr.mxu0 %v193_v15  ;;  %4661 = vmatpush3.msra.mxu1 %v5508_v43 }
  0x30   : > { %4618 = vmatpush3.msra.mxu0 %v193_v15  ;;  %4663 = vmatmul.mubr.f32.vlgmr.msra.gmra.mxu1 %v5400_v0 }
  0x31   : > { %4619 = vmatprep.subr.mxu0 %v192_v16  ;;  %4665 = vmatprep.subr.mxu1 %v5400_v0 }
  0x32   : > { %4620 = vmatpush3.msra.mxu0 %v192_v16  ;;  %4666 = vmatpush3.msra.mxu1 %v5497_v40 }
  0x33   : > { %4621 = vmatprep.subr.mxu0 %v191_v17  ;;  %4673 = vmatprep.mubr.msk.f32.mxu1 %vm5401_vm0, %v5400_v0 }
  0x34   : > { %4622 = vmatpush3.msra.mxu0 %v191_v17  ;;  %4667 = vmatprep.subr.mxu1 %v5400_v0 }
  0x35   : > { %4623 = vmatprep.subr.mxu0 %v190_v18  ;;  %4668 = vmatpush3.msra.mxu1 %v5504_v42 }
  0x36   : > { %4624 = vmatpush3.msra.mxu0 %v190_v18  ;;  %4669 = vmatprep.subr.mxu1 %v5400_v0  ;;  %v181_v18 = vld [vmem:[%s5458_s22 + $0x10] sm:$0xff] }
  0x37   : > { %4625 = vmatprep.subr.mxu0 %v189_v19  ;;  %4670 = vmatpush3.msra.mxu1 %v5512_v44 }
  0x38   : > { %4626 = vmatpush3.msra.mxu0 %v189_v19  ;;  %4671 = vmatprep.subr.mxu1 %v5400_v0  ;;  %v182_v19 = vld [vmem:[%s5458_s22 + $0x18] sm:$0xff] }
  0x39   : > { %4627 = vmatprep.subr.mxu0 %v188_v20  ;;  %4672 = vmatpush3.msra.mxu1 %v5522_v45 }
  0x3a   : > { %4628 = vmatpush3.msra.mxu0 %v188_v20  ;;  %4676 = vmatprep.subr.mxu1 %v5400_v0  ;;  %v183_v20 = vld [vmem:[%s5458_s22 + $0x20] sm:$0xff] }
  0x3b   : > { %4629 = vmatprep.subr.mxu0 %v187_v21 }
  0x3c   : > { %4630 = vmatpush3.msra.mxu0 %v187_v21  ;;  %v184_v21 = vld [vmem:[%s5458_s22 + $0x28] sm:$0xff] }
  0x3d   : > { %4632 = vmatmul.mubr.f32.vlgmr.msra.gmra.mxu0 %v180_v22  ;;  %4698 = vmatprep.subr.mxu0 %v5400_v0 }
  0x3e   : > { %4699 = vmatpush3.msra.mxu0 %v5497_v40  ;;  %4634 = vmatprep.mubr.f32.mxu0 %v181_v18 }
  0x3f   : > { %4700 = vmatprep.subr.mxu0 %v5400_v0 }
  0x40   : > { %4701 = vmatpush3.msra.mxu0 %v5504_v42 }
  0x41   : > { %4702 = vmatprep.subr.mxu0 %v5400_v0  ;;  %4635 = vmatmul.mubr.f32.gmra.mxu0 %v182_v19 }
  0x42   : > { %4703 = vmatpush3.msra.mxu0 %v5512_v44  ;;  %4637 = vmatprep.mubr.f32.mxu0 %v183_v20 }
  0x43   : > { %4704 = vmatprep.subr.mxu0 %v5400_v0 }
  0x44   : > { %4705 = vmatpush3.msra.mxu0 %v5522_v45 }
  0x45   : > { %4720 = vmatprep.subr.mxu0 %v5400_v0  ;;  %4638 = vmatmul.mubr.f32.gmra.mxu0 %v184_v21 }
  0xe6   : > { %v396_v23 = vpop.f32.mrf.mxu1 }
  0xe8   : > { %v4653_v24 = vpop.f32.mrf.mxu1 }
  0xe9   : > { %v186_v24 = vld [vmem:[%s5458_s22 + $0x38] sm:$0xff] }
  0xf0   : > { %v495_v49 = vpop.f32.mrf.mxu1 }
  0xf2   : > { %v4664_v50 = vpop.f32.mrf.mxu1 }
  0xfd   : > { %v5482_v25 = vpop.f32.mrf.mxu0 }
  0xfe   : > { %v280_v57 = vadd.f32 %v5482_v25, %v5484_v26 }
  0xff   : > { %v274_v27 = vpop.f32.mrf.mxu0 }
 0x100   : > { %v275_v28 = vadd.f32 %v5484_v26, %v274_v27 }
 0x102   : > { %v400_v29 = vadd.f32 %v396_v23, %v275_v28  ;;  %v185_v23 = vld [vmem:[%s5458_s22 + $0x30] sm:$0xff] }
 0x103   : > { %4640 = vmatprep.mubr.f32.mxu0 %v185_v23 }
 0x104   : > { %5248 = vtanh.f32 %v400_v29  ;;  %4641 = vmatmul.mubr.f32.gmra.mxu0 %v186_v24 }
 0x105   : > { %4706 = vmatprep.mubr.msk.f32.mxu0 %vm5401_vm0, %v5400_v0 }
 0x111   : > { %v5249_v30 = vpop.eup %5248 }
 0x112   : > { %406 = vrot.lane.b32.xlu0 %v5249_v30, %s5402_s23  ;;  %v402_v31 = vmul.f32 0.5, %v5249_v30 }
 0x114   : > { %v403_v32 = vadd.f32 0.5, %v402_v31 }
 0x116   : > { %v404_v35 = vmul.f32 0.0, %v403_v32 }
 0x184   : > { %v407_v33 = vpop.permute.xlu0 %406 }
 0x185   : > { %v409_v34 = vmul.f32 %v407_v33, %v403_v32  ;;  %v5620_v33 = vpop.f32.mrf.mxu0 }
 0x187   : > { %411 = vrot.lane.b32.xlu0 %v409_v34, %s5403_s24  ;;  %v284_v34 = vpop.f32.mrf.mxu0 }
 0x188   : > { %v285_v50 = vadd.f32 %v5484_v26, %v284_v34 }
 0x1f9   : > { %v412_v36 = vpop.permute.xlu0 %411 }
 0x1fa   : > { %v5489_v37 = vadd.f32 %v412_v36, %v404_v35  ;;  %v5622_v35 = vpop.f32.mrf.mxu0 }
 0x1fc   : > { %5250 = vtanh.f32 %v5489_v37  ;;  %v5624_v36 = vpop.f32.mrf.mxu0 }
 0x209   : > { %v5251_v46 = vpop.eup %5250 }
 0x20a   : > { %417 = vrot.lane.b32.xlu1 %v5251_v46, %s5402_s23 }
 0x27c   : > { %v418_v47 = vpop.permute.xlu1 %417 }
 0x27d   : > { %v420_v48 = vmul.f32 %v418_v47, %v403_v32 }
 0x27f   : > { %500 = vrot.lane.b32.xlu1 %v420_v48, %s5403_s24 }
 0x2f1   : > { %v501_v51 = vpop.permute.xlu1 %500 }
 0x2f2   : > { %4674 = vmatmul.mubr.msk.f32.vlgmr.msra.gmra.mxu1 %vm326_vm1, %v501_v51 }
 0x2f3   : > { %4677 = vmatpush3.msra.mxu1 %v5460_v5  ;;  %4684 = vmatprep.mubr.msk.f32.mxu1 %vm5401_vm0, %v5400_v0 }
 0x2f4   : > { %4678 = vmatprep.subr.mxu1 %v5400_v0 }
 0x2f5   : > { %4679 = vmatpush3.msra.mxu1 %v5463_v6 }
 0x2f6   : > { %4680 = vmatprep.subr.mxu1 %v5400_v0 }
 0x2f7   : > { %4681 = vmatpush3.msra.mxu1 %v5468_v9 }
 0x2f8   : > { %4682 = vmatprep.subr.mxu1 %v5400_v0 }
 0x2f9   : > { %4683 = vmatpush3.msra.mxu1 %v5471_v11 }
 0x2fa   : > { %4685 = vmatmul.mubr.msk.f32.vlgmr.msra.gmra.mxu1 %vm326_vm1, %v501_v51  ;;  %4687 = vmatprep.subr.mxu1 %v5400_v0 }
 0x2fb   : > { %4688 = vmatpush3.msra.mxu1 %v5492_v38  ;;  %4695 = vmatprep.mubr.msk.f32.mxu1 %vm5401_vm0, %v5400_v0 }
 0x2fc   : > { %4689 = vmatprep.subr.mxu1 %v5400_v0 }
 0x2fd   : > { %4690 = vmatpush3.msra.mxu1 %v5494_v39 }
 0x2fe   : > { %4691 = vmatprep.subr.mxu1 %v5400_v0 }
 0x2ff   : > { %4692 = vmatpush3.msra.mxu1 %v5500_v41 }
 0x300   : > { %4693 = vmatprep.subr.mxu1 %v5400_v0 }
 0x301   : > { %4694 = vmatpush3.msra.mxu1 %v5508_v43 }
 0x302   : > { %4709 = vmatprep.subr.mxu1 %v5400_v0 }
 0x3b2   : > { %v570_v53 = vpop.f32.mrf.mxu1 }
 0x3b3   : > { %v571_v54 = vadd.f32 %v570_v53, %v495_v49 }
 0x3b4   : > { %v4675_v55 = vpop.f32.mrf.mxu1 }
 0x3b5   : > { %v574_v56 = vadd.f32 %v5559_v52, %v571_v54 }
 0x3b7   : > { %5252 = vtanh.f32 %v574_v56 }
 0x3ba   : > { %v662_v58 = vpop.f32.mrf.mxu1 }
 0x3bb   : > { %v666_v59 = vadd.f32 %v662_v58, %v280_v57 }
 0x3bc   : > { %v4686_v60 = vpop.f32.mrf.mxu1 }
 0x3bd   : > { %5254 = vtanh.f32 %v666_v59 }
 0x3c4   : > { %v5253_v61 = vpop.eup %5252 }
 0x3c5   : > { %580 = vrot.lane.b32.xlu0 %v5253_v61, %s5402_s23  ;;  %v576_v63 = vmul.f32 0.5, %v5253_v61 }
 0x3c7   : > { %v577_v1 = vadd.f32 0.5, %v576_v63 }
 0x3c9   : > { %v578_v12 = vmul.f32 0.0, %v577_v1 }
 0x3ca   : > { %v5255_v62 = vpop.eup %5254 }
 0x3cb   : > { %672 = vrot.lane.b32.xlu1 %v5255_v62, %s5402_s23  ;;  %v668_v4 = vmul.f32 0.5, %v5255_v62 }
 0x3cd   : > { %v669_v7 = vadd.f32 0.5, %v668_v4 }
 0x3cf   : > { %v670_v15 = vmul.f32 %v669_v7, %v5489_v37  ;;  %v5626_v37 = vpop.f32.mrf.mxu0 }
 0x3d1   : > { %v5628_v48 = vpop.f32.mrf.mxu0 }
 0x437   : > { %v581_v2 = vpop.permute.xlu0 %580 }
 0x438   : > { %v583_v3 = vmul.f32 %v581_v2, %v577_v1 }
 0x43a   : > { %585 = vrot.lane.b32.xlu0 %v583_v3, %s5403_s24 }
 0x43d   : > { %v673_v8 = vpop.permute.xlu1 %672 }
 0x43e   : > { %v675_v10 = vmul.f32 %v673_v8, %v669_v7 }
 0x440   : > { %677 = vrot.lane.b32.xlu1 %v675_v10, %s5403_s24 }
 0x4ac   : > { %v586_v13 = vpop.permute.xlu0 %585 }
 0x4ad   : > { %v5568_v14 = vadd.f32 %v586_v13, %v578_v12 }
 0x4af   : > { %5256 = vtanh.f32 %v5568_v14 }
 0x4b2   : > { %v678_v16 = vpop.permute.xlu1 %677 }
 0x4b3   : > { %v5572_v17 = vadd.f32 %v678_v16, %v670_v15 }
 0x4b5   : > { %5258 = vtanh.f32 %v5572_v17 }
 0x4bc   : > { %v5257_v22 = vpop.eup %5256 }
 0x4bd   : > { %591 = vrot.lane.b32.xlu0 %v5257_v22, %s5402_s23 }
 0x4c2   : > { %v5259_v25 = vpop.eup %5258 }
 0x4c3   : > { %683 = vrot.lane.b32.xlu1 %v5259_v25, %s5402_s23 }
 0x52f   : > { %v592_v27 = vpop.permute.xlu0 %591 }
 0x530   : > { %v594_v28 = vmul.f32 %v592_v27, %v577_v1 }
 0x532   : > { %688 = vrot.lane.b32.xlu0 %v594_v28, %s5403_s24 }
 0x535   : > { %v684_v29 = vpop.permute.xlu1 %683 }
 0x536   : > { %v686_v30 = vmul.f32 %v684_v29, %v669_v7 }
 0x538   : > { %763 = vrot.lane.b32.xlu1 %v686_v30, %s5403_s24  ;;  %v290_v30 = vadd.f32 %v5620_v33, %v5484_v26 }
 0x5a4   : > { %v689_v31 = vpop.permute.xlu0 %688 }
 0x5a5   : > { %4696 = vmatmul.mubr.msk.f32.vlgmr.msra.gmra.mxu1 %vm326_vm1, %v689_v31 }
 0x5a6   : > { %4710 = vmatpush3.msra.mxu1 %v5460_v5  ;;  %4717 = vmatprep.mubr.msk.f32.mxu1 %vm5401_vm0, %v5400_v0 }
 0x5a7   : > { %4711 = vmatprep.subr.mxu1 %v5400_v0 }
 0x5a8   : > { %4712 = vmatpush3.msra.mxu1 %v5463_v6 }
 0x5a9   : > { %4713 = vmatprep.subr.mxu1 %v5400_v0 }
 0x5aa   : > { %v764_v32 = vpop.permute.xlu1 %763  ;;  %4714 = vmatpush3.msra.mxu1 %v5468_v9 }
 0x5ab   : > { %4707 = vmatmul.mubr.msk.f32.vlgmr.msra.gmra.mxu0 %vm326_vm1, %v764_v32  ;;  %4715 = vmatprep.subr.mxu1 %v5400_v0 }
 0x5ac   : > { %4716 = vmatpush3.msra.mxu1 %v5471_v11  ;;  %4721 = vmatpush3.msra.mxu0 %v5492_v38 }
 0x5ad   : > { %4718 = vmatmul.mubr.msk.f32.vlgmr.msra.gmra.mxu1 %vm326_vm1, %v764_v32  ;;  %4731 = vmatprep.subr.mxu1 %v5400_v0 }
 0x5ae   : > { %4722 = vmatprep.subr.mxu0 %v5400_v0  ;;  %4732 = vmatpush3.msra.mxu1 %v5497_v40 }
 0x5af   : > { %4723 = vmatpush3.msra.mxu0 %v5494_v39  ;;  %4733 = vmatprep.subr.mxu1 %v5400_v0 }
 0x5b0   : > { %4724 = vmatprep.subr.mxu0 %v5400_v0  ;;  %4734 = vmatpush3.msra.mxu1 %v5504_v42 }
 0x5b1   : > { %4725 = vmatpush3.msra.mxu0 %v5500_v41  ;;  %4735 = vmatprep.subr.mxu1 %v5400_v0 }
 0x5b2   : > { %4726 = vmatprep.subr.mxu0 %v5400_v0  ;;  %4736 = vmatpush3.msra.mxu1 %v5512_v44 }
 0x5b3   : > { %4727 = vmatpush3.msra.mxu0 %v5508_v43  ;;  %4737 = vmatprep.subr.mxu1 %v5400_v0 }
 0x5b4   : > { %4728 = vmatprep.mubr.msk.f32.mxu0 %vm5401_vm0, %v5400_v0  ;;  %4738 = vmatpush3.msra.mxu1 %v5522_v45 }
 0x5b5   : > { %4739 = vmatprep.mubr.msk.f32.mxu1 %vm5401_vm0, %v5400_v0  ;;  %4742 = vmatprep.subr.mxu0 %v5400_v0 }
 0x5b6   : > { %4753 = vmatprep.subr.mxu1 %v5400_v0 }
 0x665   : > { %v758_v46 = vpop.f32.mrf.mxu1 }
 0x667   : > { %v4697_v47 = vpop.f32.mrf.mxu1 }
 0x66b   : > { %v833_v49 = vpop.f32.mrf.mxu0 }
 0x66c   : > { %v834_v51 = vadd.f32 %v833_v49, %v758_v46 }
 0x66d   : > { %v4708_v53 = vpop.f32.mrf.mxu0  ;;  %v925_v54 = vpop.f32.mrf.mxu1 }
 0x66e   : > { %v837_v55 = vadd.f32 %v5559_v52, %v834_v51  ;;  %v929_v56 = vadd.f32 %v925_v54, %v285_v50 }
 0x66f   : > { %v4719_v57 = vpop.f32.mrf.mxu1 }
 0x670   : > { %5260 = vtanh.f32 %v837_v55 }
 0x671   : > { %5262 = vtanh.f32 %v929_v56 }
 0x67d   : > { %v5261_v58 = vpop.eup %5260 }
 0x67e   : > { %v5263_v59 = vpop.eup %5262  ;;  %843 = vrot.lane.b32.xlu0 %v5261_v58, %s5402_s23  ;;  %v839_v60 = vmul.f32 0.5, %v5261_v58 }
 0x67f   : > { %935 = vrot.lane.b32.xlu1 %v5263_v59, %s5402_s23  ;;  %v931_v61 = vmul.f32 0.5, %v5263_v59 }
 0x680   : > { %v840_v62 = vadd.f32 0.5, %v839_v60 }
 0x681   : > { %v932_v1 = vadd.f32 0.5, %v931_v61 }
 0x682   : > { %v841_v7 = vmul.f32 %v840_v62, %v5568_v14 }
 0x683   : > { %v933_v10 = vmul.f32 %v932_v1, %v5572_v17 }
 0x6f0   : > { %v844_v63 = vpop.permute.xlu0 %843 }
 0x6f1   : > { %v846_v2 = vmul.f32 %v844_v63, %v840_v62  ;;  %v936_v3 = vpop.permute.xlu1 %935 }
 0x6f2   : > { %v938_v4 = vmul.f32 %v936_v3, %v932_v1 }
 0x6f3   : > { %848 = vrot.lane.b32.xlu0 %v846_v2, %s5403_s24 }
 0x6f4   : > { %940 = vrot.lane.b32.xlu1 %v938_v4, %s5403_s24 }
 0x765   : > { %v849_v8 = vpop.permute.xlu0 %848 }
 0x766   : > { %v5638_v12 = vadd.f32 %v849_v8, %v841_v7  ;;  %v941_v13 = vpop.permute.xlu1 %940 }
 0x767   : > { %v5640_v15 = vadd.f32 %v941_v13, %v933_v10 }
 0x768   : > { %5264 = vtanh.f32 %v5638_v12 }
 0x769   : > { %5266 = vtanh.f32 %v5640_v15 }
 0x775   : > { %v5265_v16 = vpop.eup %5264 }
 0x776   : > { %v5267_v18 = vpop.eup %5266  ;;  %854 = vrot.lane.b32.xlu0 %v5265_v16, %s5402_s23 }
 0x777   : > { %946 = vrot.lane.b32.xlu1 %v5267_v18, %s5402_s23  ;;  %v295_v18 = vadd.f32 %v5484_v26, %v5624_v36 }
 0x7e8   : > { %v855_v19 = vpop.permute.xlu0 %854 }
 0x7e9   : > { %v857_v14 = vmul.f32 %v855_v19, %v840_v62  ;;  %v947_v20 = vpop.permute.xlu1 %946 }
 0x7ea   : > { %v949_v21 = vmul.f32 %v947_v20, %v932_v1 }
 0x7eb   : > { %951 = vrot.lane.b32.xlu0 %v857_v14, %s5403_s24 }
 0x7ec   : > { %1026 = vrot.lane.b32.xlu1 %v949_v21, %s5403_s24 }
 0x85d   : > { %v952_v17 = vpop.permute.xlu0 %951 }
 0x85e   : > { %v1027_v22 = vpop.permute.xlu1 %1026  ;;  %4729 = vmatmul.mubr.msk.f32.vlgmr.msra.gmra.mxu0 %vm326_vm1, %v952_v17 }
 0x85f   : > { %4740 = vmatmul.mubr.msk.f32.vlgmr.msra.gmra.mxu1 %vm326_vm1, %v1027_v22  ;;  %4743 = vmatpush3.msra.mxu0 %v5460_v5 }
 0x860   : > { %4744 = vmatprep.subr.mxu0 %v5400_v0  ;;  %4750 = vmatprep.mubr.msk.f32.mxu0 %vm5401_vm0, %v5400_v0 }
 0x861   : > { %4745 = vmatpush3.msra.mxu0 %v5463_v6  ;;  %4754 = vmatpush3.msra.mxu1 %v5492_v38 }
 0x862   : > { %4746 = vmatprep.subr.mxu0 %v5400_v0  ;;  %4755 = vmatprep.subr.mxu1 %v5400_v0 }
 0x863   : > { %4747 = vmatpush3.msra.mxu0 %v5468_v9  ;;  %4756 = vmatpush3.msra.mxu1 %v5494_v39 }
 0x864   : > { %4748 = vmatprep.subr.mxu0 %v5400_v0  ;;  %4757 = vmatprep.subr.mxu1 %v5400_v0 }
 0x865   : > { %4749 = vmatpush3.msra.mxu0 %v5471_v11  ;;  %4758 = vmatpush3.msra.mxu1 %v5500_v41 }
 0x866   : > { %4751 = vmatmul.mubr.msk.f32.vlgmr.msra.gmra.mxu0 %vm326_vm1, %v1027_v22  ;;  %4759 = vmatprep.subr.mxu1 %v5400_v0 }
 0x867   : > { %4764 = vmatprep.subr.mxu0 %v5400_v0  ;;  %4760 = vmatpush3.msra.mxu1 %v5508_v43 }
 0x868   : > { %4765 = vmatpush3.msra.mxu0 %v5497_v40  ;;  %4761 = vmatprep.mubr.msk.f32.mxu1 %vm5401_vm0, %v5400_v0 }
 0x869   : > { %4766 = vmatprep.subr.mxu0 %v5400_v0  ;;  %4775 = vmatprep.subr.mxu1 %v5400_v0 }
 0x86a   : > { %4767 = vmatpush3.msra.mxu0 %v5504_v42  ;;  %4772 = vmatprep.mubr.msk.f32.mxu0 %vm5401_vm0, %v5400_v0 }
 0x86b   : > { %4768 = vmatprep.subr.mxu0 %v5400_v0 }
 0x86c   : > { %4769 = vmatpush3.msra.mxu0 %v5512_v44 }
 0x86d   : > { %4770 = vmatprep.subr.mxu0 %v5400_v0 }
 0x86e   : > { %4771 = vmatpush3.msra.mxu0 %v5522_v45 }
 0x86f   : > { %4786 = vmatprep.subr.mxu0 %v5400_v0 }
 0x91e   : > { %v1021_v23 = vpop.f32.mrf.mxu0 }
 0x91f   : > { %v1096_v24 = vpop.f32.mrf.mxu1 }
 0x920   : > { %v1097_v25 = vadd.f32 %v1096_v24, %v1021_v23  ;;  %v4730_v27 = vpop.f32.mrf.mxu0 }
 0x921   : > { %v4741_v28 = vpop.f32.mrf.mxu1 }
 0x922   : > { %v1100_v29 = vadd.f32 %v5559_v52, %v1097_v25 }
 0x924   : > { %5268 = vtanh.f32 %v1100_v29 }
 0x926   : > { %v1188_v31 = vpop.f32.mrf.mxu0 }
 0x927   : > { %v1192_v32 = vadd.f32 %v1188_v31, %v290_v30 }
 0x928   : > { %v4752_v34 = vpop.f32.mrf.mxu0 }
 0x929   : > { %5270 = vtanh.f32 %v1192_v32 }
 0x931   : > { %v5269_v46 = vpop.eup %5268 }
 0x932   : > { %1106 = vrot.lane.b32.xlu0 %v5269_v46, %s5402_s23  ;;  %v1102_v49 = vmul.f32 0.5, %v5269_v46 }
 0x934   : > { %v1103_v50 = vadd.f32 0.5, %v1102_v49 }
 0x936   : > { %v5271_v47 = vpop.eup %5270  ;;  %v1104_v57 = vmul.f32 %v1103_v50, %v5638_v12 }
 0x937   : > { %1198 = vrot.lane.b32.xlu1 %v5271_v47, %s5402_s23  ;;  %v1194_v53 = vmul.f32 0.5, %v5271_v47 }
 0x939   : > { %v1195_v55 = vadd.f32 0.5, %v1194_v53 }
 0x93b   : > { %v1196_v60 = vmul.f32 %v1195_v55, %v5640_v15 }
 0x9a4   : > { %v1107_v51 = vpop.permute.xlu0 %1106 }
 0x9a5   : > { %v1109_v54 = vmul.f32 %v1107_v51, %v1103_v50 }
 0x9a7   : > { %1111 = vrot.lane.b32.xlu0 %v1109_v54, %s5403_s24 }
 0x9a9   : > { %v1199_v56 = vpop.permute.xlu1 %1198 }
 0x9aa   : > { %v1201_v33 = vmul.f32 %v1199_v56, %v1195_v55 }
 0x9ac   : > { %1203 = vrot.lane.b32.xlu1 %v1201_v33, %s5403_s24 }
 0xa19   : > { %v1112_v58 = vpop.permute.xlu0 %1111 }
 0xa1a   : > { %v5689_v59 = vadd.f32 %v1112_v58, %v1104_v57 }
 0xa1c   : > { %5272 = vtanh.f32 %v5689_v59 }
 0xa1e   : > { %v1204_v61 = vpop.permute.xlu1 %1203 }
 0xa1f   : > { %v5693_v62 = vadd.f32 %v1204_v61, %v1196_v60 }
 0xa21   : > { %5274 = vtanh.f32 %v5693_v62 }
 0xa29   : > { %v5273_v63 = vpop.eup %5272 }
 0xa2a   : > { %1117 = vrot.lane.b32.xlu0 %v5273_v63, %s5402_s23 }
 0xa2e   : > { %v5275_v1 = vpop.eup %5274 }
 0xa2f   : > { %1209 = vrot.lane.b32.xlu1 %v5275_v1, %s5402_s23 }
 0xa9c   : > { %v1118_v2 = vpop.permute.xlu0 %1117 }
 0xa9d   : > { %v1120_v3 = vmul.f32 %v1118_v2, %v1103_v50  ;;  %v300_v2 = vadd.f32 %v5622_v35, %v5484_v26 }
 0xa9f   : > { %1214 = vrot.lane.b32.xlu0 %v1120_v3, %s5403_s24 }
 0xaa1   : > { %v1210_v4 = vpop.permute.xlu1 %1209 }
 0xaa2   : > { %v1212_v7 = vmul.f32 %v1210_v4, %v1195_v55 }
 0xaa4   : > { %1289 = vrot.lane.b32.xlu1 %v1212_v7, %s5403_s24 }
 0xb11   : > { %v1215_v8 = vpop.permute.xlu0 %1214 }
 0xb12   : > { %4762 = vmatmul.mubr.msk.f32.vlgmr.msra.gmra.mxu1 %vm326_vm1, %v1215_v8 }
 0xb13   : > { %4776 = vmatpush3.msra.mxu1 %v5460_v5  ;;  %4783 = vmatprep.mubr.msk.f32.mxu1 %vm5401_vm0, %v5400_v0 }
 0xb14   : > { %4777 = vmatprep.subr.mxu1 %v5400_v0 }
 0xb15   : > { %4778 = vmatpush3.msra.mxu1 %v5463_v6 }
 0xb16   : > { %4779 = vmatprep.subr.mxu1 %v5400_v0  ;;  %v1290_v10 = vpop.permute.xlu1 %1289 }
 0xb17   : > { %4780 = vmatpush3.msra.mxu1 %v5468_v9  ;;  %4773 = vmatmul.mubr.msk.f32.vlgmr.msra.gmra.mxu0 %vm326_vm1, %v1290_v10 }
 0xb18   : > { %4781 = vmatprep.subr.mxu1 %v5400_v0  ;;  %4787 = vmatpush3.msra.mxu0 %v5492_v38 }
 0xb19   : > { %4782 = vmatpush3.msra.mxu1 %v5471_v11  ;;  %4788 = vmatprep.subr.mxu0 %v5400_v0 }
 0xb1a   : > { %4784 = vmatmul.mubr.msk.f32.vlgmr.msra.gmra.mxu1 %vm326_vm1, %v1290_v10  ;;  %4797 = vmatprep.subr.mxu1 %v5400_v0 }
 0xb1b   : > { %4798 = vmatpush3.msra.mxu1 %v5497_v40  ;;  %4789 = vmatpush3.msra.mxu0 %v5494_v39 }
 0xb1c   : > { %4799 = vmatprep.subr.mxu1 %v5400_v0  ;;  %4790 = vmatprep.subr.mxu0 %v5400_v0 }
 0xb1d   : > { %4800 = vmatpush3.msra.mxu1 %v5504_v42  ;;  %4791 = vmatpush3.msra.mxu0 %v5500_v41 }
 0xb1e   : > { %4801 = vmatprep.subr.mxu1 %v5400_v0  ;;  %4792 = vmatprep.subr.mxu0 %v5400_v0 }
 0xb1f   : > { %4802 = vmatpush3.msra.mxu1 %v5512_v44  ;;  %4793 = vmatpush3.msra.mxu0 %v5508_v43 }
 0xb20   : > { %4803 = vmatprep.subr.mxu1 %v5400_v0  ;;  %4794 = vmatprep.mubr.msk.f32.mxu0 %vm5401_vm0, %v5400_v0 }
 0xb21   : > { %4804 = vmatpush3.msra.mxu1 %v5522_v45  ;;  %4805 = vmatprep.mubr.msk.f32.mxu1 %vm5401_vm0, %v5400_v0 }
 0xb22   : > { %4808 = vmatprep.subr.mxu0 %v5400_v0  ;;  %4819 = vmatprep.subr.mxu1 %v5400_v0 }
 0xbd2   : > { %v1284_v12 = vpop.f32.mrf.mxu1 }
 0xbd4   : > { %v4763_v13 = vpop.f32.mrf.mxu1 }
 0xbd7   : > { %v1359_v15 = vpop.f32.mrf.mxu0 }
 0xbd8   : > { %v1360_v16 = vadd.f32 %v1359_v15, %v1284_v12 }
 0xbd9   : > { %v4774_v19 = vpop.f32.mrf.mxu0 }
 0xbda   : > { %v1363_v14 = vadd.f32 %v5559_v52, %v1360_v16  ;;  %v1451_v20 = vpop.f32.mrf.mxu1 }
 0xbdb   : > { %v1455_v21 = vadd.f32 %v1451_v20, %v295_v18 }
 0xbdc   : > { %5276 = vtanh.f32 %v1363_v14  ;;  %v4785_v17 = vpop.f32.mrf.mxu1 }
 0xbdd   : > { %5278 = vtanh.f32 %v1455_v21 }
 0xbe9   : > { %v5277_v22 = vpop.eup %5276 }
 0xbea   : > { %v5279_v23 = vpop.eup %5278  ;;  %1369 = vrot.lane.b32.xlu0 %v5277_v22, %s5402_s23  ;;  %v1365_v24 = vmul.f32 0.5, %v5277_v22 }
 0xbeb   : > { %1461 = vrot.lane.b32.xlu1 %v5279_v23, %s5402_s23  ;;  %v1457_v25 = vmul.f32 0.5, %v5279_v23 }
 0xbec   : > { %v1366_v27 = vadd.f32 0.5, %v1365_v24 }
 0xbed   : > { %v1458_v29 = vadd.f32 0.5, %v1457_v25 }
 0xbee   : > { %v1367_v32 = vmul.f32 %v1366_v27, %v5689_v59 }
 0xbef   : > { %v1459_v46 = vmul.f32 %v1458_v29, %v5693_v62 }
 0xc5c   : > { %v1370_v28 = vpop.permute.xlu0 %1369 }
 0xc5d   : > { %v1372_v36 = vmul.f32 %v1370_v28, %v1366_v27  ;;  %v1462_v30 = vpop.permute.xlu1 %1461 }
 0xc5e   : > { %v1464_v31 = vmul.f32 %v1462_v30, %v1458_v29 }
 0xc5f   : > { %1374 = vrot.lane.b32.xlu0 %v1372_v36, %s5403_s24 }
 0xc60   : > { %1466 = vrot.lane.b32.xlu1 %v1464_v31, %s5403_s24 }
 0xcd1   : > { %v1375_v34 = vpop.permute.xlu0 %1374 }
 0xcd2   : > { %v5742_v47 = vadd.f32 %v1375_v34, %v1367_v32  ;;  %v1467_v49 = vpop.permute.xlu1 %1466 }
 0xcd3   : > { %v5744_v50 = vadd.f32 %v1467_v49, %v1459_v46 }
 0xcd4   : > { %5280 = vtanh.f32 %v5742_v47 }
 0xcd5   : > { %5282 = vtanh.f32 %v5744_v50 }
 0xce1   : > { %v5281_v51 = vpop.eup %5280 }
 0xce2   : > { %v5283_v53 = vpop.eup %5282  ;;  %1380 = vrot.lane.b32.xlu0 %v5281_v51, %s5402_s23 }
 0xce3   : > { %1472 = vrot.lane.b32.xlu1 %v5283_v53, %s5402_s23 }
 0xd54   : > { %v1381_v54 = vpop.permute.xlu0 %1380 }
 0xd55   : > { %v1383_v55 = vmul.f32 %v1381_v54, %v1366_v27  ;;  %v1473_v56 = vpop.permute.xlu1 %1472 }
 0xd56   : > { %v1475_v33 = vmul.f32 %v1473_v56, %v1458_v29 }
 0xd57   : > { %1477 = vrot.lane.b32.xlu0 %v1383_v55, %s5403_s24 }
 0xd58   : > { %1552 = vrot.lane.b32.xlu1 %v1475_v33, %s5403_s24 }
 0xdc9   : > { %v1478_v57 = vpop.permute.xlu0 %1477 }
 0xdca   : > { %v1553_v58 = vpop.permute.xlu1 %1552  ;;  %4795 = vmatmul.mubr.msk.f32.vlgmr.msra.gmra.mxu0 %vm326_vm1, %v1478_v57 }
 0xdcb   : > { %4806 = vmatmul.mubr.msk.f32.vlgmr.msra.gmra.mxu1 %vm326_vm1, %v1553_v58  ;;  %4809 = vmatpush3.msra.mxu0 %v5460_v5 }
 0xdcc   : > { %4810 = vmatprep.subr.mxu0 %v5400_v0  ;;  %4816 = vmatprep.mubr.msk.f32.mxu0 %vm5401_vm0, %v5400_v0 }
 0xdcd   : > { %4811 = vmatpush3.msra.mxu0 %v5463_v6  ;;  %4820 = vmatpush3.msra.mxu1 %v5492_v38 }
 0xdce   : > { %4812 = vmatprep.subr.mxu0 %v5400_v0  ;;  %4821 = vmatprep.subr.mxu1 %v5400_v0 }
 0xdcf   : > { %4813 = vmatpush3.msra.mxu0 %v5468_v9  ;;  %4822 = vmatpush3.msra.mxu1 %v5494_v39 }
 0xdd0   : > { %4814 = vmatprep.subr.mxu0 %v5400_v0  ;;  %4823 = vmatprep.subr.mxu1 %v5400_v0 }
 0xdd1   : > { %4815 = vmatpush3.msra.mxu0 %v5471_v11  ;;  %4824 = vmatpush3.msra.mxu1 %v5500_v41 }
 0xdd2   : > { %4817 = vmatmul.mubr.msk.f32.vlgmr.msra.gmra.mxu0 %vm326_vm1, %v1553_v58  ;;  %4825 = vmatprep.subr.mxu1 %v5400_v0 }
 0xdd3   : > { %4830 = vmatprep.subr.mxu0 %v5400_v0  ;;  %4826 = vmatpush3.msra.mxu1 %v5508_v43 }
 0xdd4   : > { %4831 = vmatpush3.msra.mxu0 %v5497_v40  ;;  %4827 = vmatprep.mubr.msk.f32.mxu1 %vm5401_vm0, %v5400_v0 }
 0xdd5   : > { %4832 = vmatprep.subr.mxu0 %v5400_v0  ;;  %4841 = vmatprep.subr.mxu1 %v5400_v0 }
 0xdd6   : > { %4833 = vmatpush3.msra.mxu0 %v5504_v42  ;;  %4838 = vmatprep.mubr.msk.f32.mxu0 %vm5401_vm0, %v5400_v0 }
 0xdd7   : > { %4834 = vmatprep.subr.mxu0 %v5400_v0 }
 0xdd8   : > { %4835 = vmatpush3.msra.mxu0 %v5512_v44 }
 0xdd9   : > { %4836 = vmatprep.subr.mxu0 %v5400_v0 }
 0xdda   : > { %4837 = vmatpush3.msra.mxu0 %v5522_v45 }
 0xddb   : > { %4852 = vmatprep.subr.mxu0 %v5400_v0 }
 0xe8a   : > { %v1547_v59 = vpop.f32.mrf.mxu0 }
 0xe8b   : > { %v1622_v60 = vpop.f32.mrf.mxu1 }
 0xe8c   : > { %v1623_v61 = vadd.f32 %v1622_v60, %v1547_v59  ;;  %v4796_v62 = vpop.f32.mrf.mxu0 }
 0xe8d   : > { %v4807_v63 = vpop.f32.mrf.mxu1 }
 0xe8e   : > { %v1626_v1 = vadd.f32 %v5559_v52, %v1623_v61 }
 0xe90   : > { %5284 = vtanh.f32 %v1626_v1 }
 0xe92   : > { %v1714_v3 = vpop.f32.mrf.mxu0 }
 0xe93   : > { %v1718_v4 = vadd.f32 %v1714_v3, %v300_v2  ;;  %v5344_v3 = vld [vmem:[#allocation3 + $0x98] sm:$0xff] }
 0xe94   : > { %v4818_v7 = vpop.f32.mrf.mxu0 }
 0xe95   : > { %5286 = vtanh.f32 %v1718_v4  ;;  %v5345_v4 = vld [vmem:[#allocation3 + $0x90] sm:$0xff]  ;;  %v5346_v7 = vld [vmem:[#allocation3 + $0xe0] sm:$0xff] }
 0xe9d   : > { %v5285_v8 = vpop.eup %5284 }
 0xe9e   : > { %1632 = vrot.lane.b32.xlu0 %v5285_v8, %s5402_s23  ;;  %v1628_v12 = vmul.f32 0.5, %v5285_v8  ;;  %v5347_v8 = vld [vmem:[#allocation3 + $0x88] sm:$0xff] }
 0xea0   : > { %v1629_v13 = vadd.f32 0.5, %v1628_v12  ;;  %v5349_v12 = vld [vmem:[#allocation3 + $0x80] sm:$0xff] }
 0xea2   : > { %v5287_v10 = vpop.eup %5286  ;;  %v1630_v20 = vmul.f32 %v1629_v13, %v5742_v47 }
 0xea3   : > { %1724 = vrot.lane.b32.xlu1 %v5287_v10, %s5402_s23  ;;  %v1720_v16 = vmul.f32 0.5, %v5287_v10  ;;  %v5348_v10 = vld [vmem:[#allocation3 + $0xd8] sm:$0xff] }
 0xea5   : > { %v1721_v19 = vadd.f32 0.5, %v1720_v16  ;;  %v5352_v16 = vld [vmem:[#allocation3 + $0xc8] sm:$0xff] }
 0xea7   : > { %v1722_v22 = vmul.f32 %v1721_v19, %v5744_v50 }
 0xf10   : > { %v1633_v15 = vpop.permute.xlu0 %1632 }
 0xf11   : > { %v1635_v18 = vmul.f32 %v1633_v15, %v1629_v13  ;;  %v5351_v15 = vld [vmem:[#allocation3 + $0xc0] sm:$0xff] }
 0xf13   : > { %1637 = vrot.lane.b32.xlu0 %v1635_v18, %s5403_s24  ;;  %v5353_v18 = vld [vmem:[#allocation3 + $0xb8] sm:$0xff] }
 0xf15   : > { %v1725_v14 = vpop.permute.xlu1 %1724 }
 0xf16   : > { %v1727_v35 = vmul.f32 %v1725_v14, %v1721_v19  ;;  %v5355_v14 = vld [vmem:[#allocation3 + $0xa8] sm:$0xff] }
 0xf18   : > { %1729 = vrot.lane.b32.xlu1 %v1727_v35, %s5403_s24 }
 0xf85   : > { %v1638_v21 = vpop.permute.xlu0 %1637 }
 0xf86   : > { %v5793_v17 = vadd.f32 %v1638_v21, %v1630_v20 }
 0xf88   : > { %5288 = vtanh.f32 %v5793_v17 }
 0xf8a   : > { %v1730_v23 = vpop.permute.xlu1 %1729 }
 0xf8b   : > { %v5797_v24 = vadd.f32 %v1730_v23, %v1722_v22 }
 0xf8d   : > { %5290 = vtanh.f32 %v5797_v24 }
 0xf95   : > { %v5289_v25 = vpop.eup %5288 }
 0xf96   : > { %1643 = vrot.lane.b32.xlu0 %v5289_v25, %s5402_s23 }
 0xf9a   : > { %v5291_v27 = vpop.eup %5290 }
 0xf9b   : > { %1735 = vrot.lane.b32.xlu1 %v5291_v27, %s5402_s23 }
0x1008   : > { %v1644_v28 = vpop.permute.xlu0 %1643 }
0x1009   : > { %v1646_v29 = vmul.f32 %v1644_v28, %v1629_v13  ;;  %v5350_v13 = vld [vmem:[#allocation3 + $0xd0] sm:$0xff] }
0x100b   : > { %1740 = vrot.lane.b32.xlu0 %v1646_v29, %s5403_s24 }
0x100d   : > { %v1736_v36 = vpop.permute.xlu1 %1735 }
0x100e   : > { %v1738_v30 = vmul.f32 %v1736_v36, %v1721_v19  ;;  %v5354_v19 = vld [vmem:[#allocation3 + $0xb0] sm:$0xff] }
0x1010   : > { %1815 = vrot.lane.b32.xlu1 %v1738_v30, %s5403_s24 }
0x107d   : > { %v1741_v31 = vpop.permute.xlu0 %1740 }
0x107e   : > { %4828 = vmatmul.mubr.msk.f32.vlgmr.msra.gmra.mxu1 %vm326_vm1, %v1741_v31 }
0x107f   : > { %4842 = vmatpush3.msra.mxu1 %v5460_v5  ;;  %4849 = vmatprep.mubr.msk.f32.mxu1 %vm5401_vm0, %v5400_v0 }
0x1080   : > { %4843 = vmatprep.subr.mxu1 %v5400_v0 }
0x1081   : > { %4844 = vmatpush3.msra.mxu1 %v5463_v6 }
0x1082   : > { %4845 = vmatprep.subr.mxu1 %v5400_v0  ;;  %v1816_v32 = vpop.permute.xlu1 %1815 }
0x1083   : > { %4846 = vmatpush3.msra.mxu1 %v5468_v9  ;;  %4839 = vmatmul.mubr.msk.f32.vlgmr.msra.gmra.mxu0 %vm326_vm1, %v1816_v32 }
0x1084   : > { %4847 = vmatprep.subr.mxu1 %v5400_v0  ;;  %4853 = vmatpush3.msra.mxu0 %v5492_v38  ;;  %v305_v38 = vadd.f32 %v5484_v26, %v5628_v48 }
0x1085   : > { %4848 = vmatpush3.msra.mxu1 %v5471_v11  ;;  %4854 = vmatprep.subr.mxu0 %v5400_v0 }
0x1086   : > { %4850 = vmatmul.mubr.msk.f32.vlgmr.msra.gmra.mxu1 %vm326_vm1, %v1816_v32  ;;  %4863 = vmatprep.subr.mxu1 %v5400_v0 }
0x1087   : > { %4864 = vmatpush3.msra.mxu1 %v5497_v40  ;;  %4855 = vmatpush3.msra.mxu0 %v5494_v39 }
0x1088   : > { %4865 = vmatprep.subr.mxu1 %v5400_v0  ;;  %4856 = vmatprep.subr.mxu0 %v5400_v0 }
0x1089   : > { %4866 = vmatpush3.msra.mxu1 %v5504_v42  ;;  %4857 = vmatpush3.msra.mxu0 %v5500_v41 }
0x108a   : > { %4867 = vmatprep.subr.mxu1 %v5400_v0  ;;  %4858 = vmatprep.subr.mxu0 %v5400_v0 }
0x108b   : > { %4868 = vmatpush3.msra.mxu1 %v5512_v44  ;;  %4859 = vmatpush3.msra.mxu0 %v5508_v43 }
0x108c   : > { %4869 = vmatprep.subr.mxu1 %v5400_v0  ;;  %4860 = vmatprep.mubr.msk.f32.mxu0 %vm5401_vm0, %v5400_v0 }
0x108d   : > { %4870 = vmatpush3.msra.mxu1 %v5522_v45  ;;  %4871 = vmatprep.mubr.msk.f32.mxu1 %vm5401_vm0, %v5400_v0 }
0x108e   : > { %4874 = vmatprep.subr.mxu0 %v5400_v0  ;;  %4885 = vmatprep.subr.mxu1 %v5400_v0 }
0x113e   : > { %v1810_v5 = vpop.f32.mrf.mxu1 }
0x1140   : > { %v4829_v6 = vpop.f32.mrf.mxu1 }
0x1143   : > { %v1885_v9 = vpop.f32.mrf.mxu0 }
0x1144   : > { %v1886_v11 = vadd.f32 %v1885_v9, %v1810_v5 }
0x1145   : > { %v4840_v39 = vpop.f32.mrf.mxu0 }
0x1146   : > { %v1889_v40 = vadd.f32 %v5559_v52, %v1886_v11  ;;  %v1977_v41 = vpop.f32.mrf.mxu1 }
0x1147   : > { %v1981_v42 = vadd.f32 %v1977_v41, %v305_v38 }
0x1148   : > { %5292 = vtanh.f32 %v1889_v40  ;;  %v4851_v43 = vpop.f32.mrf.mxu1 }
0x1149   : > { %5294 = vtanh.f32 %v1981_v42 }
0x1155   : > { %v5293_v44 = vpop.eup %5292 }
0x1156   : > { %v5295_v45 = vpop.eup %5294  ;;  %1895 = vrot.lane.b32.xlu0 %v5293_v44, %s5402_s23  ;;  %v1891_v34 = vmul.f32 0.5, %v5293_v44 }
0x1157   : > { %1987 = vrot.lane.b32.xlu1 %v5295_v45, %s5402_s23  ;;  %v1983_v46 = vmul.f32 0.5, %v5295_v45 }
0x1158   : > { %v1892_v47 = vadd.f32 0.5, %v1891_v34 }
0x1159   : > { %v1984_v50 = vadd.f32 0.5, %v1983_v46 }
0x115a   : > { %v1893_v53 = vmul.f32 %v1892_v47, %v5793_v17 }
0x115b   : > { %v1985_v55 = vmul.f32 %v1984_v50, %v5797_v24  ;;  %v5356_v24 = vld [vmem:[#allocation3 + $0xa0] ss:$0 sm:$0xff] }
0x115c   : > { %v310_v25 = vadd.f32 %v5356_v24, %v5626_v37 }
0x11c8   : > { %v1896_v49 = vpop.permute.xlu0 %1895 }
0x11c9   : > { %v1898_v26 = vmul.f32 %v1896_v49, %v1892_v47  ;;  %v1988_v48 = vpop.permute.xlu1 %1987 }
0x11ca   : > { %v1990_v51 = vmul.f32 %v1988_v48, %v1984_v50  ;;  %v5898_v48 = vld [vmem:[#allocation3 + $0x180] sm:$0xff] }
0x11cb   : > { %1900 = vrot.lane.b32.xlu0 %v1898_v26, %s5403_s24 }
0x11cc   : > { %1992 = vrot.lane.b32.xlu1 %v1990_v51, %s5403_s24  ;;  %v5904_v51 = vld [vmem:[#allocation3 + $0x178] sm:$0xff] }
0x123d   : > { %v1901_v54 = vpop.permute.xlu0 %1900 }
0x123e   : > { %v5846_v56 = vadd.f32 %v1901_v54, %v1893_v53  ;;  %v1993_v33 = vpop.permute.xlu1 %1992  ;;  %v5907_v53 = vld [vmem:[#allocation3 + $0x168] sm:$0xff] }
0x123f   : > { %v5848_v57 = vadd.f32 %v1993_v33, %v1985_v55  ;;  %v5910_v55 = vld [vmem:[#allocation3 + $0x170] sm:$0xff]  ;;  %v5920_v33 = vld [vmem:[#allocation3 + $0x158] sm:$0xff] }
0x1240   : > { %5296 = vtanh.f32 %v5846_v56 }
0x1241   : > { %5298 = vtanh.f32 %v5848_v57 }
0x124d   : > { %v5297_v58 = vpop.eup %5296 }
0x124e   : > { %v5299_v59 = vpop.eup %5298  ;;  %1906 = vrot.lane.b32.xlu0 %v5297_v58, %s5402_s23  ;;  %v5932_v58 = vld [vmem:[#allocation3 + $0x148] sm:$0xff] }
0x124f   : > { %1998 = vrot.lane.b32.xlu1 %v5299_v59, %s5402_s23  ;;  %v5938_v59 = vld [vmem:[#allocation3 + $0x140] sm:$0xff] }
0x12c0   : > { %v1907_v60 = vpop.permute.xlu0 %1906 }
0x12c1   : > { %v1909_v61 = vmul.f32 %v1907_v60, %v1892_v47  ;;  %v1999_v62 = vpop.permute.xlu1 %1998  ;;  %v5942_v60 = vld [vmem:[#allocation3 + $0x138] sm:$0xff] }
0x12c2   : > { %v2001_v63 = vmul.f32 %v1999_v62, %v1984_v50  ;;  %v5895_v50 = vld [vmem:[#allocation3 + $0x188] sm:$0xff] }
0x12c3   : > { %2003 = vrot.lane.b32.xlu0 %v1909_v61, %s5403_s24  ;;  %v5946_v61 = vld [vmem:[#allocation3 + $0x130] sm:$0xff]  ;;  %v5950_v62 = vld [vmem:[#allocation3 + $0x128] sm:$0xff] }
0x12c4   : > { %2078 = vrot.lane.b32.xlu1 %v2001_v63, %s5403_s24  ;;  %v5954_v63 = vld [vmem:[#allocation3 + $0x120] sm:$0xff] }
0x1335   : > { %v2004_v1 = vpop.permute.xlu0 %2003 }
0x1336   : > { %v2079_v2 = vpop.permute.xlu1 %2078  ;;  %4861 = vmatmul.mubr.msk.f32.vlgmr.msra.gmra.mxu0 %vm326_vm1, %v2004_v1  ;;  %v5958_v1 = vld [vmem:[#allocation3 + $0x118] sm:$0xff] }
0x1337   : > { %4872 = vmatmul.mubr.msk.f32.vlgmr.msra.gmra.mxu1 %vm326_vm1, %v2079_v2  ;;  %4875 = vmatpush3.msra.mxu0 %v5344_v3  ;;  %v5966_v3 = vld [vmem:[#allocation3 + $0x108] sm:$0xff] }
0x1338   : > { %4876 = vmatprep.subr.mxu0 %v5400_v0  ;;  %4882 = vmatprep.mubr.msk.f32.mxu0 %vm5401_vm0, %v5400_v0 }
0x1339   : > { %4877 = vmatpush3.msra.mxu0 %v5345_v4  ;;  %4886 = vmatpush3.msra.mxu1 %v5346_v7  ;;  %v5970_v4 = vld [vmem:[#allocation3 + $0x100] sm:$0xff]  ;;  %v5974_v7 = vld [vmem:[#allocation3 + $0xf8] sm:$0xff] }
0x133a   : > { %4878 = vmatprep.subr.mxu0 %v5400_v0  ;;  %4887 = vmatprep.subr.mxu1 %v5400_v0 }
0x133b   : > { %4879 = vmatpush3.msra.mxu0 %v5347_v8  ;;  %4888 = vmatpush3.msra.mxu1 %v5348_v10  ;;  %v5978_v8 = vld [vmem:[#allocation3 + $0xf0] sm:$0xff]  ;;  %v5357_v10 = vld [vmem:[%s5458_s22 + $0x38] sm:$0xff] }
0x133c   : > { %4880 = vmatprep.subr.mxu0 %v5400_v0  ;;  %4889 = vmatprep.subr.mxu1 %v5400_v0 }
0x133d   : > { %4881 = vmatpush3.msra.mxu0 %v5349_v12  ;;  %4890 = vmatpush3.msra.mxu1 %v5350_v13 }
0x133e   : > { %4883 = vmatmul.mubr.msk.f32.vlgmr.msra.gmra.mxu0 %vm326_vm1, %v2079_v2  ;;  %4896 = vmatprep.subr.mxu0 %v5400_v0  ;;  %v5962_v2 = vld [vmem:[#allocation3 + $0x110] sm:$0xff] }
0x133f   : > { %4891 = vmatprep.subr.mxu1 %v5400_v0  ;;  %4897 = vmatpush3.msra.mxu0 %v5351_v15 }
0x1340   : > { %4892 = vmatpush3.msra.mxu1 %v5352_v16  ;;  %4898 = vmatprep.subr.mxu0 %v5400_v0 }
0x1341   : > { %4893 = vmatprep.mubr.msk.f32.mxu1 %vm5401_vm0, %v5400_v0  ;;  %4899 = vmatpush3.msra.mxu0 %v5353_v18 }
0x1342   : > { %4907 = vmatprep.subr.mxu1 %v5400_v0  ;;  %4900 = vmatprep.subr.mxu0 %v5400_v0 }
0x1343   : > { %4901 = vmatpush3.msra.mxu0 %v5354_v19  ;;  %4904 = vmatprep.mubr.msk.f32.mxu0 %vm5401_vm0, %v5400_v0  ;;  %v5358_v19 = vld [vmem:[#allocation3 + $0xe8] ss:$0 sm:$0xff] }
0x1344   : > { %4902 = vmatprep.subr.mxu0 %v5400_v0 }
0x1345   : > { %4903 = vmatpush3.msra.mxu0 %v5355_v14 }
0x1346   : > { %4918 = vmatprep.subr.mxu0 %v5400_v0 }
0x13f6   : > { %v2073_v35 = vpop.f32.mrf.mxu0 }
0x13f7   : > { %v2148_v20 = vpop.f32.mrf.mxu1 }
0x13f8   : > { %v2149_v21 = vadd.f32 %v2148_v20, %v2073_v35  ;;  %v4862_v17 = vpop.f32.mrf.mxu0 }
0x13f9   : > { %v4873_v22 = vpop.f32.mrf.mxu1  ;;  %v6020_v17 = vld [vmem:[#allocation3 + $0x190] ss:$0 sm:$0xff] }
0x13fa   : > { %v2152_v23 = vadd.f32 %v5559_v52, %v2149_v21 }
0x13fc   : > { %5300 = vtanh.f32 %v2152_v23 }
0x13fe   : > { %v2240_v27 = vpop.f32.mrf.mxu0 }
0x13ff   : > { %v2244_v28 = vadd.f32 %v2240_v27, %v310_v25 }
0x1400   : > { %v4884_v29 = vpop.f32.mrf.mxu0 }
0x1401   : > { %5302 = vtanh.f32 %v2244_v28 }
0x1409   : > { %v5301_v36 = vpop.eup %5300 }
0x140a   : > { %2158 = vrot.lane.b32.xlu1 %v5301_v36, %s5402_s23  ;;  %v2154_v31 = vmul.f32 0.5, %v5301_v36 }
0x140c   : > { %v2155_v32 = vadd.f32 0.5, %v2154_v31 }
0x140e   : > { %v5303_v30 = vpop.eup %5302  ;;  %v2156_v38 = vmul.f32 %v2155_v32, %v5846_v56  ;;  %v5914_v56 = vld [vmem:[#allocation3 + $0x160] sm:$0xff] }
0x140f   : > { %2250 = vrot.lane.b32.xlu0 %v5303_v30, %s5402_s23  ;;  %v2246_v6 = vmul.f32 0.5, %v5303_v30 }
0x1411   : > { %v2247_v52 = vadd.f32 0.5, %v2246_v6 }
0x1413   : > { %v2248_v41 = vmul.f32 %v2247_v52, %v5848_v57  ;;  %v5925_v57 = vld [vmem:[#allocation3 + $0x150] sm:$0xff] }
0x147c   : > { %v2159_v5 = vpop.permute.xlu1 %2158 }
0x147d   : > { %v2161_v9 = vmul.f32 %v2159_v5, %v2155_v32 }
0x147f   : > { %2163 = vrot.lane.b32.xlu1 %v2161_v9, %s5403_s24 }
0x1481   : > { %v2251_v11 = vpop.permute.xlu0 %2250 }
0x1482   : > { %v2253_v37 = vmul.f32 %v2251_v11, %v2247_v52 }
0x1484   : > { %2255 = vrot.lane.b32.xlu0 %v2253_v37, %s5403_s24 }
0x14f1   : > { %v2164_v39 = vpop.permute.xlu1 %2163 }
0x14f2   : > { %v5884_v40 = vadd.f32 %v2164_v39, %v2156_v38 }
0x14f4   : > { %5304 = vtanh.f32 %v5884_v40 }
0x14f6   : > { %v2256_v42 = vpop.permute.xlu0 %2255 }
0x14f7   : > { %v5888_v43 = vadd.f32 %v2256_v42, %v2248_v41  ;;  %v6032_v42 = vld [vmem:[#allocation3 + $0x1d0] sm:$0xff] }
0x14f9   : > { %5306 = vtanh.f32 %v5888_v43 }
0x1501   : > { %v5305_v44 = vpop.eup %5304 }
0x1502   : > { %2169 = vrot.lane.b32.xlu1 %v5305_v44, %s5402_s23  ;;  %v6034_v44 = vld [vmem:[#allocation3 + $0x1c8] sm:$0xff] }
0x1506   : > { %v5307_v45 = vpop.eup %5306 }
0x1507   : > { %2261 = vrot.lane.b32.xlu0 %v5307_v45, %s5402_s23 }
0x1574   : > { %v2170_v34 = vpop.permute.xlu1 %2169 }
0x1575   : > { %v2172_v46 = vmul.f32 %v2170_v34, %v2155_v32 }
0x1577   : > { %2266 = vrot.lane.b32.xlu1 %v2172_v46, %s5403_s24 }
0x1579   : > { %v2262_v47 = vpop.permute.xlu0 %2261 }
0x157a   : > { %v2264_v49 = vmul.f32 %v2262_v47, %v2247_v52 }
0x157c   : > { %2341 = vrot.lane.b32.xlu0 %v2264_v49, %s5403_s24 }
0x15e9   : > { %v2267_v26 = vpop.permute.xlu1 %2266 }
0x15ea   : > { %4894 = vmatmul.mubr.msk.f32.vlgmr.msra.gmra.mxu1 %vm326_vm1, %v2267_v26  ;;  %v6051_v26 = vld [vmem:[#allocation3 + $0x1b0] sm:$0xff] }
0x15eb   : > { %4908 = vmatpush3.msra.mxu1 %v5895_v50  ;;  %4915 = vmatprep.mubr.msk.f32.mxu1 %vm5401_vm0, %v5400_v0 }
0x15ec   : > { %4909 = vmatprep.subr.mxu1 %v5400_v0 }
0x15ed   : > { %4910 = vmatpush3.msra.mxu1 %v5898_v48 }
0x15ee   : > { %4911 = vmatprep.subr.mxu1 %v5400_v0  ;;  %v2342_v54 = vpop.permute.xlu0 %2341 }
0x15ef   : > { %4912 = vmatpush3.msra.mxu1 %v5904_v51  ;;  %4905 = vmatmul.mubr.msk.f32.vlgmr.msra.gmra.mxu0 %vm326_vm1, %v2342_v54 }
0x15f0   : > { %4913 = vmatprep.subr.mxu1 %v5400_v0  ;;  %4919 = vmatpush3.msra.mxu0 %v5907_v53 }
0x15f1   : > { %4914 = vmatpush3.msra.mxu1 %v5910_v55  ;;  %4920 = vmatprep.subr.mxu0 %v5400_v0 }
0x15f2   : > { %4916 = vmatmul.mubr.msk.f32.vlgmr.msra.gmra.mxu1 %vm326_vm1, %v2342_v54  ;;  %4921 = vmatpush3.msra.mxu0 %v5914_v56 }
0x15f3   : > { %4922 = vmatprep.subr.mxu0 %v5400_v0  ;;  %4950 = vmatprep.mubr.msk.f32.mxu0 %vm5401_vm0, %v5400_v0 }
0x15f4   : > { %4923 = vmatpush3.msra.mxu0 %v5920_v33  ;;  %4953 = vmatprep.subr.mxu1 %v5400_v0 }
0x15f5   : > { %4924 = vmatprep.subr.mxu0 %v5400_v0  ;;  %4961 = vmatprep.mubr.msk.f32.mxu1 %vm5401_vm0, %v5400_v0 }
0x15f6   : > { %4925 = vmatpush3.msra.mxu0 %v5925_v57  ;;  %4954 = vmatpush3.msra.mxu1 %v6032_v42 }
0x15f7   : > { %4926 = vmatprep.subr.mxu0 %v5400_v0  ;;  %4955 = vmatprep.subr.mxu1 %v5400_v0 }
0x15f8   : > { %4927 = vmatpush3.msra.mxu0 %v5932_v58  ;;  %4956 = vmatpush3.msra.mxu1 %v6034_v44 }
0x15f9   : > { %4928 = vmatprep.subr.mxu0 %v5400_v0  ;;  %4957 = vmatprep.subr.mxu1 %v5400_v0 }
0x15fa   : > { %4929 = vmatpush3.msra.mxu0 %v5938_v59 }
0x15fb   : > { %4930 = vmatprep.subr.mxu0 %v5400_v0 }
0x15fc   : > { %4931 = vmatpush3.msra.mxu0 %v5942_v60 }
0x15fd   : > { %4932 = vmatprep.subr.mxu0 %v5400_v0 }
0x15fe   : > { %4933 = vmatpush3.msra.mxu0 %v5946_v61 }
0x15ff   : > { %4934 = vmatprep.subr.mxu0 %v5400_v0 }
0x1600   : > { %4935 = vmatpush3.msra.mxu0 %v5950_v62 }
0x1601   : > { %4936 = vmatprep.subr.mxu0 %v5400_v0 }
0x1602   : > { %4937 = vmatpush3.msra.mxu0 %v5954_v63 }
0x1603   : > { %4938 = vmatprep.subr.mxu0 %v5400_v0 }
0x1604   : > { %4939 = vmatpush3.msra.mxu0 %v5958_v1 }
0x1605   : > { %4940 = vmatprep.subr.mxu0 %v5400_v0 }
0x1606   : > { %4941 = vmatpush3.msra.mxu0 %v5962_v2 }
0x1607   : > { %4942 = vmatprep.subr.mxu0 %v5400_v0 }
0x1608   : > { %4943 = vmatpush3.msra.mxu0 %v5966_v3 }
0x1609   : > { %4944 = vmatprep.subr.mxu0 %v5400_v0 }
0x160a   : > { %4945 = vmatpush3.msra.mxu0 %v5970_v4 }
0x160b   : > { %4946 = vmatprep.subr.mxu0 %v5400_v0 }
0x160c   : > { %4947 = vmatpush3.msra.mxu0 %v5974_v7 }
0x160d   : > { %4948 = vmatprep.subr.mxu0 %v5400_v0 }
0x160e   : > { %4949 = vmatpush3.msra.mxu0 %v5978_v8 }
0x160f   : > { %4951 = vmatmul.mubr.f32.vlgmr.msra.gmra.mxu0 %v5357_v10  ;;  %4997 = vmatprep.subr.mxu0 %v5400_v0  ;;  %v6054_v10 = vld [vmem:[#allocation3 + $0x1a8] sm:$0xff] }
0x1610   : > { %4998 = vmatpush3.msra.mxu0 %v5907_v53  ;;  %5029 = vmatprep.mubr.msk.f32.mxu0 %vm5401_vm0, %v5400_v0 }
0x1611   : > { %4999 = vmatprep.subr.mxu0 %v5400_v0 }
0x1612   : > { %5000 = vmatpush3.msra.mxu0 %v5914_v56 }
0x1613   : > { %5001 = vmatprep.subr.mxu0 %v5400_v0 }
0x1614   : > { %5002 = vmatpush3.msra.mxu0 %v5920_v33 }
0x1615   : > { %5003 = vmatprep.subr.mxu0 %v5400_v0 }
0x1616   : > { %5004 = vmatpush3.msra.mxu0 %v5925_v57 }
0x1617   : > { %5005 = vmatprep.subr.mxu0 %v5400_v0 }
0x1618   : > { %5006 = vmatpush3.msra.mxu0 %v5932_v58 }
0x1619   : > { %5007 = vmatprep.subr.mxu0 %v5400_v0 }
0x161a   : > { %5008 = vmatpush3.msra.mxu0 %v5938_v59 }
0x161b   : > { %5009 = vmatprep.subr.mxu0 %v5400_v0 }
0x161c   : > { %5010 = vmatpush3.msra.mxu0 %v5942_v60 }
0x161d   : > { %5011 = vmatprep.subr.mxu0 %v5400_v0 }
0x161e   : > { %5012 = vmatpush3.msra.mxu0 %v5946_v61 }
0x161f   : > { %5013 = vmatprep.subr.mxu0 %v5400_v0 }
0x1620   : > { %5014 = vmatpush3.msra.mxu0 %v5950_v62 }
0x1621   : > { %5015 = vmatprep.subr.mxu0 %v5400_v0 }
0x1622   : > { %5016 = vmatpush3.msra.mxu0 %v5954_v63 }
0x1623   : > { %5017 = vmatprep.subr.mxu0 %v5400_v0 }
0x1624   : > { %5018 = vmatpush3.msra.mxu0 %v5958_v1 }
0x1625   : > { %5019 = vmatprep.subr.mxu0 %v5400_v0 }
0x1626   : > { %5020 = vmatpush3.msra.mxu0 %v5962_v2 }
0x1627   : > { %5021 = vmatprep.subr.mxu0 %v5400_v0 }
0x1628   : > { %5022 = vmatpush3.msra.mxu0 %v5966_v3 }
0x1629   : > { %5023 = vmatprep.subr.mxu0 %v5400_v0 }
0x162a   : > { %5024 = vmatpush3.msra.mxu0 %v5970_v4 }
0x162b   : > { %5025 = vmatprep.subr.mxu0 %v5400_v0 }
0x162c   : > { %5026 = vmatpush3.msra.mxu0 %v5974_v7 }
0x162d   : > { %5027 = vmatprep.subr.mxu0 %v5400_v0 }
0x162e   : > { %5028 = vmatpush3.msra.mxu0 %v5978_v8 }
0x162f   : > { %5076 = vmatprep.subr.mxu0 %v5400_v0 }
0x16aa   : > { %v2336_v12 = vpop.f32.mrf.mxu1 }
0x16ac   : > { %v4895_v13 = vpop.f32.mrf.mxu1 }
0x16ad   : > { %v6064_v13 = vld [vmem:[#allocation3 + $0x198] sm:$0xff] }
0x16af   : > { %v2411_v15 = vpop.f32.mrf.mxu0 }
0x16b0   : > { %v2412_v16 = vadd.f32 %v2411_v15, %v2336_v12  ;;  %v6060_v12 = vld [vmem:[#allocation3 + $0x1a0] sm:$0xff] }
0x16b1   : > { %v4906_v18 = vpop.f32.mrf.mxu0 }
0x16b2   : > { %v2415_v14 = vadd.f32 %v5358_v19, %v2412_v16  ;;  %v2523_v35 = vpop.f32.mrf.mxu1  ;;  %v6073_v19 = vld [vmem:[#allocation3 + $0x1d8] ss:$0 sm:$0xff] }
0x16b4   : > { %5308 = vtanh.f32 %v2415_v14  ;;  %v4917_v20 = vpop.f32.mrf.mxu1 }
0x16c1   : > { %v5309_v21 = vpop.eup %5308 }
0x16c2   : > { %2421 = vrot.lane.b32.xlu0 %v5309_v21, %s5402_s23  ;;  %v2417_v28 = vmul.f32 0.5, %v5309_v21 }
0x16c4   : > { %v2418_v29 = vadd.f32 0.5, %v2417_v28 }
0x16c6   : > { %v2419_v9 = vmul.f32 %v2418_v29, %v5884_v40  ;;  %v6038_v40 = vld [vmem:[#allocation3 + $0x1c0] sm:$0xff] }
0x16c7   : > { %4958 = vmatpush3.msra.mxu1 %v6038_v40 }
0x16c8   : > { %4959 = vmatprep.subr.mxu1 %v5400_v0 }
0x16cf   : > { %v2593_v22 = vpop.f32.mrf.mxu0 }
0x16d0   : > { %v2594_v23 = vadd.f32 %v2593_v22, %v2523_v35 }
0x16d1   : > { %v4952_v24 = vpop.f32.mrf.mxu0 }
0x16d2   : > { %v2597_v25 = vadd.f32 %v6020_v17, %v2594_v23 }
0x16d4   : > { %5310 = vtanh.f32 %v2597_v25 }
0x16e1   : > { %v5311_v27 = vpop.eup %5310 }
0x16e2   : > { %2603 = vrot.lane.b32.xlu1 %v5311_v27, %s5402_s23  ;;  %v2599_v31 = vmul.f32 0.5, %v5311_v27 }
0x16e4   : > { %v2600_v32 = vadd.f32 0.5, %v2599_v31  ;;  %v6083_v31 = vld [vmem:[#allocation3 + $0x1f0] sm:$0xff] }
0x16e6   : > { %v2601_v38 = vmul.f32 %v2600_v32, %v5888_v43  ;;  %v6042_v43 = vld [vmem:[#allocation3 + $0x1b8] sm:$0xff] }
0x16e7   : > { %4960 = vmatpush3.msra.mxu1 %v6042_v43 }
0x16e8   : > { %4964 = vmatprep.subr.mxu1 %v5400_v0 }
0x1734   : > { %v2422_v36 = vpop.permute.xlu0 %2421 }
0x1735   : > { %v2424_v30 = vmul.f32 %v2422_v36, %v2418_v29 }
0x1737   : > { %2426 = vrot.lane.b32.xlu0 %v2424_v30, %s5403_s24  ;;  %v6081_v30 = vld [vmem:[#allocation3 + $0x1f8] sm:$0xff] }
0x1754   : > { %v2604_v5 = vpop.permute.xlu1 %2603 }
0x1755   : > { %v2606_v6 = vmul.f32 %v2604_v5, %v2600_v32  ;;  %v6091_v5 = vld [vmem:[#allocation3 + $0x1e0] sm:$0xff] }
0x1757   : > { %2608 = vrot.lane.b32.xlu1 %v2606_v6, %s5403_s24 }
0x17a9   : > { %v2427_v52 = vpop.permute.xlu0 %2426 }
0x17aa   : > { %v2429_v11 = vadd.f32 %v2427_v52, %v2419_v9 }
0x17ac   : > { %5312 = vtanh.f32 %v2429_v11 }
0x17b9   : > { %v5313_v37 = vpop.eup %5312 }
0x17ba   : > { %2432 = vrot.lane.b32.xlu0 %v5313_v37, %s5402_s23  ;;  %v6133_v37 = vld [vmem:[#allocation3 + $0x200] ss:$0 sm:$0xff] }
0x17c9   : > { %v2609_v39 = vpop.permute.xlu1 %2608 }
0x17ca   : > { %v6029_v41 = vadd.f32 %v2609_v39, %v2601_v38 }
0x17cc   : > { %5314 = vtanh.f32 %v6029_v41 }
0x17d9   : > { %v5315_v45 = vpop.eup %5314 }
0x17da   : > { %2614 = vrot.lane.b32.xlu1 %v5315_v45, %s5402_s23 }
0x182c   : > { %v2433_v34 = vpop.permute.xlu0 %2432 }
0x182d   : > { %v2435_v46 = vmul.f32 %v2433_v34, %v2418_v29 }
0x182f   : > { %2627 = vrot.lane.b32.xlu0 %v2435_v46, %s5403_s24 }
0x184c   : > { %v2615_v47 = vpop.permute.xlu1 %2614 }
0x184d   : > { %v2617_v49 = vmul.f32 %v2615_v47, %v2600_v32  ;;  %v6087_v32 = vld [vmem:[#allocation3 + $0x1e8] sm:$0xff] }
0x184f   : > { %2702 = vrot.lane.b32.xlu1 %v2617_v49, %s5403_s24 }
0x18a1   : > { %v2628_v54 = vpop.permute.xlu0 %2627 }
0x18a2   : > { %4962 = vmatmul.mubr.msk.f32.vlgmr.msra.gmra.mxu1 %vm326_vm1, %v2628_v54 }
0x18a3   : > { %4965 = vmatpush3.msra.mxu1 %v6051_v26  ;;  %4972 = vmatprep.mubr.msk.f32.mxu1 %vm5401_vm0, %v5400_v0 }
0x18a4   : > { %4966 = vmatprep.subr.mxu1 %v5400_v0 }
0x18a5   : > { %4967 = vmatpush3.msra.mxu1 %v6054_v10 }
0x18a6   : > { %4968 = vmatprep.subr.mxu1 %v5400_v0 }
0x18a7   : > { %4969 = vmatpush3.msra.mxu1 %v6060_v12 }
0x18a8   : > { %4970 = vmatprep.subr.mxu1 %v5400_v0 }
0x18a9   : > { %4971 = vmatpush3.msra.mxu1 %v6064_v13 }
0x18aa   : > { %4975 = vmatprep.subr.mxu1 %v5400_v0 }
0x18c1   : > { %v2703_v15 = vpop.permute.xlu1 %2702 }
0x18c2   : > { %4973 = vmatmul.mubr.msk.f32.vlgmr.msra.gmra.mxu1 %vm326_vm1, %v2703_v15 }
0x18c3   : > { %4983 = vmatprep.mubr.msk.f32.mxu1 %vm5401_vm0, %v5400_v0  ;;  %4976 = vmatpush3.msra.mxu1 %v6081_v30 }
0x18c4   : > { %4977 = vmatprep.subr.mxu1 %v5400_v0 }
0x18c5   : > { %4978 = vmatpush3.msra.mxu1 %v6083_v31 }
0x18c6   : > { %4979 = vmatprep.subr.mxu1 %v5400_v0 }
0x18c7   : > { %4980 = vmatpush3.msra.mxu1 %v6087_v32 }
0x18c8   : > { %4981 = vmatprep.subr.mxu1 %v5400_v0 }
0x18c9   : > { %4982 = vmatpush3.msra.mxu1 %v6091_v5 }
0x18ca   : > { %4986 = vmatprep.subr.mxu1 %v5400_v0 }
0x1962   : > { %v2697_v16 = vpop.f32.mrf.mxu1 }
0x1964   : > { %v4963_v18 = vpop.f32.mrf.mxu1 }
0x1982   : > { %v2772_v14 = vpop.f32.mrf.mxu1 }
0x1983   : > { %v2773_v35 = vadd.f32 %v2772_v14, %v2697_v16 }
0x1984   : > { %v4974_v20 = vpop.f32.mrf.mxu1 }
0x1985   : > { %v2776_v21 = vadd.f32 %v6073_v19, %v2773_v35 }
0x1987   : > { %5316 = vtanh.f32 %v2776_v21 }
0x1994   : > { %v5317_v22 = vpop.eup %5316 }
0x1995   : > { %2782 = vrot.lane.b32.xlu0 %v5317_v22, %s5402_s23  ;;  %v2778_v23 = vmul.f32 0.5, %v5317_v22 }
0x1997   : > { %v2779_v24 = vadd.f32 0.5, %v2778_v23 }
0x1999   : > { %v2780_v28 = vmul.f32 %v2779_v24, %v2429_v11 }
0x1a07   : > { %v2783_v25 = vpop.permute.xlu0 %2782 }
0x1a08   : > { %v2785_v27 = vmul.f32 %v2783_v25, %v2779_v24 }
0x1a0a   : > { %2787 = vrot.lane.b32.xlu1 %v2785_v27, %s5403_s24 }
0x1a7c   : > { %v2788_v29 = vpop.permute.xlu1 %2787 }
0x1a7d   : > { %v6078_v36 = vadd.f32 %v2788_v29, %v2780_v28 }
0x1a7f   : > { %5318 = vtanh.f32 %v6078_v36 }
0x1a8c   : > { %v5319_v6 = vpop.eup %5318 }
0x1a8d   : > { %2793 = vrot.lane.b32.xlu0 %v5319_v6, %s5402_s23 }
0x1aff   : > { %v2794_v9 = vpop.permute.xlu0 %2793 }
0x1b00   : > { %v2796_v52 = vmul.f32 %v2794_v9, %v2779_v24 }
0x1b02   : > { %2802 = vrot.lane.b32.xlu1 %v2796_v52, %s5403_s24 }
0x1b74   : > { %v2803_v11 = vpop.permute.xlu1 %2802 }
0x1b75   : > { %4984 = vmatmul.mubr.msk.f32.vlgmr.msra.gmra.mxu1 %vm326_vm1, %v2803_v11 }
0x1b76   : > { %4987 = vmatpush3.msra.mxu1 %v5895_v50  ;;  %4994 = vmatprep.mubr.msk.f32.mxu1 %vm5401_vm0, %v5400_v0 }
0x1b77   : > { %4988 = vmatprep.subr.mxu1 %v5400_v0 }
0x1b78   : > { %4989 = vmatpush3.msra.mxu1 %v5898_v48 }
0x1b79   : > { %4990 = vmatprep.subr.mxu1 %v5400_v0 }
0x1b7a   : > { %4991 = vmatpush3.msra.mxu1 %v5904_v51 }
0x1b7b   : > { %4992 = vmatprep.subr.mxu1 %v5400_v0 }
0x1b7c   : > { %4993 = vmatpush3.msra.mxu1 %v5910_v55 }
0x1b7d   : > { %4995 = vmatmul.mubr.msk.f32.vlgmr.msra.gmra.mxu1 %vm326_vm1, %v2703_v15  ;;  %5032 = vmatprep.subr.mxu1 %v5400_v0 }
0x1b7e   : > { %5033 = vmatpush3.msra.mxu1 %v6032_v42  ;;  %5040 = vmatprep.mubr.msk.f32.mxu1 %vm5401_vm0, %v5400_v0 }
0x1b7f   : > { %5034 = vmatprep.subr.mxu1 %v5400_v0 }
0x1b80   : > { %5035 = vmatpush3.msra.mxu1 %v6034_v44 }
0x1b81   : > { %5036 = vmatprep.subr.mxu1 %v5400_v0 }
0x1b82   : > { %5037 = vmatpush3.msra.mxu1 %v6038_v40 }
0x1b83   : > { %5038 = vmatprep.subr.mxu1 %v5400_v0 }
0x1b84   : > { %5039 = vmatpush3.msra.mxu1 %v6042_v43 }
0x1b85   : > { %5041 = vmatmul.mubr.msk.f32.vlgmr.msra.gmra.mxu1 %vm326_vm1, %v2803_v11  ;;  %5043 = vmatprep.subr.mxu1 %v5400_v0 }
0x1b86   : > { %5044 = vmatpush3.msra.mxu1 %v6051_v26  ;;  %5051 = vmatprep.mubr.msk.f32.mxu1 %vm5401_vm0, %v5400_v0 }
0x1b87   : > { %5045 = vmatprep.subr.mxu1 %v5400_v0 }
0x1b88   : > { %5046 = vmatpush3.msra.mxu1 %v6054_v10 }
0x1b89   : > { %5047 = vmatprep.subr.mxu1 %v5400_v0 }
0x1b8a   : > { %5048 = vmatpush3.msra.mxu1 %v6060_v12 }
0x1b8b   : > { %5049 = vmatprep.subr.mxu1 %v5400_v0 }
0x1b8c   : > { %5050 = vmatpush3.msra.mxu1 %v6064_v13 }
0x1b8d   : > { %5054 = vmatprep.subr.mxu1 %v5400_v0 }
0x1c35   : > { %v2872_v38 = vpop.f32.mrf.mxu1 }
0x1c36   : > { %v2873_v39 = vadd.f32 %v6133_v37, %v2872_v38 }
0x1c37   : > { %v4985_v45 = vpop.f32.mrf.mxu1 }
0x1c38   : > { %2876 = vst [vmem:[%s6138_s28] sm:$0xff] %v2873_v39  ;;  %5030 = vmatmul.mubr.f32.vlgmr.msra.gmra.mxu0 %v2873_v39 }
0x1c39   : > { %5077 = vmatpush3.msra.mxu0 %v5907_v53  ;;  %5108 = vmatprep.mubr.msk.f32.mxu0 %vm5401_vm0, %v5400_v0 }
0x1c3a   : > { %5078 = vmatprep.subr.mxu0 %v5400_v0 }
0x1c3b   : > { %5079 = vmatpush3.msra.mxu0 %v5914_v56 }
0x1c3c   : > { %5080 = vmatprep.subr.mxu0 %v5400_v0 }
0x1c3d   : > { %v2963_v34 = vpop.f32.mrf.mxu1  ;;  %5081 = vmatpush3.msra.mxu0 %v5920_v33 }
0x1c3e   : > { %5082 = vmatprep.subr.mxu0 %v5400_v0 }
0x1c3f   : > { %v4996_v46 = vpop.f32.mrf.mxu1  ;;  %5083 = vmatpush3.msra.mxu0 %v5925_v57 }
0x1c40   : > { %5084 = vmatprep.subr.mxu0 %v5400_v0 }
0x1c41   : > { %5085 = vmatpush3.msra.mxu0 %v5932_v58 }
0x1c42   : > { %5086 = vmatprep.subr.mxu0 %v5400_v0 }
0x1c43   : > { %5087 = vmatpush3.msra.mxu0 %v5938_v59 }
0x1c44   : > { %5088 = vmatprep.subr.mxu0 %v5400_v0 }
0x1c45   : > { %v3132_v47 = vpop.f32.mrf.mxu1  ;;  %5089 = vmatpush3.msra.mxu0 %v5942_v60 }
0x1c46   : > { %5090 = vmatprep.subr.mxu0 %v5400_v0 }
0x1c47   : > { %v5042_v49 = vpop.f32.mrf.mxu1  ;;  %5091 = vmatpush3.msra.mxu0 %v5946_v61 }
0x1c48   : > { %5092 = vmatprep.subr.mxu0 %v5400_v0 }
0x1c49   : > { %5093 = vmatpush3.msra.mxu0 %v5950_v62 }
0x1c4a   : > { %5094 = vmatprep.subr.mxu0 %v5400_v0 }
0x1c4b   : > { %5095 = vmatpush3.msra.mxu0 %v5954_v63 }
0x1c4c   : > { %5096 = vmatprep.subr.mxu0 %v5400_v0 }
0x1c4d   : > { %5097 = vmatpush3.msra.mxu0 %v5958_v1 }
0x1c4e   : > { %5098 = vmatprep.subr.mxu0 %v5400_v0 }
0x1c4f   : > { %5099 = vmatpush3.msra.mxu0 %v5962_v2 }
0x1c50   : > { %5100 = vmatprep.subr.mxu0 %v5400_v0 }
0x1c51   : > { %5101 = vmatpush3.msra.mxu0 %v5966_v3 }
0x1c52   : > { %5102 = vmatprep.subr.mxu0 %v5400_v0 }
0x1c53   : > { %5103 = vmatpush3.msra.mxu0 %v5970_v4 }
0x1c54   : > { %5104 = vmatprep.subr.mxu0 %v5400_v0 }
0x1c55   : > { %5105 = vmatpush3.msra.mxu0 %v5974_v7 }
0x1c56   : > { %5106 = vmatprep.subr.mxu0 %v5400_v0 }
0x1c57   : > { %5107 = vmatpush3.msra.mxu0 %v5978_v8 }
0x1c58   : > { %5155 = vmatprep.subr.mxu0 %v5400_v0 }
0x1cf8   : > { %v3033_v54 = vpop.f32.mrf.mxu0 }
0x1cf9   : > { %v3034_v15 = vadd.f32 %v3033_v54, %v2963_v34 }
0x1cfa   : > { %v5031_v16 = vpop.f32.mrf.mxu0 }
0x1cfb   : > { %v3037_v18 = vadd.f32 %v6020_v17, %v3034_v15 }
0x1cfd   : > { %5320 = vtanh.f32 %v3037_v18 }
0x1d0a   : > { %v5321_v14 = vpop.eup %5320 }
0x1d0b   : > { %3043 = vrot.lane.b32.xlu0 %v5321_v14, %s5402_s23  ;;  %v3039_v35 = vmul.f32 0.5, %v5321_v14 }
0x1d0d   : > { %v3040_v20 = vadd.f32 0.5, %v3039_v35 }
0x1d0f   : > { %v3041_v23 = vmul.f32 %v3040_v20, %v6029_v41 }
0x1d7d   : > { %v3044_v21 = vpop.permute.xlu0 %3043 }
0x1d7e   : > { %v3046_v22 = vmul.f32 %v3044_v21, %v3040_v20 }
0x1d80   : > { %3048 = vrot.lane.b32.xlu1 %v3046_v22, %s5403_s24 }
0x1df2   : > { %v3049_v24 = vpop.permute.xlu1 %3048 }
0x1df3   : > { %v6180_v25 = vadd.f32 %v3049_v24, %v3041_v23 }
0x1df5   : > { %5322 = vtanh.f32 %v6180_v25 }
0x1e02   : > { %v5323_v27 = vpop.eup %5322 }
0x1e03   : > { %3054 = vrot.lane.b32.xlu0 %v5323_v27, %s5402_s23 }
0x1e75   : > { %v3055_v28 = vpop.permute.xlu0 %3054 }
0x1e76   : > { %v3057_v29 = vmul.f32 %v3055_v28, %v3040_v20 }
0x1e78   : > { %3137 = vrot.lane.b32.xlu1 %v3057_v29, %s5403_s24 }
0x1eea   : > { %v3138_v6 = vpop.permute.xlu1 %3137 }
0x1eeb   : > { %5052 = vmatmul.mubr.msk.f32.vlgmr.msra.gmra.mxu1 %vm326_vm1, %v3138_v6 }
0x1eec   : > { %5055 = vmatpush3.msra.mxu1 %v6081_v30  ;;  %5062 = vmatprep.mubr.msk.f32.mxu1 %vm5401_vm0, %v5400_v0 }
0x1eed   : > { %5056 = vmatprep.subr.mxu1 %v5400_v0 }
0x1eee   : > { %5057 = vmatpush3.msra.mxu1 %v6083_v31 }
0x1eef   : > { %5058 = vmatprep.subr.mxu1 %v5400_v0 }
0x1ef0   : > { %5059 = vmatpush3.msra.mxu1 %v6087_v32 }
0x1ef1   : > { %5060 = vmatprep.subr.mxu1 %v5400_v0 }
0x1ef2   : > { %5061 = vmatpush3.msra.mxu1 %v6091_v5 }
0x1ef3   : > { %5065 = vmatprep.subr.mxu1 %v5400_v0 }
0x1fab   : > { %v3207_v41 = vpop.f32.mrf.mxu1 }
0x1fac   : > { %v3208_v9 = vadd.f32 %v3207_v41, %v3132_v47 }
0x1fad   : > { %v5053_v52 = vpop.f32.mrf.mxu1 }
0x1fae   : > { %v3211_v11 = vadd.f32 %v6073_v19, %v3208_v9 }
0x1fb0   : > { %5324 = vtanh.f32 %v3211_v11 }
0x1fbd   : > { %v5325_v38 = vpop.eup %5324 }
0x1fbe   : > { %3217 = vrot.lane.b32.xlu0 %v5325_v38, %s5402_s23  ;;  %v3213_v39 = vmul.f32 0.5, %v5325_v38 }
0x1fc0   : > { %v3214_v45 = vadd.f32 0.5, %v3213_v39 }
0x1fc2   : > { %v3215_v49 = vmul.f32 %v3214_v45, %v6078_v36 }
0x2030   : > { %v3218_v34 = vpop.permute.xlu0 %3217 }
0x2031   : > { %v3220_v46 = vmul.f32 %v3218_v34, %v3214_v45 }
0x2033   : > { %3222 = vrot.lane.b32.xlu1 %v3220_v46, %s5403_s24 }
0x20a5   : > { %v3223_v54 = vpop.permute.xlu1 %3222 }
0x20a6   : > { %v6200_v15 = vadd.f32 %v3223_v54, %v3215_v49 }
0x20a8   : > { %5326 = vtanh.f32 %v6200_v15 }
0x20b5   : > { %v5327_v47 = vpop.eup %5326 }
0x20b6   : > { %3228 = vrot.lane.b32.xlu0 %v5327_v47, %s5402_s23 }
0x2128   : > { %v3229_v16 = vpop.permute.xlu0 %3228 }
0x2129   : > { %v3231_v18 = vmul.f32 %v3229_v16, %v3214_v45 }
0x212b   : > { %3237 = vrot.lane.b32.xlu1 %v3231_v18, %s5403_s24 }
0x219d   : > { %v3238_v14 = vpop.permute.xlu1 %3237 }
0x219e   : > { %5063 = vmatmul.mubr.msk.f32.vlgmr.msra.gmra.mxu1 %vm326_vm1, %v3238_v14 }
0x219f   : > { %5066 = vmatpush3.msra.mxu1 %v5895_v50  ;;  %5073 = vmatprep.mubr.msk.f32.mxu1 %vm5401_vm0, %v5400_v0 }
0x21a0   : > { %5067 = vmatprep.subr.mxu1 %v5400_v0 }
0x21a1   : > { %5068 = vmatpush3.msra.mxu1 %v5898_v48 }
0x21a2   : > { %5069 = vmatprep.subr.mxu1 %v5400_v0 }
0x21a3   : > { %5070 = vmatpush3.msra.mxu1 %v5904_v51 }
0x21a4   : > { %5071 = vmatprep.subr.mxu1 %v5400_v0 }
0x21a5   : > { %5072 = vmatpush3.msra.mxu1 %v5910_v55 }
0x21a6   : > { %5074 = vmatmul.mubr.msk.f32.vlgmr.msra.gmra.mxu1 %vm326_vm1, %v3138_v6  ;;  %5111 = vmatprep.subr.mxu1 %v5400_v0 }
0x21a7   : > { %5112 = vmatpush3.msra.mxu1 %v6032_v42  ;;  %5119 = vmatprep.mubr.msk.f32.mxu1 %vm5401_vm0, %v5400_v0 }
0x21a8   : > { %5113 = vmatprep.subr.mxu1 %v5400_v0 }
0x21a9   : > { %5114 = vmatpush3.msra.mxu1 %v6034_v44 }
0x21aa   : > { %5115 = vmatprep.subr.mxu1 %v5400_v0 }
0x21ab   : > { %5116 = vmatpush3.msra.mxu1 %v6038_v40 }
0x21ac   : > { %5117 = vmatprep.subr.mxu1 %v5400_v0 }
0x21ad   : > { %5118 = vmatpush3.msra.mxu1 %v6042_v43 }
0x21ae   : > { %5120 = vmatmul.mubr.msk.f32.vlgmr.msra.gmra.mxu1 %vm326_vm1, %v3238_v14  ;;  %5122 = vmatprep.subr.mxu1 %v5400_v0 }
0x21af   : > { %5123 = vmatpush3.msra.mxu1 %v6051_v26  ;;  %5130 = vmatprep.mubr.msk.f32.mxu1 %vm5401_vm0, %v5400_v0 }
0x21b0   : > { %5124 = vmatprep.subr.mxu1 %v5400_v0 }
0x21b1   : > { %5125 = vmatpush3.msra.mxu1 %v6054_v10 }
0x21b2   : > { %5126 = vmatprep.subr.mxu1 %v5400_v0 }
0x21b3   : > { %5127 = vmatpush3.msra.mxu1 %v6060_v12 }
0x21b4   : > { %5128 = vmatprep.subr.mxu1 %v5400_v0 }
0x21b5   : > { %5129 = vmatpush3.msra.mxu1 %v6064_v13 }
0x21b6   : > { %5133 = vmatprep.subr.mxu1 %v5400_v0 }
0x225e   : > { %v3307_v36 = vpop.f32.mrf.mxu1 }
0x225f   : > { %v3308_v35 = vadd.f32 %v6133_v37, %v3307_v36 }
0x2260   : > { %v5064_v20 = vpop.f32.mrf.mxu1 }
0x2261   : > { %3311 = vst [vmem:[%s6138_s28 + $0x8] sm:$0xff] %v3308_v35  ;;  %5109 = vmatmul.mubr.f32.vlgmr.msra.gmra.mxu0 %v3308_v35 }
0x2262   : > { %5156 = vmatpush3.msra.mxu0 %v5907_v53  ;;  %5187 = vmatprep.mubr.msk.f32.mxu0 %vm5401_vm0, %v5400_v0 }
0x2263   : > { %5157 = vmatprep.subr.mxu0 %v5400_v0 }
0x2264   : > { %5158 = vmatpush3.msra.mxu0 %v5914_v56 }
0x2265   : > { %5159 = vmatprep.subr.mxu0 %v5400_v0 }
0x2266   : > { %v3398_v21 = vpop.f32.mrf.mxu1  ;;  %5160 = vmatpush3.msra.mxu0 %v5920_v33 }
0x2267   : > { %5161 = vmatprep.subr.mxu0 %v5400_v0 }
0x2268   : > { %v5075_v22 = vpop.f32.mrf.mxu1  ;;  %5162 = vmatpush3.msra.mxu0 %v5925_v57 }
0x2269   : > { %5163 = vmatprep.subr.mxu0 %v5400_v0 }
0x226a   : > { %5164 = vmatpush3.msra.mxu0 %v5932_v58 }
0x226b   : > { %5165 = vmatprep.subr.mxu0 %v5400_v0 }
0x226c   : > { %5166 = vmatpush3.msra.mxu0 %v5938_v59 }
0x226d   : > { %5167 = vmatprep.subr.mxu0 %v5400_v0 }
0x226e   : > { %v3567_v53 = vpop.f32.mrf.mxu1  ;;  %5168 = vmatpush3.msra.mxu0 %v5942_v60 }
0x226f   : > { %5169 = vmatprep.subr.mxu0 %v5400_v0 }
0x2270   : > { %v5121_v56 = vpop.f32.mrf.mxu1  ;;  %5170 = vmatpush3.msra.mxu0 %v5946_v61 }
0x2271   : > { %5171 = vmatprep.subr.mxu0 %v5400_v0 }
0x2272   : > { %5172 = vmatpush3.msra.mxu0 %v5950_v62 }
0x2273   : > { %5173 = vmatprep.subr.mxu0 %v5400_v0 }
0x2274   : > { %5174 = vmatpush3.msra.mxu0 %v5954_v63 }
0x2275   : > { %5175 = vmatprep.subr.mxu0 %v5400_v0 }
0x2276   : > { %5176 = vmatpush3.msra.mxu0 %v5958_v1 }
0x2277   : > { %5177 = vmatprep.subr.mxu0 %v5400_v0 }
0x2278   : > { %5178 = vmatpush3.msra.mxu0 %v5962_v2 }
0x2279   : > { %5179 = vmatprep.subr.mxu0 %v5400_v0 }
0x227a   : > { %5180 = vmatpush3.msra.mxu0 %v5966_v3 }
0x227b   : > { %5181 = vmatprep.subr.mxu0 %v5400_v0 }
0x227c   : > { %5182 = vmatpush3.msra.mxu0 %v5970_v4 }
0x227d   : > { %5183 = vmatprep.subr.mxu0 %v5400_v0 }
0x227e   : > { %5184 = vmatpush3.msra.mxu0 %v5974_v7 }
0x227f   : > { %5185 = vmatprep.subr.mxu0 %v5400_v0 }
0x2280   : > { %5186 = vmatpush3.msra.mxu0 %v5978_v8 }
0x2321   : > { %v3468_v33 = vpop.f32.mrf.mxu0 }
0x2322   : > { %v3469_v57 = vadd.f32 %v3468_v33, %v3398_v21 }
0x2323   : > { %v5110_v58 = vpop.f32.mrf.mxu0 }
0x2324   : > { %v3472_v59 = vadd.f32 %v6020_v17, %v3469_v57 }
0x2326   : > { %5328 = vtanh.f32 %v3472_v59 }
0x2333   : > { %v5329_v60 = vpop.eup %5328 }
0x2334   : > { %3478 = vrot.lane.b32.xlu0 %v5329_v60, %s5402_s23  ;;  %v3474_v61 = vmul.f32 0.5, %v5329_v60 }
0x2336   : > { %v3475_v62 = vadd.f32 0.5, %v3474_v61 }
0x2338   : > { %v3476_v2 = vmul.f32 %v3475_v62, %v6180_v25 }
0x23a6   : > { %v3479_v63 = vpop.permute.xlu0 %3478 }
0x23a7   : > { %v3481_v1 = vmul.f32 %v3479_v63, %v3475_v62 }
0x23a9   : > { %3483 = vrot.lane.b32.xlu1 %v3481_v1, %s5403_s24 }
0x241b   : > { %v3484_v3 = vpop.permute.xlu1 %3483 }
0x241c   : > { %v6277_v4 = vadd.f32 %v3484_v3, %v3476_v2 }
0x241e   : > { %5330 = vtanh.f32 %v6277_v4 }
0x242b   : > { %v5331_v7 = vpop.eup %5330 }
0x242c   : > { %3489 = vrot.lane.b32.xlu0 %v5331_v7, %s5402_s23 }
0x249e   : > { %v3490_v8 = vpop.permute.xlu0 %3489 }
0x249f   : > { %v3492_v23 = vmul.f32 %v3490_v8, %v3475_v62 }
0x24a1   : > { %3572 = vrot.lane.b32.xlu1 %v3492_v23, %s5403_s24 }
0x2513   : > { %v3573_v24 = vpop.permute.xlu1 %3572 }
0x2514   : > { %5131 = vmatmul.mubr.msk.f32.vlgmr.msra.gmra.mxu1 %vm326_vm1, %v3573_v24 }
0x2515   : > { %5134 = vmatpush3.msra.mxu1 %v6081_v30  ;;  %5141 = vmatprep.mubr.msk.f32.mxu1 %vm5401_vm0, %v5400_v0 }
0x2516   : > { %5135 = vmatprep.subr.mxu1 %v5400_v0 }
0x2517   : > { %5136 = vmatpush3.msra.mxu1 %v6083_v31 }
0x2518   : > { %5137 = vmatprep.subr.mxu1 %v5400_v0 }
0x2519   : > { %5138 = vmatpush3.msra.mxu1 %v6087_v32 }
0x251a   : > { %5139 = vmatprep.subr.mxu1 %v5400_v0 }
0x251b   : > { %5140 = vmatpush3.msra.mxu1 %v6091_v5 }
0x251c   : > { %5144 = vmatprep.subr.mxu1 %v5400_v0 }
0x25d4   : > { %v3642_v25 = vpop.f32.mrf.mxu1 }
0x25d5   : > { %v3643_v27 = vadd.f32 %v3642_v25, %v3567_v53 }
0x25d6   : > { %v5132_v28 = vpop.f32.mrf.mxu1 }
0x25d7   : > { %v3646_v29 = vadd.f32 %v6073_v19, %v3643_v27 }
0x25d9   : > { %5332 = vtanh.f32 %v3646_v29 }
0x25e6   : > { %v5333_v6 = vpop.eup %5332 }
0x25e7   : > { %3652 = vrot.lane.b32.xlu0 %v5333_v6, %s5402_s23  ;;  %v3648_v41 = vmul.f32 0.5, %v5333_v6 }
0x25e9   : > { %v3649_v9 = vadd.f32 0.5, %v3648_v41 }
0x25eb   : > { %v3650_v38 = vmul.f32 %v3649_v9, %v6200_v15 }
0x2659   : > { %v3653_v52 = vpop.permute.xlu0 %3652 }
0x265a   : > { %v3655_v11 = vmul.f32 %v3653_v52, %v3649_v9 }
0x265c   : > { %3657 = vrot.lane.b32.xlu1 %v3655_v11, %s5403_s24 }
0x26ce   : > { %v3658_v39 = vpop.permute.xlu1 %3657 }
0x26cf   : > { %v6297_v45 = vadd.f32 %v3658_v39, %v3650_v38 }
0x26d1   : > { %5334 = vtanh.f32 %v6297_v45 }
0x26de   : > { %v5335_v34 = vpop.eup %5334 }
0x26df   : > { %3663 = vrot.lane.b32.xlu0 %v5335_v34, %s5402_s23 }
0x2751   : > { %v3664_v46 = vpop.permute.xlu0 %3663 }
0x2752   : > { %v3666_v49 = vmul.f32 %v3664_v46, %v3649_v9 }
0x2754   : > { %3672 = vrot.lane.b32.xlu1 %v3666_v49, %s5403_s24 }
0x27c6   : > { %v3673_v54 = vpop.permute.xlu1 %3672 }
0x27c7   : > { %5142 = vmatmul.mubr.msk.f32.vlgmr.msra.gmra.mxu1 %vm326_vm1, %v3673_v54 }
0x27c8   : > { %5145 = vmatpush3.msra.mxu1 %v5895_v50  ;;  %5152 = vmatprep.mubr.msk.f32.mxu1 %vm5401_vm0, %v5400_v0 }
0x27c9   : > { %5146 = vmatprep.subr.mxu1 %v5400_v0 }
0x27ca   : > { %5147 = vmatpush3.msra.mxu1 %v5898_v48 }
0x27cb   : > { %5148 = vmatprep.subr.mxu1 %v5400_v0 }
0x27cc   : > { %5149 = vmatpush3.msra.mxu1 %v5904_v51 }
0x27cd   : > { %5150 = vmatprep.subr.mxu1 %v5400_v0 }
0x27ce   : > { %5151 = vmatpush3.msra.mxu1 %v5910_v55 }
0x27cf   : > { %5153 = vmatmul.mubr.msk.f32.vlgmr.msra.gmra.mxu1 %vm326_vm1, %v3573_v24  ;;  %5190 = vmatprep.subr.mxu1 %v5400_v0 }
0x27d0   : > { %5191 = vmatpush3.msra.mxu1 %v6032_v42  ;;  %5198 = vmatprep.mubr.msk.f32.mxu1 %vm5401_vm0, %v5400_v0 }
0x27d1   : > { %5192 = vmatprep.subr.mxu1 %v5400_v0 }
0x27d2   : > { %5193 = vmatpush3.msra.mxu1 %v6034_v44 }
0x27d3   : > { %5194 = vmatprep.subr.mxu1 %v5400_v0 }
0x27d4   : > { %5195 = vmatpush3.msra.mxu1 %v6038_v40 }
0x27d5   : > { %5196 = vmatprep.subr.mxu1 %v5400_v0 }
0x27d6   : > { %5197 = vmatpush3.msra.mxu1 %v6042_v43 }
0x27d7   : > { %5199 = vmatmul.mubr.msk.f32.vlgmr.msra.gmra.mxu1 %vm326_vm1, %v3673_v54  ;;  %5201 = vmatprep.subr.mxu1 %v5400_v0 }
0x27d8   : > { %5202 = vmatpush3.msra.mxu1 %v6051_v26  ;;  %5209 = vmatprep.mubr.msk.f32.mxu1 %vm5401_vm0, %v5400_v0 }
0x27d9   : > { %5203 = vmatprep.subr.mxu1 %v5400_v0 }
0x27da   : > { %5204 = vmatpush3.msra.mxu1 %v6054_v10 }
0x27db   : > { %5205 = vmatprep.subr.mxu1 %v5400_v0 }
0x27dc   : > { %5206 = vmatpush3.msra.mxu1 %v6060_v12 }
0x27dd   : > { %5207 = vmatprep.subr.mxu1 %v5400_v0 }
0x27de   : > { %5208 = vmatpush3.msra.mxu1 %v6064_v13 }
0x27df   : > { %5212 = vmatprep.subr.mxu1 %v5400_v0 }
0x2887   : > { %v3742_v50 = vpop.f32.mrf.mxu1 }
0x2888   : > { %v3743_v48 = vadd.f32 %v6133_v37, %v3742_v50 }
0x2889   : > { %v5143_v51 = vpop.f32.mrf.mxu1 }
0x288a   : > { %3746 = vst [vmem:[%s6138_s28 + $0x10] sm:$0xff] %v3743_v48  ;;  %5188 = vmatmul.mubr.f32.vlgmr.msra.gmra.mxu0 %v3743_v48 }
0x288f   : > { %v3833_v55 = vpop.f32.mrf.mxu1 }
0x2891   : > { %v5154_v42 = vpop.f32.mrf.mxu1 }
0x2897   : > { %v4002_v44 = vpop.f32.mrf.mxu1 }
0x2899   : > { %v5200_v40 = vpop.f32.mrf.mxu1 }
0x294a   : > { %v3903_v43 = vpop.f32.mrf.mxu0 }
0x294b   : > { %v3904_v26 = vadd.f32 %v3903_v43, %v3833_v55 }
0x294c   : > { %v5189_v10 = vpop.f32.mrf.mxu0 }
0x294d   : > { %v3907_v12 = vadd.f32 %v6020_v17, %v3904_v26 }
0x294f   : > { %5336 = vtanh.f32 %v3907_v12 }
0x295c   : > { %v5337_v15 = vpop.eup %5336 }
0x295d   : > { %3913 = vrot.lane.b32.xlu0 %v5337_v15, %s5402_s23  ;;  %v3909_v13 = vmul.f32 0.5, %v5337_v15 }
0x295f   : > { %v3910_v47 = vadd.f32 0.5, %v3909_v13 }
0x2961   : > { %v3911_v14 = vmul.f32 %v3910_v47, %v6277_v4 }
0x29cf   : > { %v3914_v16 = vpop.permute.xlu0 %3913 }
0x29d0   : > { %v3916_v18 = vmul.f32 %v3914_v16, %v3910_v47 }
0x29d2   : > { %3918 = vrot.lane.b32.xlu1 %v3916_v18, %s5403_s24 }
0x2a44   : > { %v3919_v36 = vpop.permute.xlu1 %3918 }
0x2a45   : > { %v3921_v35 = vadd.f32 %v3919_v36, %v3911_v14 }
0x2a47   : > { %5338 = vtanh.f32 %v3921_v35 }
0x2a54   : > { %v5339_v20 = vpop.eup %5338 }
0x2a55   : > { %3924 = vrot.lane.b32.xlu0 %v5339_v20, %s5402_s23 }
0x2ac7   : > { %v3925_v21 = vpop.permute.xlu0 %3924 }
0x2ac8   : > { %v3927_v17 = vmul.f32 %v3925_v21, %v3910_v47 }
0x2aca   : > { %4007 = vrot.lane.b32.xlu1 %v3927_v17, %s5403_s24 }
0x2b3c   : > { %v4008_v22 = vpop.permute.xlu1 %4007 }
0x2b3d   : > { %5210 = vmatmul.mubr.msk.f32.vlgmr.msra.gmra.mxu1 %vm326_vm1, %v4008_v22 }
0x2b3e   : > { %5213 = vmatpush3.msra.mxu1 %v6081_v30  ;;  %5220 = vmatprep.mubr.msk.f32.mxu1 %vm5401_vm0, %v5400_v0 }
0x2b3f   : > { %5214 = vmatprep.subr.mxu1 %v5400_v0 }
0x2b40   : > { %5215 = vmatpush3.msra.mxu1 %v6083_v31 }
0x2b41   : > { %5216 = vmatprep.subr.mxu1 %v5400_v0 }
0x2b42   : > { %5217 = vmatpush3.msra.mxu1 %v6087_v32 }
0x2b43   : > { %5218 = vmatprep.subr.mxu1 %v5400_v0 }
0x2b44   : > { %5219 = vmatpush3.msra.mxu1 %v6091_v5 }
0x2bfd   : > { %v4077_v53 = vpop.f32.mrf.mxu1 }
0x2bfe   : > { %v4078_v56 = vadd.f32 %v4077_v53, %v4002_v44 }
0x2bff   : > { %v5211_v33 = vpop.f32.mrf.mxu1 }
0x2c00   : > { %v4081_v30 = vadd.f32 %v6073_v19, %v4078_v56 }
0x2c02   : > { %5340 = vtanh.f32 %v4081_v30 }
0x2c0f   : > { %v5341_v57 = vpop.eup %5340 }
0x2c10   : > { %4087 = vrot.lane.b32.xlu0 %v5341_v57, %s5402_s23  ;;  %v4083_v58 = vmul.f32 0.5, %v5341_v57 }
0x2c12   : > { %v4084_v59 = vadd.f32 0.5, %v4083_v58 }
0x2c14   : > { %v4085_v0 = vmul.f32 %v4084_v59, %v6297_v45 }
0x2c82   : > { %v4088_v31 = vpop.permute.xlu0 %4087 }
0x2c83   : > { %v4090_v60 = vmul.f32 %v4088_v31, %v4084_v59 }
0x2c85   : > { %4092 = vrot.lane.b32.xlu1 %v4090_v60, %s5403_s24 }
0x2cf7   : > { %v4093_v32 = vpop.permute.xlu1 %4092 }
0x2cf8   : > { %v4095_v5 = vadd.f32 %v4093_v32, %v4085_v0 }
0x2cfa   : > { %5342 = vtanh.f32 %v4095_v5 }
0x2d07   : > { %v5343_v61 = vpop.eup %5342 }
0x2d08   : > { %4098 = vrot.lane.b32.xlu0 %v5343_v61, %s5402_s23 }
0x2d7a   : > { %v4099_v19 = vpop.permute.xlu0 %4098 }
0x2d7b   : > { %v4101_v62 = vmul.f32 %v4099_v19, %v4084_v59 }
0x2d7d   : > { %4107 = vrot.lane.b32.xlu1 %v4101_v62, %s5403_s24 }
0x2def   : > { %v4108_v63 = vpop.permute.xlu1 %4107 }
0x2df0   : > { %5221 = vmatmul.mubr.msk.f32.vlgmr.msra.gmra.mxu1 %vm326_vm1, %v4108_v63 }
0x2eb0   : > { %v4177_v1 = vpop.f32.mrf.mxu1 }
0x2eb1   : > { %v4178_v2 = vadd.f32 %v6133_v37, %v4177_v1 }
0x2eb2   : > { %v5222_v3 = vpop.f32.mrf.mxu1 }
0x2eb3   : > { %4181 = vst [vmem:[%s6138_s28 + $0x18] sm:$0xff] %v4178_v2 }
0x2eb4 PF: > { %s13_s9 = sadd.s32 1, %s5395_s9  }
0x2eb5   : > { %p10_p1 = scmp.ge.s32.totalorder %s13_s9, 4  }
0x2eb7   :  { %12 = sbr.rel (!%p10_p1) target bundleno = 1 (0x1), region = 63 }
0x2ebc   :  { %4203 = vsyncpa [#allocation4], 1 }
0x2ebd   :  { %4205 = vsyncpa [#allocation4 + $0x1], 1 }

</bundles_post_ra>
